<compile_context>
chip_gen: v7x
topology: tpu7x:2x2x1
jax: 0.10.0
libtpu: 0.0.40
codegen_flags: <defaults>
</compile_context>

<pallas_src>
import functools

import jax
import jax.numpy as jnp
from jax.experimental import pallas as pl
from jax.experimental.pallas import tpu as pltpu

EPS = 1e-5  # torch LayerNorm default


def _layernorm(x, w, b):
    mu = jnp.mean(x, axis=-1, keepdims=True)
    var = jnp.mean((x - mu) ** 2, axis=-1, keepdims=True)
    return (x - mu) * jax.lax.rsqrt(var + EPS) * w + b


def _temporal_encoder_kernel(
    # inputs
    xseq_ref, xlast0_ref, hsum_ref, hexp_ref,
    wq_ref, wkv_ref, wo_ref, w1_ref, w2_ref,
    bq_ref, bkv_ref, bo_ref, b1_ref, b2_ref,
    ln1w_ref, ln1b_ref, ln2w_ref, ln2b_ref,
    wz_ref,
    # output
    out_ref,
    # scratch (carried across the whole grid)
    xlast_scr, hin_scr, acc_scr,
    *, batch, seq_len, num_heads):
    l = pl.program_id(0)          # layer index (outer: each layer's weights DMA'd once)
    f = pl.program_id(1)          # FFN column-tile index (inner)
    nf = pl.num_programs(1)
    B, T, H = batch, seq_len, num_heads
    D = out_ref.shape[-1]
    hd = D // H
    scale = 1.0 / (hd ** 0.5)
    bf16 = jnp.bfloat16
    f32 = jnp.float32

    def lrow(ref):                # per-layer (1, N) row of a resident stacked param
        return ref[pl.ds(l, 1)]

    @pl.when((l == 0) & (f == 0))
    def _init():
        xlast_scr[...] = xlast0_ref[...]     # f32 TRoPE'd last token -> residual stream

    # ---- cross attention + LN2 (runs once per layer, at FFN tile 0) -------------
    @pl.when(f == 0)
    def _attention():
        x_last = xlast_scr[...]                                            # (B, D) f32
        q_in = _layernorm(x_last, lrow(ln1w_ref), lrow(ln1b_ref))
        q = jnp.dot(q_in.astype(bf16), wq_ref[0],
                    preferred_element_type=f32) + lrow(bq_ref)             # (B, D)
        q = q * scale
        kv = jnp.dot(xseq_ref[...], wkv_ref[0],
                     preferred_element_type=f32) + lrow(bkv_ref)           # (B*T, 2D)
        k = kv[:, :D]
        v = kv[:, D:]
        # all-head scores: lane-dense elementwise product + block-diagonal head-sum
        # on the MXU (no (..., H, hd) lane-padded layout, no per-head loop).
        qk = (k.reshape(B, T, D) * q.reshape(B, 1, D)).reshape(B * T, D)   # f32
        s = jnp.dot(qk, hsum_ref[...], preferred_element_type=f32)         # (B*T, H)
        s = s.reshape(B, T, H)
        m = jnp.max(s, axis=1, keepdims=True)                              # (B, 1, H)
        p = jnp.exp(s - m)                                                 # (B, T, H)
        denom = jnp.sum(p, axis=1, keepdims=True)                          # (B, 1, H)
        p = p * pl.reciprocal(denom, approx=True)                          # normalized probs
        # expand probs back to lane width D (MXU) and reduce over T
        p_exp = jnp.dot(p.reshape(B * T, H), hexp_ref[...],
                        preferred_element_type=f32)                        # (B*T, D)
        o = jnp.sum((p_exp * v).reshape(B, T, D), axis=1)                  # (B, D)
        attn = jnp.dot(o.astype(bf16), wo_ref[0],
                       preferred_element_type=f32) + lrow(bo_ref)          # (B, D)
        x_mid = x_last + attn
        xlast_scr[...] = x_mid
        hin_scr[...] = _layernorm(x_mid, lrow(ln2w_ref), lrow(ln2b_ref))
        acc_scr[...] = jnp.zeros_like(acc_scr)

    # ---- feed-forward column tile (every grid step, partial-sum into acc) -------
    h_in = hin_scr[...]                                                    # (B, D) f32
    b1row = b1_ref[0, pl.ds(f, 1)]                                         # (1, TF)
    ff = jnp.dot(h_in.astype(bf16), w1_ref[0],
                 preferred_element_type=f32) + b1row                       # (B, TF)
    # TODO(synk): torch nn.GELU defaults to exact erf; tanh approximation used here.
    ff = jax.nn.gelu(ff, approximate=True)
    acc_scr[...] += jnp.dot(ff.astype(bf16), w2_ref[0],
                            preferred_element_type=f32)                    # (B, D)

    # ---- finalize layer residual / final zero_conv ------------------------------
    @pl.when(f == nf - 1)
    def _finish_layer():
        xlast_scr[...] = xlast_scr[...] + acc_scr[...] + lrow(b2_ref)

    @pl.when((f == nf - 1) & (l == pl.num_programs(0) - 1))
    def _final_out():
        # zero_conv (bias=False); f32 matmul keeps the residual-stream precision.
        out_ref[...] = jnp.dot(xlast_scr[...], wz_ref[...],
                               preferred_element_type=f32)


def _pick_ff_tile(ffn_dim, cap):
    """Largest multiple-of-128 divisor of ffn_dim that is <= cap (else ffn_dim)."""
    if ffn_dim <= cap:
        return ffn_dim
    t = (cap // 128) * 128
    while t >= 128:
        if ffn_dim % t == 0:
            return t
        t -= 128
    return ffn_dim


def temporal_encoder_realtime(x, timestamp, params, *, num_heads,
                              trope_scalar=20.0, max_ff_tile=2048):
    """x: (B, T, D) float32, timestamp: (B, T) float32 -> (B, 1, D) float32."""
    B, T, D = x.shape
    L = params["wq"].shape[0]
    H = num_heads
    half = D // 2
    assert D % H == 0 and D % 2 == 0
    FFN = 4 * D
    TF = _pick_ff_tile(FFN, max_ff_tile)
    NF = FFN // TF
    f32, bf16 = jnp.float32, jnp.bfloat16
    # For best perf keep D a multiple of 128 and B a multiple of 8.

    # ---- TRoPE (rotate-half RoPE driven by timestamp / trope_scalar), done in XLA.
    time_index = timestamp.astype(f32) / trope_scalar
    inv_freq = 1.0 / (10000.0 ** (jnp.arange(half, dtype=f32) / half))
    ang = time_index[..., None] * inv_freq                                 # (B, T, half)
    sin, cos = jnp.sin(ang), jnp.cos(ang)
    xf = x.astype(f32)
    x1, x2 = xf[..., :half], xf[..., half:]
    x_embed = jnp.concatenate([x1 * cos - x2 * sin, x2 * cos + x1 * sin], axis=-1)
    x_seq = x_embed.reshape(B * T, D).astype(bf16)                         # K/V context
    x_last0 = x_embed[:, -1, :]                                            # (B, D) f32

    # ---- block-diagonal head-sum / head-expand one-hots (tiny, f32) --------------
    head_id = jnp.arange(D, dtype=jnp.int32) // (D // H)
    hsum = (head_id[:, None] == jnp.arange(H, dtype=jnp.int32)[None, :]).astype(f32)  # (D, H)
    hexp = hsum.T                                                                     # (H, D)

    # ---- pack weights: bf16 matmul weights (Wk|Wv fused), f32 biases / LN / wz ---
    wq = params["wq"].astype(bf16)                                                    # (L, D, D)
    wkv = jnp.concatenate([params["wk"], params["wv"]], axis=-1).astype(bf16)         # (L, D, 2D)
    wo = params["wo"].astype(bf16)                                                    # (L, D, D)
    w1 = params["w1"].astype(bf16)                                                    # (L, D, 4D)
    w2 = params["w2"].astype(bf16)                                                    # (L, 4D, D)
    wz = params["wz"].astype(f32)                                                     # (D, D)
    bkv = jnp.concatenate([params["bk"], params["bv"]], axis=-1).astype(f32)          # (L, 2D)
    b1 = params["b1"].astype(f32).reshape(L, NF, TF)

    kernel = functools.partial(_temporal_encoder_kernel,
                               batch=B, seq_len=T, num_heads=H)

    def resident(shape):          # constant block index -> fetched once for the whole grid
        return pl.BlockSpec(shape, lambda l, f: (0,) * len(shape))

    def per_layer(shape):         # one layer's slab, fetched once when l changes
        return pl.BlockSpec((1,) + shape, lambda l, f: (l, 0, 0))

    in_specs = [
        resident((B * T, D)), resident((B, D)),                        # x_seq, x_last0
        resident((D, H)), resident((H, D)),                            # hsum, hexp
        per_layer((D, D)), per_layer((D, 2 * D)), per_layer((D, D)),   # wq, wkv, wo
        pl.BlockSpec((1, D, TF), lambda l, f: (l, 0, f)),              # w1 column tile
        pl.BlockSpec((1, TF, D), lambda l, f: (l, f, 0)),              # w2 row tile
        resident((L, D)), resident((L, 2 * D)), resident((L, D)),      # bq, bkv, bo
        per_layer((NF, TF)),                                           # b1 per-layer slab
        resident((L, D)),                                              # b2
        resident((L, D)), resident((L, D)),                            # ln1w, ln1b
        resident((L, D)), resident((L, D)),                            # ln2w, ln2b
        resident((D, D)),                                              # wz (zero_conv)
    ]
    out_specs = pl.BlockSpec((B, D), lambda l, f: (0, 0))              # lane-dense, written once

    # ---- generation-aware VMEM budget with headroom -------------------------------
    est = (2 * (B * T * D * 2 + B * D * 4          # x_seq bf16 + x_last0 f32
                + 4 * D * D * 2                    # wq|wkv|wo bf16 (per layer)
                + 2 * D * TF * 2                   # w1/w2 tiles bf16
                + 2 * D * H * 4                    # one-hots
                + L * 13 * D * 4 + 4 * D * 4       # bias/LN stacks + b1 slab
                + D * D * 4                        # wz f32
                + B * D * 4)                       # output block
           + 3 * B * D * 4)                        # scratch
    try:
        cap = int(pltpu.get_tpu_info().vmem_capacity_bytes)   # 64 MiB v7x, 128 MiB v5e/v6e
    except Exception:
        cap = 64 * 2 ** 20
    budget = int(cap * 0.8)                                   # leave compiler headroom
    vmem_limit = max(32 * 2 ** 20, min(budget, 2 * est))

    out = pl.pallas_call(
        kernel,
        out_shape=jax.ShapeDtypeStruct((B, D), f32),
        grid=(L, NF),
        in_specs=in_specs,
        out_specs=out_specs,
        scratch_shapes=[pltpu.VMEM((B, D), f32),     # residual stream x_last
                        pltpu.VMEM((B, D), f32),     # LN2(x) FFN input
                        pltpu.VMEM((B, D), f32)],    # FFN partial-sum accumulator
        compiler_params=pltpu.CompilerParams(
            # Both axes carry state; single TensorCore avoids duplicating weight HBM
            # traffic across cores for this bandwidth-bound kernel (per review).
            dimension_semantics=("arbitrary", "arbitrary"),
            vmem_limit_bytes=vmem_limit),
    )(x_seq, x_last0, hsum, hexp,
      wq, wkv, wo, w1, w2,
      params["bq"].astype(f32), bkv, params["bo"].astype(f32), b1,
      params["b2"].astype(f32),
      params["ln1w"].astype(f32), params["ln1b"].astype(f32),
      params["ln2w"].astype(f32), params["ln2b"].astype(f32),
      wz)
    return out[:, None, :]   # (B, 1, D) to match the module's output shape


def init_params(key, embed_dim, num_layer, do_zero_init=False):
    """Linear weights stored as (in, out) so the kernel computes x @ W (== torch x @ W.T)."""
    D = embed_dim
    keys = jax.random.split(key, 8)
    s = 0.02
    p = {
        "wq": s * jax.random.normal(keys[0], (num_layer, D, D), jnp.float32),
        "wk": s * jax.random.normal(keys[1], (num_layer, D, D), jnp.float32),
        "wv": s * jax.random.normal(keys[2], (num_layer, D, D), jnp.float32),
        "wo": s * jax.random.normal(keys[3], (num_layer, D, D), jnp.float32),
        "bq": jnp.zeros((num_layer, D), jnp.float32),
        "bk": jnp.zeros((num_layer, D), jnp.float32),
        "bv": jnp.zeros((num_layer, D), jnp.float32),
        "bo": jnp.zeros((num_layer, D), jnp.float32),
        "ln1w": jnp.ones((num_layer, D), jnp.float32),
        "ln1b": jnp.zeros((num_layer, D), jnp.float32),
        "ln2w": jnp.ones((num_layer, D), jnp.float32),
        "ln2b": jnp.zeros((num_layer, D), jnp.float32),
        "w1": s * jax.random.normal(keys[4], (num_layer, D, 4 * D), jnp.float32),
        "b1": jnp.zeros((num_layer, 4 * D), jnp.float32),
        "w2": s * jax.random.normal(keys[5], (num_layer, 4 * D, D), jnp.float32),
        "b2": jnp.zeros((num_layer, D), jnp.float32),
    }
    if do_zero_init:
        # Matches the module default (_init_weights zeros zero_conv) -> all-zero output.
        p["wz"] = jnp.zeros((D, D), jnp.float32)
    else:
        p["wz"] = s * jax.random.normal(keys[6], (D, D), jnp.float32)
    return p


if __name__ == "__main__":
    B, T, D = 16, 8, 128          # lane-aligned D, sublane-aligned B and T
    num_heads, num_layer = 4, 2

    key = jax.random.PRNGKey(0)
    kx, kt, kp = jax.random.split(key, 3)
    x = jax.random.normal(kx, (B, T, D), jnp.float32)
    timestamp = jnp.cumsum(
        jax.random.uniform(kt, (B, T), jnp.float32, minval=0.02, maxval=0.05), axis=-1)

    # do_zero_init=False so the result is non-trivial (module default True zeros the output).
    params = init_params(kp, D, num_layer, do_zero_init=False)

    out = temporal_encoder_realtime(
        x, timestamp, params, num_heads=num_heads, trope_scalar=20.0)
    out = jax.block_until_ready(out)
    assert out.shape == (B, 1, D) and out.dtype == jnp.float32
    assert bool(jnp.all(jnp.isfinite(out)))
    print("KERNEL_OK")
</pallas_src>

<mosaic_0001>
module attributes {stable_mosaic.version = 11 : i64} {
  func.func @_temporal_encoder_kernel(%arg0: i32, %arg1: i32, %arg2: memref<128x128xbf16, #tpu.memory_space<vmem>>, %arg3: memref<16x128xf32, #tpu.memory_space<vmem>>, %arg4: memref<128x4xf32, #tpu.memory_space<vmem>>, %arg5: memref<4x128xf32, #tpu.memory_space<vmem>>, %arg6: memref<1x128x128xbf16, #tpu.memory_space<vmem>>, %arg7: memref<1x128x256xbf16, #tpu.memory_space<vmem>>, %arg8: memref<1x128x128xbf16, #tpu.memory_space<vmem>>, %arg9: memref<1x128x512xbf16, #tpu.memory_space<vmem>>, %arg10: memref<1x512x128xbf16, #tpu.memory_space<vmem>>, %arg11: memref<2x128xf32, #tpu.memory_space<vmem>>, %arg12: memref<2x256xf32, #tpu.memory_space<vmem>>, %arg13: memref<2x128xf32, #tpu.memory_space<vmem>>, %arg14: memref<1x1x512xf32, #tpu.memory_space<vmem>>, %arg15: memref<2x128xf32, #tpu.memory_space<vmem>>, %arg16: memref<2x128xf32, #tpu.memory_space<vmem>>, %arg17: memref<2x128xf32, #tpu.memory_space<vmem>>, %arg18: memref<2x128xf32, #tpu.memory_space<vmem>>, %arg19: memref<2x128xf32, #tpu.memory_space<vmem>>, %arg20: memref<128x128xf32, #tpu.memory_space<vmem>>, %arg21: memref<16x128xf32, #tpu.memory_space<vmem>>, %arg22: memref<16x128xf32, #tpu.memory_space<vmem>>, %arg23: memref<16x128xf32, #tpu.memory_space<vmem>>, %arg24: memref<16x128xf32, #tpu.memory_space<vmem>>) attributes {dimension_semantics = [#tpu.dimension_semantics<arbitrary>, #tpu.dimension_semantics<arbitrary>], iteration_bounds = array<i64: 2, 1>, scalar_prefetch = 0 : i64, scratch_operands = 3 : i64, tpu.core_type = #tpu.core_type<tc>, window_params = [{pipeline_mode = #tpu.pipeline_mode<synchronous>, transform_indices = @transform_0, window_bounds = array<i64: 128, 128>}, {pipeline_mode = #tpu.pipeline_mode<synchronous>, transform_indices = @transform_1, window_bounds = array<i64: 16, 128>}, {pipeline_mode = #tpu.pipeline_mode<synchronous>, transform_indices = @transform_2, window_bounds = array<i64: 128, 4>}, {pipeline_mode = #tpu.pipeline_mode<synchronous>, transform_indices = @transform_3, window_bounds = array<i64: 4, 128>}, {transform_indices = @transform_4, window_bounds = array<i64: 1, 128, 128>}, {transform_indices = @transform_5, window_bounds = array<i64: 1, 128, 256>}, {transform_indices = @transform_6, window_bounds = array<i64: 1, 128, 128>}, {transform_indices = @transform_7, window_bounds = array<i64: 1, 128, 512>}, {transform_indices = @transform_8, window_bounds = array<i64: 1, 512, 128>}, {pipeline_mode = #tpu.pipeline_mode<synchronous>, transform_indices = @transform_9, window_bounds = array<i64: 2, 128>}, {pipeline_mode = #tpu.pipeline_mode<synchronous>, transform_indices = @transform_10, window_bounds = array<i64: 2, 256>}, {pipeline_mode = #tpu.pipeline_mode<synchronous>, transform_indices = @transform_11, window_bounds = array<i64: 2, 128>}, {transform_indices = @transform_12, window_bounds = array<i64: 1, 1, 512>}, {pipeline_mode = #tpu.pipeline_mode<synchronous>, transform_indices = @transform_13, window_bounds = array<i64: 2, 128>}, {pipeline_mode = #tpu.pipeline_mode<synchronous>, transform_indices = @transform_14, window_bounds = array<i64: 2, 128>}, {pipeline_mode = #tpu.pipeline_mode<synchronous>, transform_indices = @transform_15, window_bounds = array<i64: 2, 128>}, {pipeline_mode = #tpu.pipeline_mode<synchronous>, transform_indices = @transform_16, window_bounds = array<i64: 2, 128>}, {pipeline_mode = #tpu.pipeline_mode<synchronous>, transform_indices = @transform_17, window_bounds = array<i64: 2, 128>}, {pipeline_mode = #tpu.pipeline_mode<synchronous>, transform_indices = @transform_18, window_bounds = array<i64: 128, 128>}, {pipeline_mode = #tpu.pipeline_mode<synchronous>, transform_indices = @transform_19, window_bounds = array<i64: 16, 128>}]} {
    %c0_i32 = arith.constant 0 : i32
    %0 = arith.cmpi eq, %arg0, %c0_i32 : i32
    %c0_i32_0 = arith.constant 0 : i32
    %1 = arith.cmpi eq, %arg1, %c0_i32_0 : i32
    %2 = arith.andi %0, %1 : i1
    %3 = arith.extui %2 : i1 to i32
    %c0_i32_1 = arith.constant 0 : i32
    %4 = arith.cmpi ne, %3, %c0_i32_1 : i32
    scf.if %4 {
      %c0_26 = arith.constant 0 : index
      %c0_27 = arith.constant 0 : index
      %46 = vector.load %arg3[%c0_26, %c0_27] : memref<16x128xf32, #tpu.memory_space<vmem>>, vector<16x128xf32>
      %c0_28 = arith.constant 0 : index
      %c0_29 = arith.constant 0 : index
      %47 = vector.load %arg22[%c0_28, %c0_29] : memref<16x128xf32, #tpu.memory_space<vmem>>, vector<16x128xf32>
      tpu.vector_store %arg22[%c0_28, %c0_29], %46 {strides = array<i32>} : memref<16x128xf32, #tpu.memory_space<vmem>>, vector<16x128xf32>,
    } else {
    }
    %c0_i32_2 = arith.constant 0 : i32
    %5 = arith.cmpi eq, %arg1, %c0_i32_2 : i32
    %6 = arith.extui %5 : i1 to i32
    %c0_i32_3 = arith.constant 0 : i32
    %7 = arith.cmpi ne, %6, %c0_i32_3 : i32
    scf.if %7 {
      %c0_26 = arith.constant 0 : index
      %c0_27 = arith.constant 0 : index
      %46 = vector.load %arg22[%c0_26, %c0_27] : memref<16x128xf32, #tpu.memory_space<vmem>>, vector<16x128xf32>
      %47 = arith.index_cast %arg0 : i32 to index
      %c0_28 = arith.constant 0 : index
      %48 = vector.load %arg16[%47, %c0_28] : memref<2x128xf32, #tpu.memory_space<vmem>>, vector<1x128xf32>
      %49 = arith.index_cast %arg0 : i32 to index
      %c0_29 = arith.constant 0 : index
      %50 = vector.load %arg17[%49, %c0_29] : memref<2x128xf32, #tpu.memory_space<vmem>>, vector<1x128xf32>
      %cst_30 = arith.constant dense<0.000000e+00> : vector<16xf32>
      %51 = vector.multi_reduction <add>, %46, %cst_30 [1] : vector<16x128xf32> to vector<16xf32>
      %52 = vector.shape_cast %51 : vector<16xf32> to vector<16x1xf32>
      %cst_31 = arith.constant 1.280000e+02 : f32
      %53 = vector.broadcast %cst_31 : f32 to vector<16x1xf32>
      %54 = arith.divf %52, %53 : vector<16x1xf32>
      %55 = vector.broadcast %54 : vector<16x1xf32> to vector<16x128xf32>
      %56 = arith.subf %46, %55 : vector<16x128xf32>
      %57 = arith.mulf %56, %56 : vector<16x128xf32>
      %cst_32 = arith.constant dense<0.000000e+00> : vector<16xf32>
      %58 = vector.multi_reduction <add>, %57, %cst_32 [1] : vector<16x128xf32> to vector<16xf32>
      %59 = vector.shape_cast %58 : vector<16xf32> to vector<16x1xf32>
      %cst_33 = arith.constant 1.280000e+02 : f32
      %60 = vector.broadcast %cst_33 : f32 to vector<16x1xf32>
      %61 = arith.divf %59, %60 : vector<16x1xf32>
      %62 = vector.broadcast %54 : vector<16x1xf32> to vector<16x128xf32>
      %63 = arith.subf %46, %62 : vector<16x128xf32>
      %cst_34 = arith.constant 9.99999974E-6 : f32
      %64 = vector.broadcast %cst_34 : f32 to vector<16x1xf32>
      %65 = arith.addf %61, %64 : vector<16x1xf32>
      %66 = math.rsqrt %65 : vector<16x1xf32>
      %67 = vector.broadcast %66 : vector<16x1xf32> to vector<16x128xf32>
      %68 = arith.mulf %63, %67 : vector<16x128xf32>
      %69 = vector.broadcast %48 : vector<1x128xf32> to vector<16x128xf32>
      %70 = arith.mulf %68, %69 : vector<16x128xf32>
      %71 = vector.broadcast %50 : vector<1x128xf32> to vector<16x128xf32>
      %72 = arith.addf %70, %71 : vector<16x128xf32>
      %73 = arith.truncf %72 : vector<16x128xf32> to vector<16x128xbf16>
      %c0_35 = arith.constant 0 : index
      %c0_36 = arith.constant 0 : index
      %c0_37 = arith.constant 0 : index
      %74 = vector.load %arg6[%c0_35, %c0_36, %c0_37] : memref<1x128x128xbf16, #tpu.memory_space<vmem>>, vector<1x128x128xbf16>
      %75 = vector.shape_cast %74 : vector<1x128x128xbf16> to vector<128x128xbf16>
      %cst_38 = arith.constant dense<0.000000e+00> : vector<16x128xf32>
      %76 = tpu.matmul %73, %75, %cst_38 {dimension_numbers = #tpu.dot_dimension_numbers<[1], [0], [0], [1], [0, 0, 1, 1], [], []>} : vector<16x128xbf16>, vector<128x128xbf16>, vector<16x128xf32> -> vector<16x128xf32>
      %77 = arith.index_cast %arg0 : i32 to index
      %c0_39 = arith.constant 0 : index
      %78 = vector.load %arg11[%77, %c0_39] : memref<2x128xf32, #tpu.memory_space<vmem>>, vector<1x128xf32>
      %79 = vector.broadcast %78 : vector<1x128xf32> to vector<16x128xf32>
      %80 = arith.addf %76, %79 : vector<16x128xf32>
      %cst_40 = arith.constant 0.176776692 : f32
      %81 = vector.broadcast %cst_40 : f32 to vector<16x128xf32>
      %82 = arith.mulf %80, %81 : vector<16x128xf32>
      %c0_41 = arith.constant 0 : index
      %c0_42 = arith.constant 0 : index
      %83 = vector.load %arg2[%c0_41, %c0_42] : memref<128x128xbf16, #tpu.memory_space<vmem>>, vector<128x128xbf16>
      %c0_43 = arith.constant 0 : index
      %c0_44 = arith.constant 0 : index
      %c0_45 = arith.constant 0 : index
      %84 = vector.load %arg7[%c0_43, %c0_44, %c0_45] : memref<1x128x256xbf16, #tpu.memory_space<vmem>>, vector<1x128x256xbf16>
      %85 = vector.shape_cast %84 : vector<1x128x256xbf16> to vector<128x256xbf16>
      %cst_46 = arith.constant dense<0.000000e+00> : vector<128x256xf32>
      %86 = tpu.matmul %83, %85, %cst_46 {dimension_numbers = #tpu.dot_dimension_numbers<[1], [0], [0], [1], [0, 0, 1, 1], [], []>} : vector<128x128xbf16>, vector<128x256xbf16>, vector<128x256xf32> -> vector<128x256xf32>
      %87 = arith.index_cast %arg0 : i32 to index
      %c0_47 = arith.constant 0 : index
      %88 = vector.load %arg12[%87, %c0_47] : memref<2x256xf32, #tpu.memory_space<vmem>>, vector<1x256xf32>
      %89 = vector.broadcast %88 : vector<1x256xf32> to vector<128x256xf32>
      %90 = arith.addf %86, %89 : vector<128x256xf32>
      %91 = vector.extract_strided_slice %90 {offsets = [0, 0], sizes = [128, 128], strides = [1, 1]} : vector<128x256xf32> to vector<128x128xf32>
      %92 = vector.extract_strided_slice %90 {offsets = [0, 128], sizes = [128, 128], strides = [1, 1]} : vector<128x256xf32> to vector<128x128xf32>
      %93 = vector.shape_cast %91 : vector<128x128xf32> to vector<16x8x128xf32>
      %94 = vector.shape_cast %82 : vector<16x128xf32> to vector<16x1x128xf32>
      %95 = vector.broadcast %94 : vector<16x1x128xf32> to vector<16x8x128xf32>
      %96 = arith.mulf %93, %95 : vector<16x8x128xf32>
      %97 = vector.shape_cast %96 : vector<16x8x128xf32> to vector<128x128xf32>
      %c0_48 = arith.constant 0 : index
      %c0_49 = arith.constant 0 : index
      %98 = vector.load %arg4[%c0_48, %c0_49] : memref<128x4xf32, #tpu.memory_space<vmem>>, vector<128x4xf32>
      %cst_50 = arith.constant dense<0.000000e+00> : vector<128x4xf32>
      %99 = tpu.matmul %97, %98, %cst_50 {dimension_numbers = #tpu.dot_dimension_numbers<[1], [0], [0], [1], [0, 0, 1, 1], [], []>} : vector<128x128xf32>, vector<128x4xf32>, vector<128x4xf32> -> vector<128x4xf32>
      %100 = vector.shape_cast %99 : vector<128x4xf32> to vector<16x8x4xf32>
      %cst_51 = arith.constant dense<0xFF800000> : vector<16x4xf32>
      %101 = vector.multi_reduction <maximumf>, %100, %cst_51 [1] : vector<16x8x4xf32> to vector<16x4xf32>
      %102 = vector.shape_cast %101 : vector<16x4xf32> to vector<16x1x4xf32>
      %103 = vector.broadcast %102 : vector<16x1x4xf32> to vector<16x8x4xf32>
      %104 = arith.subf %100, %103 : vector<16x8x4xf32>
      %105 = math.exp %104 : vector<16x8x4xf32>
      %cst_52 = arith.constant dense<0.000000e+00> : vector<16x4xf32>
      %106 = vector.multi_reduction <add>, %105, %cst_52 [1] : vector<16x8x4xf32> to vector<16x4xf32>
      %107 = vector.shape_cast %106 : vector<16x4xf32> to vector<16x1x4xf32>
      %108 = tpu.reciprocal %107 {approx = true} : vector<16x1x4xf32> -> vector<16x1x4xf32>
      %109 = vector.broadcast %108 : vector<16x1x4xf32> to vector<16x8x4xf32>
      %110 = arith.mulf %105, %109 : vector<16x8x4xf32>
      %111 = vector.shape_cast %110 : vector<16x8x4xf32> to vector<128x4xf32>
      %c0_53 = arith.constant 0 : index
      %c0_54 = arith.constant 0 : index
      %112 = vector.load %arg5[%c0_53, %c0_54] : memref<4x128xf32, #tpu.memory_space<vmem>>, vector<4x128xf32>
      %cst_55 = arith.constant dense<0.000000e+00> : vector<128x128xf32>
      %113 = tpu.matmul %111, %112, %cst_55 {dimension_numbers = #tpu.dot_dimension_numbers<[1], [0], [0], [1], [0, 0, 1, 1], [], []>} : vector<128x4xf32>, vector<4x128xf32>, vector<128x128xf32> -> vector<128x128xf32>
      %114 = arith.mulf %113, %92 : vector<128x128xf32>
      %115 = vector.shape_cast %114 : vector<128x128xf32> to vector<16x8x128xf32>
      %cst_56 = arith.constant dense<0.000000e+00> : vector<16x128xf32>
      %116 = vector.multi_reduction <add>, %115, %cst_56 [1] : vector<16x8x128xf32> to vector<16x128xf32>
      %117 = arith.truncf %116 : vector<16x128xf32> to vector<16x128xbf16>
      %c0_57 = arith.constant 0 : index
      %c0_58 = arith.constant 0 : index
      %c0_59 = arith.constant 0 : index
      %118 = vector.load %arg8[%c0_57, %c0_58, %c0_59] : memref<1x128x128xbf16, #tpu.memory_space<vmem>>, vector<1x128x128xbf16>
      %119 = vector.shape_cast %118 : vector<1x128x128xbf16> to vector<128x128xbf16>
      %cst_60 = arith.constant dense<0.000000e+00> : vector<16x128xf32>
      %120 = tpu.matmul %117, %119, %cst_60 {dimension_numbers = #tpu.dot_dimension_numbers<[1], [0], [0], [1], [0, 0, 1, 1], [], []>} : vector<16x128xbf16>, vector<128x128xbf16>, vector<16x128xf32> -> vector<16x128xf32>
      %121 = arith.index_cast %arg0 : i32 to index
      %c0_61 = arith.constant 0 : index
      %122 = vector.load %arg13[%121, %c0_61] : memref<2x128xf32, #tpu.memory_space<vmem>>, vector<1x128xf32>
      %123 = vector.broadcast %122 : vector<1x128xf32> to vector<16x128xf32>
      %124 = arith.addf %120, %123 : vector<16x128xf32>
      %125 = arith.addf %46, %124 : vector<16x128xf32>
      %c0_62 = arith.constant 0 : index
      %c0_63 = arith.constant 0 : index
      %126 = vector.load %arg22[%c0_62, %c0_63] : memref<16x128xf32, #tpu.memory_space<vmem>>, vector<16x128xf32>
      tpu.vector_store %arg22[%c0_62, %c0_63], %125 {strides = array<i32>} : memref<16x128xf32, #tpu.memory_space<vmem>>, vector<16x128xf32>,
      %127 = arith.index_cast %arg0 : i32 to index
      %c0_64 = arith.constant 0 : index
      %128 = vector.load %arg18[%127, %c0_64] : memref<2x128xf32, #tpu.memory_space<vmem>>, vector<1x128xf32>
      %129 = arith.index_cast %arg0 : i32 to index
      %c0_65 = arith.constant 0 : index
      %130 = vector.load %arg19[%129, %c0_65] : memref<2x128xf32, #tpu.memory_space<vmem>>, vector<1x128xf32>
      %cst_66 = arith.constant dense<0.000000e+00> : vector<16xf32>
      %131 = vector.multi_reduction <add>, %125, %cst_66 [1] : vector<16x128xf32> to vector<16xf32>
      %132 = vector.shape_cast %131 : vector<16xf32> to vector<16x1xf32>
      %cst_67 = arith.constant 1.280000e+02 : f32
      %133 = vector.broadcast %cst_67 : f32 to vector<16x1xf32>
      %134 = arith.divf %132, %133 : vector<16x1xf32>
      %135 = vector.broadcast %134 : vector<16x1xf32> to vector<16x128xf32>
      %136 = arith.subf %125, %135 : vector<16x128xf32>
      %137 = arith.mulf %136, %136 : vector<16x128xf32>
      %cst_68 = arith.constant dense<0.000000e+00> : vector<16xf32>
      %138 = vector.multi_reduction <add>, %137, %cst_68 [1] : vector<16x128xf32> to vector<16xf32>
      %139 = vector.shape_cast %138 : vector<16xf32> to vector<16x1xf32>
      %cst_69 = arith.constant 1.280000e+02 : f32
      %140 = vector.broadcast %cst_69 : f32 to vector<16x1xf32>
      %141 = arith.divf %139, %140 : vector<16x1xf32>
      %142 = vector.broadcast %134 : vector<16x1xf32> to vector<16x128xf32>
      %143 = arith.subf %125, %142 : vector<16x128xf32>
      %cst_70 = arith.constant 9.99999974E-6 : f32
      %144 = vector.broadcast %cst_70 : f32 to vector<16x1xf32>
      %145 = arith.addf %141, %144 : vector<16x1xf32>
      %146 = math.rsqrt %145 : vector<16x1xf32>
      %147 = vector.broadcast %146 : vector<16x1xf32> to vector<16x128xf32>
      %148 = arith.mulf %143, %147 : vector<16x128xf32>
      %149 = vector.broadcast %128 : vector<1x128xf32> to vector<16x128xf32>
      %150 = arith.mulf %148, %149 : vector<16x128xf32>
      %151 = vector.broadcast %130 : vector<1x128xf32> to vector<16x128xf32>
      %152 = arith.addf %150, %151 : vector<16x128xf32>
      %c0_71 = arith.constant 0 : index
      %c0_72 = arith.constant 0 : index
      %153 = vector.load %arg23[%c0_71, %c0_72] : memref<16x128xf32, #tpu.memory_space<vmem>>, vector<16x128xf32>
      tpu.vector_store %arg23[%c0_71, %c0_72], %152 {strides = array<i32>} : memref<16x128xf32, #tpu.memory_space<vmem>>, vector<16x128xf32>,
      %cst_73 = arith.constant 0.000000e+00 : f32
      %154 = vector.broadcast %cst_73 : f32 to vector<16x128xf32>
      %c0_74 = arith.constant 0 : index
      %c0_75 = arith.constant 0 : index
      %155 = vector.load %arg24[%c0_74, %c0_75] : memref<16x128xf32, #tpu.memory_space<vmem>>, vector<16x128xf32>
      tpu.vector_store %arg24[%c0_74, %c0_75], %154 {strides = array<i32>} : memref<16x128xf32, #tpu.memory_space<vmem>>, vector<16x128xf32>,
    } else {
    }
    %c0 = arith.constant 0 : index
    %c0_4 = arith.constant 0 : index
    %8 = vector.load %arg23[%c0, %c0_4] : memref<16x128xf32, #tpu.memory_space<vmem>>, vector<16x128xf32>
    %c0_5 = arith.constant 0 : index
    %9 = arith.index_cast %arg1 : i32 to index
    %c0_6 = arith.constant 0 : index
    %10 = vector.load %arg14[%c0_5, %9, %c0_6] : memref<1x1x512xf32, #tpu.memory_space<vmem>>, vector<1x1x512xf32>
    %11 = vector.shape_cast %10 : vector<1x1x512xf32> to vector<1x512xf32>
    %12 = arith.truncf %8 : vector<16x128xf32> to vector<16x128xbf16>
    %c0_7 = arith.constant 0 : index
    %c0_8 = arith.constant 0 : index
    %c0_9 = arith.constant 0 : index
    %13 = vector.load %arg9[%c0_7, %c0_8, %c0_9] : memref<1x128x512xbf16, #tpu.memory_space<vmem>>, vector<1x128x512xbf16>
    %14 = vector.shape_cast %13 : vector<1x128x512xbf16> to vector<128x512xbf16>
    %cst = arith.constant dense<0.000000e+00> : vector<16x512xf32>
    %15 = tpu.matmul %12, %14, %cst {dimension_numbers = #tpu.dot_dimension_numbers<[1], [0], [0], [1], [0, 0, 1, 1], [], []>} : vector<16x128xbf16>, vector<128x512xbf16>, vector<16x512xf32> -> vector<16x512xf32>
    %16 = vector.broadcast %11 : vector<1x512xf32> to vector<16x512xf32>
    %17 = arith.addf %15, %16 : vector<16x512xf32>
    %18 = arith.mulf %17, %17 : vector<16x512xf32>
    %19 = arith.mulf %17, %18 : vector<16x512xf32>
    %cst_10 = arith.constant 4.471500e-02 : f32
    %20 = vector.broadcast %cst_10 : f32 to vector<16x512xf32>
    %21 = arith.mulf %20, %19 : vector<16x512xf32>
    %22 = arith.addf %17, %21 : vector<16x512xf32>
    %cst_11 = arith.constant 0.797884583 : f32
    %23 = vector.broadcast %cst_11 : f32 to vector<16x512xf32>
    %24 = arith.mulf %23, %22 : vector<16x512xf32>
    %25 = math.tanh %24 : vector<16x512xf32>
    %cst_12 = arith.constant 1.000000e+00 : f32
    %26 = vector.broadcast %cst_12 : f32 to vector<16x512xf32>
    %27 = arith.addf %26, %25 : vector<16x512xf32>
    %cst_13 = arith.constant 5.000000e-01 : f32
    %28 = vector.broadcast %cst_13 : f32 to vector<16x512xf32>
    %29 = arith.mulf %28, %27 : vector<16x512xf32>
    %30 = arith.mulf %17, %29 : vector<16x512xf32>
    %c0_14 = arith.constant 0 : index
    %c0_15 = arith.constant 0 : index
    %31 = vector.load %arg24[%c0_14, %c0_15] : memref<16x128xf32, #tpu.memory_space<vmem>>, vector<16x128xf32>
    %32 = arith.truncf %30 : vector<16x512xf32> to vector<16x512xbf16>
    %c0_16 = arith.constant 0 : index
    %c0_17 = arith.constant 0 : index
    %c0_18 = arith.constant 0 : index
    %33 = vector.load %arg10[%c0_16, %c0_17, %c0_18] : memref<1x512x128xbf16, #tpu.memory_space<vmem>>, vector<1x512x128xbf16>
    %34 = vector.shape_cast %33 : vector<1x512x128xbf16> to vector<512x128xbf16>
    %cst_19 = arith.constant dense<0.000000e+00> : vector<16x128xf32>
    %35 = tpu.matmul %32, %34, %cst_19 {dimension_numbers = #tpu.dot_dimension_numbers<[1], [0], [0], [1], [0, 0, 1, 1], [], []>} : vector<16x512xbf16>, vector<512x128xbf16>, vector<16x128xf32> -> vector<16x128xf32>
    %36 = arith.addf %31, %35 : vector<16x128xf32>
    %c0_20 = arith.constant 0 : index
    %c0_21 = arith.constant 0 : index
    %37 = vector.load %arg24[%c0_20, %c0_21] : memref<16x128xf32, #tpu.memory_space<vmem>>, vector<16x128xf32>
    tpu.vector_store %arg24[%c0_20, %c0_21], %36 {strides = array<i32>} : memref<16x128xf32, #tpu.memory_space<vmem>>, vector<16x128xf32>,
    %c0_i32_22 = arith.constant 0 : i32
    %38 = arith.cmpi eq, %arg1, %c0_i32_22 : i32
    %39 = arith.extui %38 : i1 to i32
    %c0_i32_23 = arith.constant 0 : i32
    %40 = arith.cmpi ne, %39, %c0_i32_23 : i32
    scf.if %40 {
      %c0_26 = arith.constant 0 : index
      %c0_27 = arith.constant 0 : index
      %46 = vector.load %arg22[%c0_26, %c0_27] : memref<16x128xf32, #tpu.memory_space<vmem>>, vector<16x128xf32>
      %c0_28 = arith.constant 0 : index
      %c0_29 = arith.constant 0 : index
      %47 = vector.load %arg24[%c0_28, %c0_29] : memref<16x128xf32, #tpu.memory_space<vmem>>, vector<16x128xf32>
      %48 = arith.addf %46, %47 : vector<16x128xf32>
      %49 = arith.index_cast %arg0 : i32 to index
      %c0_30 = arith.constant 0 : index
      %50 = vector.load %arg15[%49, %c0_30] : memref<2x128xf32, #tpu.memory_space<vmem>>, vector<1x128xf32>
      %51 = vector.broadcast %50 : vector<1x128xf32> to vector<16x128xf32>
      %52 = arith.addf %48, %51 : vector<16x128xf32>
      %c0_31 = arith.constant 0 : index
      %c0_32 = arith.constant 0 : index
      %53 = vector.load %arg22[%c0_31, %c0_32] : memref<16x128xf32, #tpu.memory_space<vmem>>, vector<16x128xf32>
      tpu.vector_store %arg22[%c0_31, %c0_32], %52 {strides = array<i32>} : memref<16x128xf32, #tpu.memory_space<vmem>>, vector<16x128xf32>,
    } else {
    }
    %c0_i32_24 = arith.constant 0 : i32
    %41 = arith.cmpi eq, %arg1, %c0_i32_24 : i32
    %c1_i32 = arith.constant 1 : i32
    %42 = arith.cmpi eq, %arg0, %c1_i32 : i32
    %43 = arith.andi %41, %42 : i1
    %44 = arith.extui %43 : i1 to i32
    %c0_i32_25 = arith.constant 0 : i32
    %45 = arith.cmpi ne, %44, %c0_i32_25 : i32
    scf.if %45 {
      %c0_26 = arith.constant 0 : index
      %c0_27 = arith.constant 0 : index
      %46 = vector.load %arg22[%c0_26, %c0_27] : memref<16x128xf32, #tpu.memory_space<vmem>>, vector<16x128xf32>
      %c0_28 = arith.constant 0 : index
      %c0_29 = arith.constant 0 : index
      %47 = vector.load %arg20[%c0_28, %c0_29] : memref<128x128xf32, #tpu.memory_space<vmem>>, vector<128x128xf32>
      %cst_30 = arith.constant dense<0.000000e+00> : vector<16x128xf32>
      %48 = tpu.matmul %46, %47, %cst_30 {dimension_numbers = #tpu.dot_dimension_numbers<[1], [0], [0], [1], [0, 0, 1, 1], [], []>} : vector<16x128xf32>, vector<128x128xf32>, vector<16x128xf32> -> vector<16x128xf32>
      %c0_31 = arith.constant 0 : index
      %c0_32 = arith.constant 0 : index
      %49 = vector.load %arg21[%c0_31, %c0_32] : memref<16x128xf32, #tpu.memory_space<vmem>>, vector<16x128xf32>
      tpu.vector_store %arg21[%c0_31, %c0_32], %48 {strides = array<i32>} : memref<16x128xf32, #tpu.memory_space<vmem>>, vector<16x128xf32>,
    } else {
    }
    return
  }
  func.func @transform_0(%arg0: i32, %arg1: i32) -> (i32, i32) {
    %c0_i32 = arith.constant 0 : i32
    %c0_i32_0 = arith.constant 0 : i32
    %c0_i32_1 = arith.constant 0 : i32
    return %c0_i32, %c0_i32_0 : i32, i32
  }
  func.func @transform_1(%arg0: i32, %arg1: i32) -> (i32, i32) {
    %c0_i32 = arith.constant 0 : i32
    %c0_i32_0 = arith.constant 0 : i32
    %c0_i32_1 = arith.constant 0 : i32
    return %c0_i32, %c0_i32_0 : i32, i32
  }
  func.func @transform_2(%arg0: i32, %arg1: i32) -> (i32, i32) {
    %c0_i32 = arith.constant 0 : i32
    %c0_i32_0 = arith.constant 0 : i32
    %c0_i32_1 = arith.constant 0 : i32
    return %c0_i32, %c0_i32_0 : i32, i32
  }
  func.func @transform_3(%arg0: i32, %arg1: i32) -> (i32, i32) {
    %c0_i32 = arith.constant 0 : i32
    %c0_i32_0 = arith.constant 0 : i32
    %c0_i32_1 = arith.constant 0 : i32
    return %c0_i32, %c0_i32_0 : i32, i32
  }
  func.func @transform_4(%arg0: i32, %arg1: i32) -> (i32, i32, i32) {
    %c0_i32 = arith.constant 0 : i32
    %c0_i32_0 = arith.constant 0 : i32
    %c0_i32_1 = arith.constant 0 : i32
    return %arg0, %c0_i32, %c0_i32_0 : i32, i32, i32
  }
  func.func @transform_5(%arg0: i32, %arg1: i32) -> (i32, i32, i32) {
    %c0_i32 = arith.constant 0 : i32
    %c0_i32_0 = arith.constant 0 : i32
    %c0_i32_1 = arith.constant 0 : i32
    return %arg0, %c0_i32, %c0_i32_0 : i32, i32, i32
  }
  func.func @transform_6(%arg0: i32, %arg1: i32) -> (i32, i32, i32) {
    %c0_i32 = arith.constant 0 : i32
    %c0_i32_0 = arith.constant 0 : i32
    %c0_i32_1 = arith.constant 0 : i32
    return %arg0, %c0_i32, %c0_i32_0 : i32, i32, i32
  }
  func.func @transform_7(%arg0: i32, %arg1: i32) -> (i32, i32, i32) {
    %c0_i32 = arith.constant 0 : i32
    %c0_i32_0 = arith.constant 0 : i32
    return %arg0, %c0_i32, %arg1 : i32, i32, i32
  }
  func.func @transform_8(%arg0: i32, %arg1: i32) -> (i32, i32, i32) {
    %c0_i32 = arith.constant 0 : i32
    %c0_i32_0 = arith.constant 0 : i32
    return %arg0, %arg1, %c0_i32 : i32, i32, i32
  }
  func.func @transform_9(%arg0: i32, %arg1: i32) -> (i32, i32) {
    %c0_i32 = arith.constant 0 : i32
    %c0_i32_0 = arith.constant 0 : i32
    %c0_i32_1 = arith.constant 0 : i32
    return %c0_i32, %c0_i32_0 : i32, i32
  }
  func.func @transform_10(%arg0: i32, %arg1: i32) -> (i32, i32) {
    %c0_i32 = arith.constant 0 : i32
    %c0_i32_0 = arith.constant 0 : i32
    %c0_i32_1 = arith.constant 0 : i32
    return %c0_i32, %c0_i32_0 : i32, i32
  }
  func.func @transform_11(%arg0: i32, %arg1: i32) -> (i32, i32) {
    %c0_i32 = arith.constant 0 : i32
    %c0_i32_0 = arith.constant 0 : i32
    %c0_i32_1 = arith.constant 0 : i32
    return %c0_i32, %c0_i32_0 : i32, i32
  }
  func.func @transform_12(%arg0: i32, %arg1: i32) -> (i32, i32, i32) {
    %c0_i32 = arith.constant 0 : i32
    %c0_i32_0 = arith.constant 0 : i32
    %c0_i32_1 = arith.constant 0 : i32
    return %arg0, %c0_i32, %c0_i32_0 : i32, i32, i32
  }
  func.func @transform_13(%arg0: i32, %arg1: i32) -> (i32, i32) {
    %c0_i32 = arith.constant 0 : i32
    %c0_i32_0 = arith.constant 0 : i32
    %c0_i32_1 = arith.constant 0 : i32
    return %c0_i32, %c0_i32_0 : i32, i32
  }
  func.func @transform_14(%arg0: i32, %arg1: i32) -> (i32, i32) {
    %c0_i32 = arith.constant 0 : i32
    %c0_i32_0 = arith.constant 0 : i32
    %c0_i32_1 = arith.constant 0 : i32
    return %c0_i32, %c0_i32_0 : i32, i32
  }
  func.func @transform_15(%arg0: i32, %arg1: i32) -> (i32, i32) {
    %c0_i32 = arith.constant 0 : i32
    %c0_i32_0 = arith.constant 0 : i32
    %c0_i32_1 = arith.constant 0 : i32
    return %c0_i32, %c0_i32_0 : i32, i32
  }
  func.func @transform_16(%arg0: i32, %arg1: i32) -> (i32, i32) {
    %c0_i32 = arith.constant 0 : i32
    %c0_i32_0 = arith.constant 0 : i32
    %c0_i32_1 = arith.constant 0 : i32
    return %c0_i32, %c0_i32_0 : i32, i32
  }
  func.func @transform_17(%arg0: i32, %arg1: i32) -> (i32, i32) {
    %c0_i32 = arith.constant 0 : i32
    %c0_i32_0 = arith.constant 0 : i32
    %c0_i32_1 = arith.constant 0 : i32
    return %c0_i32, %c0_i32_0 : i32, i32
  }
  func.func @transform_18(%arg0: i32, %arg1: i32) -> (i32, i32) {
    %c0_i32 = arith.constant 0 : i32
    %c0_i32_0 = arith.constant 0 : i32
    %c0_i32_1 = arith.constant 0 : i32
    return %c0_i32, %c0_i32_0 : i32, i32
  }
  func.func @transform_19(%arg0: i32, %arg1: i32) -> (i32, i32) {
    %c0_i32 = arith.constant 0 : i32
    %c0_i32_0 = arith.constant 0 : i32
    %c0_i32_1 = arith.constant 0 : i32
    return %c0_i32, %c0_i32_0 : i32, i32
  }
}

</mosaic_0001>

<bundles_post_ra>
// kernel: tpu_custom_call.1
= control target key start
LH: loop header
LB: loop body
LE: loop exit
PB: predicated region body
PF: predicated region fallthrough
CT: control target
= control target key end

     0   :  { %s5791_s0 = inlined_call_operand.hbm [shape: bf16[128,128], index: 0, kind: input, shape index: {}]   ;;  %s5792_s1 = inlined_call_operand.vmem [shape: f32[16,128], index: 1, kind: input, shape index: {}]   ;;  %s5793_s2 = inlined_call_operand.vmem [shape: f32[128,4], index: 2, kind: input, shape index: {}]   ;;  %s5794_s3 = inlined_call_operand.hbm [shape: f32[4,128], index: 3, kind: input, shape index: {}]   ;;  %s5795_s4 = inlined_call_operand.vmem [shape: bf16[2,128,128], index: 4, kind: input, shape index: {}]   ;;  %s5796_s5 = inlined_call_operand.hbm [shape: bf16[2,128,256], index: 5, kind: input, shape index: {}]   ;;  %s5797_s6 = inlined_call_operand.hbm [shape: bf16[2,128,128], index: 6, kind: input, shape index: {}]   ;;  %s5798_s7 = inlined_call_operand.hbm [shape: bf16[2,128,512], index: 7, kind: input, shape index: {}]   ;;  %s5799_s8 = inlined_call_operand.hbm [shape: bf16[2,512,128], index: 8, kind: input, shape index: {}]   ;;  %s5800_s9 = inlined_call_operand.vmem [shape: f32[2,128], index: 9, kind: input, shape index: {}]   ;;  %s5801_s10 = inlined_call_operand.vmem [shape: f32[2,256], index: 10, kind: input, shape index: {}]   ;;  %s5802_s11 = inlined_call_operand.vmem [shape: f32[2,128], index: 11, kind: input, shape index: {}]   ;;  %s5803_s12 = inlined_call_operand.vmem [shape: f32[2,1,512], index: 12, kind: input, shape index: {}]   ;;  %s5804_s13 = inlined_call_operand.vmem [shape: f32[2,128], index: 13, kind: input, shape index: {}]   ;;  %s5805_s14 = inlined_call_operand.vmem [shape: f32[2,128], index: 14, kind: input, shape index: {}]   ;;  %s5806_s15 = inlined_call_operand.vmem [shape: f32[2,128], index: 15, kind: input, shape index: {}]   ;;  %s5807_s16 = inlined_call_operand.vmem [shape: f32[2,128], index: 16, kind: input, shape index: {}]   ;;  %s5808_s17 = inlined_call_operand.vmem [shape: f32[2,128], index: 17, kind: input, shape index: {}]   ;;  %s5809_s18 = inlined_call_operand.hbm [shape: f32[128,128], index: 18, kind: input, shape index: {}]   ;;  %s5810_s19 = inlined_call_operand.hbm [shape: f32[16,128], index: 19, kind: output, shape index: {}]  }
   0x1   :  { %5847 = sst [smem:[#allocation29_spill]] %s5791_s0 }
   0x2   :  { %5848 = sst [smem:[#allocation30_spill]] %s5792_s1 }
   0x3   :  { %5849 = sst [smem:[#allocation31_spill]] %s5793_s2 }
   0x4   :  { %5850 = sst [smem:[#allocation32_spill]] %s5794_s3 }
   0x5   :  { %5851 = sst [smem:[#allocation33_spill]] %s5795_s4 }
   0x6   :  { %5852 = sst [smem:[#allocation34_spill]] %s5796_s5 }
   0x7   :  { %5853 = sst [smem:[#allocation35_spill]] %s5797_s6 }
   0x8   :  { %5854 = sst [smem:[#allocation36_spill]] %s5798_s7 }
   0x9   :  { %5855 = sst [smem:[#allocation37_spill]] %s5800_s9 }
   0xa   :  { %5856 = sst [smem:[#allocation38_spill]] %s5801_s10 }
   0xb   :  { %5857 = sst [smem:[#allocation39_spill]] %s5802_s11 }
   0xc   :  { %5858 = sst [smem:[#allocation40_spill]] %s5803_s12 }
   0xd   :  { %5859 = sst [smem:[#allocation41_spill]] %s5804_s13 }
   0xe   :  { %5860 = sst [smem:[#allocation42_spill]] %s5805_s14 }
   0xf   :  { %5861 = sst [smem:[#allocation43_spill]] %s5806_s15 }
  0x10   :  { %5862 = sst [smem:[#allocation44_spill]] %s5807_s16 }
  0x11   :  { %5863 = sst [smem:[#allocation45_spill]] %s5808_s17 }
  0x12   :  { %5864 = sst [smem:[#allocation46_spill]] %s5810_s19 }
  0x13   :  { %24 = vsyncpa [#allocation6], 0 }
  0x14   :  { %25 = vsyncpa [#allocation9], 0 }
  0x15   :  { %26 = vsyncpa [#allocation7], 0  ;;  %s4801_s0 = smov 0   ;;  %s4803_s30 = smov 0  }
  0x16   :  { %s4805_s20 = smov 0   ;;  %s4807_s21 = smov 0  }
  0x17   :  { %s4809_s1 = smov 0   ;;  %s4811_s22 = smov 0  }
  0x18 LB: > { %5865 = sst [smem:[#allocation21_spill]] %s4663_s30  ;;  %s4830_s2 = sadd.s32 4294967295, %s4679_s22   ;;  %s4679_s22 = sphi %s4811_s22, %s32_s22   ;;  %s4675_s1 = sphi %s4809_s1, %s5931_s1   ;;  %s4671_s21 = sphi %s4807_s21, %s5930_s21   ;;  %s4667_s20 = sphi %s4805_s20, %s5928_s20   ;;  %s4663_s30 = sphi %s4803_s30, %s5927_s30   ;;  %s4659_s0 = sphi %s4801_s0, %s5926_s0  }
  0x19   : > { %5866 = sst [smem:[#allocation22_spill]] %s4667_s20  ;;  %p168_p0 = scmp.ne.s32.totalorder %s4667_s20, %s4663_s30 }
  0x1a   : > { %5867 = sst [smem:[#allocation23_spill]] %s4671_s21  ;;  %p169_p1 = scmp.eq.s32.totalorder %s4679_s22, 0 }
  0x1b   : > { %5868 = sst [smem:[#allocation24_spill]] %s4679_s22  ;;  %p174_p2 = scmp.ne.s32.totalorder %s4663_s30, %s4659_s0 }
  0x1c   : > { %p5816_p3 = scmp.eq.s32.totalorder %s4830_s2, 0  ;;  %p170_p4 = por %p169_p1, %p168_p0 }
  0x1d   : > { %p3523_p5 = scmp.ge.s32.totalorder %s4679_s22, 1  ;;  %p503_p7 = scmp.lt.s32.totalorder %s4679_s22, 3 }
  0x1e   : > { %p4841_p6 = por %p5816_p3, %p174_p2  ;;  %s4681_s3 = smov [#allocation5]  }
  0x1f   : > { %p4846_p8 = pnand %p3523_p5, %p503_p7  ;;  %s515_s26 = sshll.u32 %s4681_s3, 4  ;;  %s516_s26 = int_to_ptr.vmem [resolvable:$true] %s515_s26 }
  0x20   : > { %s5869_s24 = scalar_select %p4841_p6, 1, 0 }
  0x21   : > { %s5871_s25 = scalar_select %p4846_p8, 1, 0 }
  0x22   : > { %5870 = sst [smem:[#allocation25_spill]] %s5869_s24  ;;  %p4069_p9 = pneg %p4846_p8 }
  0x23   : > { %p4095_p10 = scmp.lt.s32.totalorder %s4679_s22, 2  ;;  %s44_s29 = sadd.s32 1, %s4675_s1 }
  0x24   : > { %p4855_p11 = pnand %p4069_p9, %p5816_p3  ;;  %s5874_s19 = sld [smem:[#allocation29_spill]] }
  0x25   : > { %p4859_p12 = pnand %p4095_p10, %p170_p4 }
  0x26   : > { %s5872_s27 = scalar_select %p4855_p11, 1, 0 }
  0x27   : > { %s5873_s28 = scalar_select %p4859_p12, 1, 0 }
  0x28   : > { %p4872_p0 = pneg %p4855_p11 }
  0x2a   : > { %s4383_s13 = scalar_lea.hbm %s5874_s19, 1024 }
  0x2b   : > { %p4384_p13 = scmp.ne.s32.totalorder %s5874_s19, %s4383_s13  ;;  %p4390_p4 = scmp.lt.u32.totalorder %s4383_s13, %s5874_s19 }
  0x2c   : > { %s5875_s16 = scalar_select %p4872_p0, 1, 0 }
  0x2d   : > { %p4386_p1 = pnand %p4872_p0, %p4384_p13 }
  0x2f   : > { %p4387_p2 = pneg %p4386_p1 }
  0x31   : > { %p4392_p5 = pnand %p4390_p4, %p4387_p2 }
  0x33   : > { %4395 = shalt.err (!%p4392_p5)
}
  0x34   : > { %s4396_s23 = scalar_lea.vmem %s516_s26, 1024  ;;  %p4404_p3 = scmp.lt.s32.totalorder %s516_s26, %s516_s26 }
  0x35   : > { %p4397_p7 = scmp.ne.s32.totalorder %s516_s26, %s4396_s23  ;;  %p4405_p6 = scmp.lt.s32.totalorder %s4396_s23, %s4396_s23 }
  0x37   : > { %p4399_p9 = pnand %p4397_p7, %p4872_p0  ;;  %p4406_p8 = por %p4405_p6, %p4404_p3 }
  0x39   : > { %p4400_p10 = pneg %p4399_p9 }
  0x3b   : > { %p4407_p12 = pnand %p4406_p8, %p4400_p10 }
  0x3d   : > { %4410 = shalt.err (!%p4407_p12)
}
  0x3e   : > { %s5820_s17 = smov 64   ;;  %s5822_s9 = smov 4  }
  0x3f   : > { %4072 = dma.hbm_to_vmem [thread:$0]  (!%p4855_p11), %s5874_s19, 1024, %s516_s26, [#allocation6], %s5820_s17, %s5820_s17, %s5822_s9  }
  0x40   : > { %p46_p3 = scmp.ge.s32.totalorder %s44_s29, 2  ;;  %s591_s0 = sand.u32 1, %s4679_s22  }
  0x41   : > { %s4895_s3 = sand.u32 1, %s4667_s20   ;;  %s3687_s14 = sshll.u32 %s4675_s1, 11 }
  0x42   : > { %s5933_s29 = smov (%p46_p3, %s44_s29), 0  ;;  %s3528_s15 = sshll.u32 %s4895_s3, 7 }
  0x43   : > { %5876 = sst [smem:[#allocation26_spill]] %s5933_s29  ;;  %s158_s23 = ssub.s32 %s4675_s1, %s5933_s29 }
  0x44   : > { %p159_p6 = scmp.eq.s32.totalorder %s158_s23, 0  ;;  %s5877_s10 = sadd.s32 1, %s4667_s20 }
  0x45   : > { %s5879_s5 = sld [smem:[#allocation34_spill]]  ;;  %s595_s13 = scalar_lea.vmem [#allocation10], %s3528_s15 }
  0x46   : > { %s4904_s12 = scalar_select %p159_p6, %s4667_s20, %s5877_s10  }
  0x47   : > { %s602_s17 = sshll.u32 %s595_s13, 4  ;;  %s3531_s9 = sshll.u32 %s4895_s3, 6  ;;  %s4911_s17 = int_to_ptr.vmem [resolvable:$true] %s602_s17 }
  0x48   : > { %5878 = sst [smem:[#allocation27_spill]] %s4904_s12  ;;  %s4914_s23 = scalar_lea.sflag [#allocation6], %s591_s0 }
  0x49   : > { %p5880_p12 = scmp.ne.s32.totalorder %s5873_s28, 0 }
  0x4b   : > { %s4909_s26 = scalar_lea.hbm %s5879_s5, %s3687_s14  ;;  %p4920_p13 = pneg %p5880_p12 }
  0x4c   : > { %s4411_s19 = scalar_lea.hbm %s4909_s26, 2048  ;;  %s4416_s15 = scalar_lea.hbm %s5879_s5, 4096 }
  0x4d   : > { %p4412_p8 = scmp.ne.s32.totalorder %s4909_s26, %s4411_s19  ;;  %p4417_p4 = scmp.lt.u32.totalorder %s4909_s26, %s5879_s5 }
  0x4e   : > { %p4418_p5 = scmp.lt.u32.totalorder %s4416_s15, %s4411_s19  ;;  %p4420_p9 = scmp.lt.u32.totalorder %s4411_s19, %s4909_s26 }
  0x4f   : > { %p4414_p1 = pnand %p4920_p13, %p4412_p8 }
  0x50   : > { %p4419_p7 = por %p4418_p5, %p4417_p4 }
  0x51   : > { %p4415_p2 = pneg %p4414_p1 }
  0x52   : > { %p4421_p10 = por %p4420_p9, %p4419_p7 }
  0x54   : > { %p4422_p3 = pnand %p4421_p10, %p4415_p2 }
  0x56   : > { %4425 = shalt.err (!%p4422_p3)
}
  0x57   : > { %s4426_s0 = scalar_lea.vmem %s4911_s17, 2048  ;;  %s4684_s4 = smov [#allocation10]  }
  0x58   : > { %p4427_p6 = scmp.ne.s32.totalorder %s4911_s17, %s4426_s0  ;;  %s4431_s14 = sshll.u32 %s4684_s4, 4  ;;  %s4432_s14 = int_to_ptr.vmem [resolvable:$false] %s4431_s14 }
  0x59   : > { %s4433_s11 = scalar_lea.vmem %s4432_s14, 4096  ;;  %p4434_p11 = scmp.lt.s32.totalorder %s4911_s17, %s4432_s14 }
  0x5a   : > { %p4429_p8 = pnand %p4427_p6, %p4920_p13  ;;  %p4435_p0 = scmp.lt.s32.totalorder %s4433_s11, %s4426_s0 }
  0x5c   : > { %p4430_p1 = pneg %p4429_p8  ;;  %p4436_p4 = por %p4435_p0, %p4434_p11 }
  0x5e   : > { %p4437_p5 = pnand %p4436_p4, %p4430_p1 }
  0x60   : > { %4440 = shalt.err (!%p4437_p5)
}
  0x61   : > { %s5830_s19 = smov 128   ;;  %s5831_s15 = smov 8  }
  0x62   : > { %4082 = dma.hbm_to_vmem [thread:$0]  (!%p5880_p12), %s4909_s26, 2048, %s4911_s17, %s4914_s23, %s5830_s19, %s5830_s19, %s5831_s15  }
  0x63   : > { %s3688_s13 = sshll.u32 %s4675_s1, 10  ;;  %s5882_s6 = sld [smem:[#allocation35_spill]] }
  0x64   : > { %s616_s11 = scalar_lea.vmem [#allocation11], %s3531_s9 }
  0x65   : > { %s623_s5 = sshll.u32 %s616_s11, 4  ;;  %s4955_s5 = int_to_ptr.vmem [resolvable:$true] %s623_s5 }
  0x69   : > { %s4951_s14 = scalar_lea.hbm %s5882_s6, %s3688_s13  ;;  %s4446_s4 = scalar_lea.hbm %s5882_s6, 2048 }
  0x6a   : > { %s4441_s29 = scalar_lea.hbm %s4951_s14, 1024  ;;  %p4447_p7 = scmp.lt.u32.totalorder %s4951_s14, %s5882_s6 }
  0x6b   : > { %p4442_p11 = scmp.ne.s32.totalorder %s4951_s14, %s4441_s29  ;;  %p4448_p9 = scmp.lt.u32.totalorder %s4446_s4, %s4441_s29 }
  0x6c   : > { %p4450_p3 = scmp.lt.u32.totalorder %s4441_s29, %s4951_s14 }
  0x6d   : > { %p4444_p0 = pnand %p4442_p11, %p4920_p13  ;;  %p4449_p10 = por %p4448_p9, %p4447_p7 }
  0x6f   : > { %p4445_p2 = pneg %p4444_p0  ;;  %p4451_p6 = por %p4450_p3, %p4449_p10 }
  0x71   : > { %p4452_p8 = pnand %p4451_p6, %p4445_p2 }
  0x73   : > { %4455 = shalt.err (!%p4452_p8)
}
  0x74   : > { %s4456_s9 = scalar_lea.vmem %s4955_s5, 1024  ;;  %s4687_s11 = smov [#allocation11]  }
  0x75   : > { %p4457_p1 = scmp.ne.s32.totalorder %s4955_s5, %s4456_s9  ;;  %s4461_s17 = sshll.u32 %s4687_s11, 4  ;;  %s4462_s17 = int_to_ptr.vmem [resolvable:$false] %s4461_s17 }
  0x76   : > { %s4463_s26 = scalar_lea.vmem %s4462_s17, 2048  ;;  %p4464_p11 = scmp.lt.s32.totalorder %s4955_s5, %s4462_s17 }
  0x77   : > { %p4459_p4 = pnand %p4457_p1, %p4920_p13  ;;  %p4465_p0 = scmp.lt.s32.totalorder %s4463_s26, %s4456_s9 }
  0x79   : > { %p4460_p5 = pneg %p4459_p4  ;;  %p4466_p7 = por %p4465_p0, %p4464_p11 }
  0x7b   : > { %p4467_p9 = pnand %p4466_p7, %p4460_p5 }
  0x7d   : > { %4470 = shalt.err (!%p4467_p9)
}
  0x7e   : > { %s5883_s29 = smov 4   ;;  %s5884_s4 = smov 64  }
  0x7f   : > { %4085 = dma.hbm_to_vmem [thread:$0]  (!%p5880_p12), %s4951_s14, 1024, %s4955_s5, %s4914_s23, %s5884_s4, %s5884_s4, %s5883_s29  }
  0x80   : > { %s4688_s13 = smov [#allocation8]   ;;  %s3534_s11 = sshll.u32 %s4895_s3, 8 }
  0x81   : > { %s535_s0 = sshll.u32 %s4688_s13, 4  ;;  %s5885_s26 = sld [smem:[#allocation32_spill]]  ;;  %s536_s0 = int_to_ptr.vmem [resolvable:$true] %s535_s0 }
  0x82   : > { %p5886_p10 = scmp.ne.s32.totalorder %s5875_s16, 0 }
  0x87   : > { %s4471_s19 = scalar_lea.hbm %s5885_s26, 64 }
  0x88   : > { %p4472_p2 = scmp.ne.s32.totalorder %s5885_s26, %s4471_s19  ;;  %p4478_p8 = scmp.lt.u32.totalorder %s4471_s19, %s5885_s26 }
  0x8a   : > { %p4474_p3 = pnand %p4472_p2, %p5886_p10 }
  0x8c   : > { %p4475_p6 = pneg %p4474_p3 }
  0x8e   : > { %p4480_p1 = pnand %p4478_p8, %p4475_p6 }
  0x90   : > { %4483 = shalt.err (!%p4480_p1)
}
  0x91   : > { %s4484_s5 = scalar_lea.vmem %s536_s0, 64  ;;  %p4492_p0 = scmp.lt.s32.totalorder %s536_s0, %s536_s0 }
  0x92   : > { %p4485_p4 = scmp.ne.s32.totalorder %s536_s0, %s4484_s5  ;;  %p4493_p7 = scmp.lt.s32.totalorder %s4484_s5, %s4484_s5 }
  0x94   : > { %p4487_p5 = pnand %p4485_p4, %p5886_p10  ;;  %p4494_p9 = por %p4493_p7, %p4492_p0 }
  0x96   : > { %p4488_p11 = pneg %p4487_p5 }
  0x98   : > { %p4495_p12 = pnand %p4494_p9, %p4488_p11 }
  0x9a   : > { %4498 = shalt.err (!%p4495_p12)
}
  0x9b   : > { %p5887_p2 = scmp.ne.s32.totalorder %s5872_s27, 0  ;;  %s3689_s12 = sshll.u32 %s4675_s1, 12 }
  0x9c   : > { %s637_s20 = scalar_lea.vmem [#allocation12], %s3534_s11  ;;  %s5888_s7 = sld [smem:[#allocation36_spill]] }
  0x9d   : > { %4075 = dma.hbm_to_vmem [thread:$0]  (!%p5887_p2), %s5885_s26, 64, %s536_s0, [#allocation9]  }
  0x9e   : > { %s646_s19 = sshll.u32 %s637_s20, 4  ;;  %s5011_s19 = int_to_ptr.vmem [resolvable:$true] %s646_s19 }
  0xa2   : > { %s5009_s17 = scalar_lea.hbm %s5888_s7, %s3689_s12  ;;  %s4504_s6 = scalar_lea.hbm %s5888_s7, 8192 }
  0xa3   : > { %s4499_s9 = scalar_lea.hbm %s5009_s17, 4096  ;;  %p4505_p8 = scmp.lt.u32.totalorder %s5009_s17, %s5888_s7 }
  0xa4   : > { %p4500_p12 = scmp.ne.s32.totalorder %s5009_s17, %s4499_s9  ;;  %p4506_p1 = scmp.lt.u32.totalorder %s4504_s6, %s4499_s9 }
  0xa5   : > { %p4508_p5 = scmp.lt.u32.totalorder %s4499_s9, %s5009_s17 }
  0xa6   : > { %p4502_p3 = pnand %p4500_p12, %p4920_p13  ;;  %p4507_p4 = por %p4506_p1, %p4505_p8 }
  0xa8   : > { %p4503_p6 = pneg %p4502_p3  ;;  %p4509_p11 = por %p4508_p5, %p4507_p4 }
  0xaa   : > { %p4510_p0 = pnand %p4509_p11, %p4503_p6 }
  0xac   : > { %4513 = shalt.err (!%p4510_p0)
}
  0xad   : > { %s4514_s14 = scalar_lea.vmem %s5011_s19, 4096  ;;  %s4689_s13 = smov [#allocation12]  }
  0xae   : > { %p4515_p7 = scmp.ne.s32.totalorder %s5011_s19, %s4514_s14  ;;  %s4519_s0 = sshll.u32 %s4689_s13, 4  ;;  %s4520_s0 = int_to_ptr.vmem [resolvable:$false] %s4519_s0 }
  0xaf   : > { %s4521_s5 = scalar_lea.vmem %s4520_s0, 8192  ;;  %p4522_p3 = scmp.lt.s32.totalorder %s5011_s19, %s4520_s0 }
  0xb0   : > { %p4517_p9 = pnand %p4515_p7, %p4920_p13  ;;  %p4523_p2 = scmp.lt.s32.totalorder %s4521_s5, %s4514_s14 }
  0xb2   : > { %p4518_p12 = pneg %p4517_p9  ;;  %p4524_p8 = por %p4523_p2, %p4522_p3 }
  0xb4   : > { %p4525_p1 = pnand %p4524_p8, %p4518_p12 }
  0xb6   : > { %4528 = shalt.err (!%p4525_p1)
}
  0xb7   : > { %s4690_s9 = smov 256   ;;  %s4691_s6 = smov 16  }
  0xb8   : > { %p5889_p6 = scmp.ne.s32.totalorder %s5873_s28, 0  ;;  %s4692_s15 = smov [#allocation14]  }
  0xb9   : > { %s569_s20 = sshll.u32 %s4692_s15, 4  ;;  %s5040_s14 = scalar_lea.hbm %s5799_s8, %s3689_s12  ;;  %s570_s20 = int_to_ptr.vmem [resolvable:$true] %s569_s20 }
  0xba   : > { %4088 = dma.hbm_to_vmem [thread:$0]  (!%p5889_p6), %s5009_s17, 4096, %s5011_s19, %s4914_s23, %s4690_s9, %s4690_s9, %s4691_s6  }
  0xbb   : > { %s660_s5 = scalar_lea.vmem [#allocation13], %s3534_s11  ;;  %s4529_s21 = scalar_lea.hbm %s5809_s18, 2048 }
  0xbc   : > { %s669_s7 = sshll.u32 %s660_s5, 4  ;;  %p4530_p2 = scmp.ne.s32.totalorder %s5809_s18, %s4529_s21  ;;  %s5065_s7 = int_to_ptr.vmem [resolvable:$true] %s669_s7 }
  0xbd   : > { %p4536_p11 = scmp.lt.u32.totalorder %s4529_s21, %s5809_s18 }
  0xbe   : > { %p4532_p4 = pnand %p4530_p2, %p5886_p10 }
  0xc0   : > { %p4533_p5 = pneg %p4532_p4 }
  0xc2   : > { %p4538_p0 = pnand %p4536_p11, %p4533_p5 }
  0xc4   : > { %4541 = shalt.err (!%p4538_p0)
}
  0xc5   : > { %s4542_s3 = scalar_lea.vmem %s570_s20, 2048  ;;  %p4550_p3 = scmp.lt.s32.totalorder %s570_s20, %s570_s20 }
  0xc6   : > { %p4543_p7 = scmp.ne.s32.totalorder %s570_s20, %s4542_s3  ;;  %p4551_p8 = scmp.lt.s32.totalorder %s4542_s3, %s4542_s3 }
  0xc8   : > { %p4545_p9 = pnand %p4543_p7, %p5886_p10  ;;  %p4552_p1 = por %p4551_p8, %p4550_p3 }
  0xca   : > { %p4546_p12 = pneg %p4545_p9 }
  0xcc   : > { %p4553_p6 = pnand %p4552_p1, %p4546_p12 }
  0xce   : > { %4556 = shalt.err (!%p4553_p6)
}
  0xcf   : > { %p5890_p2 = scmp.ne.s32.totalorder %s5872_s27, 0  ;;  %s5891_s30 = smov 8  }
  0xd0   : > { %s5892_s22 = smov 128   ;;  %s4557_s16 = scalar_lea.hbm %s5040_s14, 4096 }
  0xd1   : > { %4078 = dma.hbm_to_vmem [thread:$0]  (!%p5890_p2), %s5809_s18, 2048, %s570_s20, [#allocation9], %s5892_s22, %s5892_s22, %s5891_s30  }
  0xd2   : > { %p4558_p10 = scmp.ne.s32.totalorder %s5040_s14, %s4557_s16  ;;  %s4562_s26 = scalar_lea.hbm %s5799_s8, 8192 }
  0xd3   : > { %p4563_p5 = scmp.lt.u32.totalorder %s5040_s14, %s5799_s8  ;;  %p4564_p11 = scmp.lt.u32.totalorder %s4562_s26, %s4557_s16 }
  0xd4   : > { %p4560_p6 = pnand %p4558_p10, %p4920_p13  ;;  %p4566_p7 = scmp.lt.u32.totalorder %s4557_s16, %s5040_s14 }
  0xd5   : > { %p4565_p0 = por %p4564_p11, %p4563_p5 }
  0xd6   : > { %p4561_p4 = pneg %p4560_p6 }
  0xd7   : > { %p4567_p9 = por %p4566_p7, %p4565_p0 }
  0xd9   : > { %p4568_p12 = pnand %p4567_p9, %p4561_p4 }
  0xdb   : > { %4571 = shalt.err (!%p4568_p12)
}
  0xdc   : > { %s4572_s6 = scalar_lea.vmem %s5065_s7, 4096  ;;  %s4693_s15 = smov [#allocation13]  }
  0xdd   : > { %p4573_p3 = scmp.ne.s32.totalorder %s5065_s7, %s4572_s6  ;;  %s4577_s20 = sshll.u32 %s4693_s15, 4  ;;  %s4578_s20 = int_to_ptr.vmem [resolvable:$false] %s4577_s20 }
  0xde   : > { %s4579_s13 = scalar_lea.vmem %s4578_s20, 8192  ;;  %p4580_p2 = scmp.lt.s32.totalorder %s5065_s7, %s4578_s20 }
  0xdf   : > { %p4575_p8 = pnand %p4573_p3, %p4920_p13  ;;  %p4581_p10 = scmp.lt.s32.totalorder %s4579_s13, %s4572_s6 }
  0xe1   : > { %p4576_p1 = pneg %p4575_p8  ;;  %p4582_p6 = por %p4581_p10, %p4580_p2 }
  0xe3   : > { %p4583_p5 = pnand %p4582_p6, %p4576_p1 }
  0xe5   : > { %4586 = shalt.err (!%p4583_p5)
}
  0xe6   : > { %p5893_p4 = scmp.ne.s32.totalorder %s5873_s28, 0  ;;  %p5894_p13 = scmp.ne.s32.totalorder %s5871_s25, 0 }
  0xe8   : > { %4091 = dma.hbm_to_vmem [thread:$0]  (!%p5893_p4), %s5040_s14, 4096, %s5065_s7, %s4914_s23, %s5884_s4, %s5884_s4, %s5883_s29  }
  0xe9   : > { %688 = sbr.rel (%p5894_p13) target bundleno = 2658 (0xa62), region = 96 }
  0xf0   : > { %p5895_p11 = scmp.eq.s32.totalorder %s4830_s2, 0 }
  0xf2   : > { %4638 = dma.done.wait (%p5895_p11), [#allocation6], 1024   ;;  %p5896_p0 = pmov %p5895_p11 }
  0xf4   : > { %4640 = vsyncadd (%p5896_p0), [#allocation6], 4294966272  ;;  %p5897_p7 = pmov %p5896_p0 }
  0xf5   : > { %p5898_p9 = pmov %p5896_p0 }
  0xf6   : > { %4642 = dma.done.wait (%p5897_p7), [#allocation9], 64  }
  0xf7   : > { %4644 = vsyncadd (%p5898_p9), [#allocation9], 4294967232  ;;  %s5899_s28 = sld [smem:[#allocation21_spill]]  ;;  %s5900_s10 = sld [smem:[#allocation25_spill]] }
  0xf8   : > { %s698_s0 = sand.u32 1, %s4830_s2  }
  0xf9   : > { %s699_s25 = scalar_lea.sflag [#allocation6], %s698_s0 }
  0xfd   : > { %s700_s7 = sand.u32 1, %s5899_s28   ;;  %p5901_p12 = scmp.ne.s32.totalorder %s5900_s10, 0 }
  0xfe   : > { %s3543_s23 = sshll.u32 %s700_s7, 7 }
  0xff   : > { %s5104_s29 = scalar_lea.vmem [#allocation10], %s3543_s23 }
 0x100   : > { %4646 = dma.done.wait (%p5901_p12), %s699_s25, 11264  }
 0x101   : > { %4648 = vsyncadd (%p5901_p12), %s699_s25, 4294956032  ;;  %s3544_s4 = sshll.u32 %s700_s7, 6  ;;  %s3545_s14 = sshll.u32 %s700_s7, 8 }
 0x102   : > { %s5110_s5 = scalar_lea.vmem [#allocation11], %s3544_s4  ;;  %s5112_s19 = scalar_lea.vmem [#allocation12], %s3545_s14 }
 0x103   : > { %s5114_s17 = scalar_lea.vmem [#allocation13], %s3545_s14  ;;  %p5902_p3 = pmov %p5896_p0 }
 0x104   : > { %p5903_p8 = pmov %p5896_p0 }
 0x105   : > { %4650 = dma.done.wait (%p5902_p3), [#allocation9], 2048  }
 0x106   : > { %4652 = vsyncadd (%p5903_p8), [#allocation9], 4294965248  ;;  %s5904_s3 = sld [smem:[#allocation23_spill]]  ;;  %s5905_s16 = sld [smem:[#allocation33_spill]] }
 0x107   : > { %s5906_s12 = sld [smem:[#allocation40_spill]] }
 0x10c   : > { %p807_p1 = scmp.lt.s32.totalorder %s5904_s3, 1  ;;  %p819_p2 = scmp.eq.s32.totalorder %s5904_s3, 0 }
 0x10d   : > { %s5907_s20 = sld [smem:[#allocation30_spill]] (%p819_p2) }
 0x10e   : > { %s5935_s3 = smov (!%p807_p1, %s5904_s3), 1  ;;  %824 = sbr.rel (!%p819_p2) target bundleno = 278 (0x116), region = 128 }
 0x10f   : > { %s3691_s30 = sshll.u32 %s5935_s3, 6  ;;  %s3550_s22 = sshll.u32 %s5935_s3, 2 }
 0x110   : > { %s5126_s27 = scalar_lea.vmem %s5905_s16, %s3691_s30  ;;  %s5131_s9 = scalar_lea.vmem %s5906_s12, %s3550_s22 }
 0x113   : > { %s5908_s13 = smov (%p819_p2), %s5907_s20  ;;  %v825_v0 = vld [vmem:[%s5907_s20] sm:$0xff] (%p819_p2) }
 0x114   : > { %v826_v1 = vld [vmem:[%s5908_s13 + $0x8] sm:$0xff] (%p819_p2)  ;;  %827 = vst [vmem:[#allocation2] sm:$0xff] (%p819_p2), %v825_v0 }
 0x115   : > { %828 = vst [vmem:[#allocation2 + $0x8] sm:$0xff] %v826_v1 }
 0x116 PF: > { %v4165_v4 = vld [vmem:[%s5104_s29 + $0x4] ss:$8 sps:$4 sm:$0xff]   ;;  %v4167_v5 = vld [vmem:[%s5104_s29] ss:$8 sps:$4 sm:$0xff]   ;;  %v4168_v6 = vld [vmem:[%s5104_s29 + $0x14] ss:$8 sps:$4 sm:$0xff]   ;;  %v1029_v49 = vlaneseq }
 0x117   : > { %1167 = vmatprep.subr.bf16.mxu1 %v4165_v4  ;;  %v4170_v7 = vld [vmem:[%s5104_s29 + $0x10] ss:$8 sps:$4 sm:$0xff]   ;;  %v4171_v8 = vld [vmem:[%s5104_s29 + $0x24] ss:$8 sps:$4 sm:$0xff]   ;;  %v4173_v9 = vld [vmem:[%s5104_s29 + $0x20] ss:$8 sps:$4 sm:$0xff]  }
 0x118   : > { %1168 = vmatpush1.bf16.msra.mxu1 %v4167_v5  ;;  %v4174_v10 = vld [vmem:[%s5104_s29 + $0x34] ss:$8 sps:$4 sm:$0xff]   ;;  %v5844_v11 = vmov 0   ;;  %v5842_v12 = vmov 0.0   ;;  %v4191_v13 = vld [vmem:[%s5126_s27] sm:$0xff]   ;;  %v4190_v24 = vld [vmem:[#allocation5 + $0x8] sm:$0xff]  }
 0x119   : > { %1169 = vmatprep.subr.bf16.mxu1 %v4168_v6  ;;  %1199 = vmatprep.mubr.bf16.mxu1 %v5844_v11  ;;  %v4176_v14 = vld [vmem:[%s5104_s29 + $0x30] ss:$8 sps:$4 sm:$0xff]   ;;  %v4177_v15 = vld [vmem:[%s5104_s29 + $0x44] ss:$8 sps:$4 sm:$0xff]   ;;  %v4179_v16 = vld [vmem:[%s5104_s29 + $0x40] ss:$8 sps:$4 sm:$0xff]  }
 0x11a   : > { %3824 = vmatprep.subr.bf16.mxu0 %v5842_v12  ;;  %v4180_v17 = vld [vmem:[%s5104_s29 + $0x54] ss:$8 sps:$4 sm:$0xff]   ;;  %v4182_v18 = vld [vmem:[%s5104_s29 + $0x50] ss:$8 sps:$4 sm:$0xff]   ;;  %v4183_v19 = vld [vmem:[%s5104_s29 + $0x64] ss:$8 sps:$4 sm:$0xff]  }
 0x11b   : > { %3825 = vmatpush3.bf16.msra.mxu0 %v4191_v13  ;;  %v4185_v20 = vld [vmem:[%s5104_s29 + $0x60] ss:$8 sps:$4 sm:$0xff]   ;;  %v4186_v21 = vld [vmem:[%s5104_s29 + $0x74] ss:$8 sps:$4 sm:$0xff]   ;;  %v4188_v22 = vld [vmem:[%s5104_s29 + $0x70] ss:$8 sps:$4 sm:$0xff]  }
 0x11c   : > { %v832_v2 = vld [vmem:[#allocation2] sm:$0xff]  ;;  %v833_v3 = vld [vmem:[#allocation2 + $0x8] sm:$0xff]  ;;  %1170 = vmatpush1.bf16.msra.mxu1 %v4170_v7  ;;  %3826 = vmatprep.subr.bf16.mxu0 %v5842_v12  ;;  %v4189_v23 = vld [vmem:[#allocation5] sm:$0xff]   ;;  %vm4696_vm0 = vmmov 0   ;;  %s5909_s0 = sld [smem:[#allocation23_spill]]  ;;  %s5910_s25 = sld [smem:[#allocation31_spill]] }
 0x11d   : > { %838 = vadd.xlane.f32.xlu0 %v832_v2  ;;  %1171 = vmatprep.subr.bf16.mxu1 %v4171_v8  ;;  %v4192_v33 = vld [vmem:[%s5126_s27 + $0x8] sm:$0xff]   ;;  %v4193_v34 = vld [vmem:[#allocation5 + $0x10] sm:$0xff]   ;;  %v4194_v35 = vld [vmem:[%s5126_s27 + $0x10] sm:$0xff]   ;;  %v5200_v50 = vshrl.u32 %v1029_v49, 7  ;;  %s5911_s16 = sld [smem:[#allocation38_spill]]  ;;  %s5912_s12 = sld [smem:[#allocation42_spill]] }
 0x11e   : > { %v4195_v36 = vld [vmem:[%s5126_s27 + $0x18] sm:$0xff]   ;;  %v4196_v37 = vld [vmem:[#allocation5 + $0x18] sm:$0xff]   ;;  %v4197_v38 = vld [vmem:[%s5126_s27 + $0x20] sm:$0xff]   ;;  %3840 = vmatprep.mubr.msk.bf16.mxu0 %vm4696_vm0, %v5842_v12  ;;  %s5913_s28 = sld [smem:[#allocation43_spill]]  ;;  %vm1991_vm1 = vcmask 1043456   ;;  %vm1637_vm2 = vcmask 31744  }
 0x11f   : > { %3827 = vmatpush3.bf16.msra.mxu0 %v4192_v33  ;;  %v4198_v39 = vld [vmem:[%s5126_s27 + $0x28] sm:$0xff]   ;;  %v4199_v40 = vld [vmem:[#allocation5 + $0x20] sm:$0xff]   ;;  %v4201_v42 = vld [vmem:[%s5126_s27 + $0x38] sm:$0xff]   ;;  %v5841_v51 = vsub.s32 1, %v5200_v50  ;;  %vm2322_vm3 = vcmask 1041409   ;;  %vm2324_vm4 = vcmask 1042434  }
 0x120   : > { %1172 = vmatpush1.bf16.msra.mxu1 %v4173_v9  ;;  %3828 = vmatprep.subr.bf16.mxu0 %v5842_v12  ;;  %v4200_v41 = vld [vmem:[%s5126_s27 + $0x30] sm:$0xff]   ;;  %v4202_v43 = vld [vmem:[#allocation5 + $0x28] sm:$0xff]   ;;  %v4203_v46 = vld [vmem:[#allocation5 + $0x30] sm:$0xff]   ;;  %vm2326_vm5 = vcmask 1043459   ;;  %vm2328_vm6 = vcmask 1044484   ;;  %vm2330_vm7 = vcmask 1045509  }
 0x121   : > { %840 = vadd.xlane.f32.xlu0 %v833_v3  ;;  %1173 = vmatprep.subr.bf16.mxu1 %v4174_v10  ;;  %v4204_v48 = vld [vmem:[#allocation5 + $0x38] sm:$0xff]   ;;  %vm2332_vm8 = vcmask 1046534   ;;  %vm2334_vm9 = vcmask 1047559   ;;  %s5918_s26 = sld [smem:[#allocation39_spill]]  ;;  %s5919_s20 = sld [smem:[#allocation44_spill]] }
 0x122   : > { %v1476_v44 = vld [vmem:[%s5910_s25] sm:$0xff]  ;;  %v1477_v45 = vld [vmem:[%s5910_s25 + $0x8] sm:$0xff]  ;;  %s1019_s14 = sshra.s32 %s5909_s0, 1  ;;  %s1022_s3 = sand.u32 1, %s5909_s0 }
 0x123   : > { %3829 = vmatpush3.bf16.msra.mxu0 %v4194_v35  ;;  %v3981_v47 = vpack.c.bf16 %v1477_v45, %v1476_v44  ;;  %s3693_s30 = sshll.u32 %s1019_s14, 2  ;;  %s834_s6 = scalar_lea.vmem %s5912_s12, %s5909_s0  ;;  %v1486_v44 = vld [vmem:[%s5910_s25 + $0x50] sm:$0xff]  ;;  %v1487_v45 = vld [vmem:[%s5910_s25 + $0x58] sm:$0xff] }
 0x124   : > { %1174 = vmatpush1.bf16.msra.mxu1 %v4176_v14  ;;  %3830 = vmatprep.subr.bf16.mxu0 %v5842_v12  ;;  %s1025_s22 = sadd.s32 %s3693_s30, %s1022_s3  ;;  %v3552_v10 = vld [vmem:[%s834_s6] ss:$0 sm:$0xff]  ;;  %s836_s10 = scalar_lea.vmem %s5913_s28, %s5909_s0 }
 0x125   : > { %1175 = vmatprep.subr.bf16.mxu1 %v4177_v15  ;;  %s1026_s27 = scalar_lea.vmem %s5911_s16, %s1025_s22  ;;  %s5915_s16 = sld [smem:[#allocation37_spill]] }
 0x126   : > { %v5206_v52 = vld [vmem:[%s1026_s27] ss:$2 sm:$0x3]  ;;  %s5920_s7 = sld [smem:[#allocation45_spill]]  ;;  %p3224_p10 = scmp.eq.s32.totalorder %s5909_s0, 1 }
 0x127   : > { %3831 = vmatpush3.bf16.msra.mxu0 %v4195_v36  ;;  %v5211_v53 = vrot.slane %v5206_v52, %v5841_v51  ;;  %s2284_s12 = scalar_lea.vmem %s5918_s26, %s5909_s0  ;;  %s2438_s28 = scalar_lea.vmem %s5919_s20, %s5909_s0 }
 0x128   : > { %1176 = vmatpush1.bf16.msra.mxu1 %v4179_v16  ;;  %3832 = vmatprep.subr.bf16.mxu0 %v5842_v12  ;;  %v3553_v16 = vld [vmem:[%s836_s10] ss:$0 sm:$0xff]  ;;  %s5923_s29 = sld [smem:[#allocation41_spill]] }
 0x129   : > { %1177 = vmatprep.subr.bf16.mxu1 %v4180_v17 }
 0x12b   : > { %3833 = vmatpush3.bf16.msra.mxu0 %v4197_v38  ;;  %s890_s27 = scalar_lea.vmem %s5915_s16, %s5909_s0 }
 0x12c   : > { %1178 = vmatpush1.bf16.msra.mxu1 %v4182_v18  ;;  %3834 = vmatprep.subr.bf16.mxu0 %v5842_v12  ;;  %v1478_v18 = vld [vmem:[%s5910_s25 + $0x10] sm:$0xff]  ;;  %s2440_s23 = scalar_lea.vmem %s5920_s7, %s5909_s0 }
 0x12d   : > { %1179 = vmatprep.subr.bf16.mxu1 %v4183_v19  ;;  %v1479_v19 = vld [vmem:[%s5910_s25 + $0x18] sm:$0xff] }
 0x12e   : > { %s3214_s4 = scalar_lea.vmem %s5923_s29, %s5909_s0 }
 0x12f   : > { %3835 = vmatpush3.bf16.msra.mxu0 %v4198_v39 }
 0x130   : > { %1180 = vmatpush1.bf16.msra.mxu1 %v4185_v20  ;;  %3836 = vmatprep.subr.bf16.mxu0 %v5842_v12 }
 0x131   : > { %1181 = vmatprep.subr.bf16.mxu1 %v4186_v21 }
 0x133   : > { %3837 = vmatpush3.bf16.msra.mxu0 %v4200_v41 }
 0x134   : > { %1182 = vmatpush1.bf16.msra.mxu1 %v4188_v22  ;;  %3838 = vmatprep.subr.bf16.mxu0 %v5842_v12 }
 0x135   : > { %3926 = vmatprep.subr.bf16.mxu1 %v5842_v12 }
 0x137   : > { %1200 = vmatmul.mubr.bf16.vlgmr.msra.gmra.mrb[0].mxu1 %v4189_v23  ;;  %3839 = vmatpush3.bf16.msra.mxu0 %v4201_v42  ;;  %v3985_v23 = vpack.c.bf16 %v1479_v19, %v1478_v18 }
 0x138   : > { %1209 = vmatprep.mubr.bf16.mxu1 %v5844_v11  ;;  %3982 = vmatprep.subr.bf16.mxu0 %v3981_v47 }
 0x13f   : > { %1210 = vmatmul.mubr.bf16.gmra.mrb[4].mxu1 %v4190_v24  ;;  %v1480_v24 = vld [vmem:[%s5910_s25 + $0x20] sm:$0xff] }
 0x140   : > { %1219 = vmatprep.mubr.bf16.mxu1 %v5844_v11 }
 0x147   : > { %1220 = vmatmul.mubr.bf16.gmra.mrb[8].mxu1 %v4193_v34 }
 0x148   : > { %1229 = vmatprep.mubr.bf16.mxu1 %v5844_v11 }
 0x14f   : > { %1230 = vmatmul.mubr.bf16.gmra.mrb[12].mxu1 %v4196_v37 }
 0x150   : > { %1239 = vmatprep.mubr.bf16.mxu1 %v5844_v11 }
 0x157   : > { %1240 = vmatmul.mubr.bf16.gmra.mrb[16].mxu1 %v4199_v40 }
 0x158   : > { %1249 = vmatprep.mubr.bf16.mxu1 %v5844_v11 }
 0x15f   : > { %1250 = vmatmul.mubr.bf16.gmra.mrb[20].mxu1 %v4202_v43 }
 0x160   : > { %1259 = vmatprep.mubr.bf16.mxu1 %v5844_v11 }
 0x167   : > { %1260 = vmatmul.mubr.bf16.gmra.mrb[24].mxu1 %v4203_v46  ;;  %v4001_v46 = vpack.c.bf16 %v1487_v45, %v1486_v44 }
 0x168   : > { %1269 = vmatprep.mubr.bf16.mxu1 %v5844_v11 }
 0x16f   : > { %1270 = vmatmul.mubr.bf16.gmra.mrb[28].mxu1 %v4204_v48 }
 0x170   : > { %3942 = vmatprep.mubr.msk.bf16.mxu1 %vm4696_vm0, %v5842_v12 }
 0x1aa   : > { %v839_v25 = vpop.xlane.xlu0 %838 }
 0x1ab   : > { %v843_v26 = vmul.f32 0.0078125, %v839_v25  ;;  %v1481_v25 = vld [vmem:[%s5910_s25 + $0x28] sm:$0xff] }
 0x1ad   : > { %v5162_v27 = vsub.f32 %v832_v2, %v843_v26  ;;  %v3989_v26 = vpack.c.bf16 %v1481_v25, %v1480_v24 }
 0x1ae   : > { %v841_v28 = vpop.xlane.xlu0 %840 }
 0x1af   : > { %v844_v29 = vmul.f32 0.0078125, %v841_v28  ;;  %v847_v30 = vmul.f32 %v5162_v27, %v5162_v27  ;;  %v1483_v28 = vld [vmem:[%s5910_s25 + $0x38] sm:$0xff] }
 0x1b1   : > { %v5166_v31 = vsub.f32 %v833_v3, %v844_v29  ;;  %849 = vadd.xlane.f32.xlu1 %v847_v30  ;;  %v1484_v30 = vld [vmem:[%s5910_s25 + $0x40] sm:$0xff] }
 0x1b3   : > { %v848_v32 = vmul.f32 %v5166_v31, %v5166_v31 }
 0x1b5   : > { %851 = vadd.xlane.f32.xlu1 %v848_v32 }
 0x20a   : > { %v5213_v54 = vpop.f32.mrb[0].mxu1 }
 0x20b   : > { %v1203_v55 = vpop.f32.mrb[1].mxu1 }
 0x20c   : > { %v5216_v56 = vadd.f32 %v1203_v55, %v5211_v53  ;;  %v5218_v57 = vpop.f32.mrb[2].mxu1 }
 0x20d   : > { %v1207_v58 = vpop.f32.mrb[3].mxu1 }
 0x20e   : > { %v5221_v59 = vadd.f32 %v1207_v58, %v5211_v53  ;;  %v1488_v58 = vld [vmem:[%s5910_s25 + $0x60] sm:$0xff] }
 0x212   : > { %v5223_v60 = vpop.f32.mrb[4].mxu1 }
 0x213   : > { %v1213_v61 = vpop.f32.mrb[5].mxu1 }
 0x214   : > { %v5226_v62 = vadd.f32 %v1213_v61, %v5211_v53  ;;  %v5228_v63 = vpop.f32.mrb[6].mxu1  ;;  %v1489_v61 = vld [vmem:[%s5910_s25 + $0x68] sm:$0xff] }
 0x215   : > { %v1217_v0 = vpop.f32.mrb[7].mxu1 }
 0x216   : > { %v5231_v1 = vadd.f32 %v1217_v0, %v5211_v53 }
 0x21a   : > { %v5267_v33 = vpop.f32.mrb[8].mxu1 }
 0x21b   : > { %v1223_v34 = vpop.f32.mrb[9].mxu1 }
 0x21c   : > { %v5270_v35 = vadd.f32 %v1223_v34, %v5211_v53  ;;  %v5272_v36 = vpop.f32.mrb[10].mxu1  ;;  %v3554_v34 = vld [vmem:[%s890_s27] ss:$0 sm:$0xff] }
 0x21d   : > { %v1227_v37 = vpop.f32.mrb[11].mxu1 }
 0x21e   : > { %v5275_v38 = vadd.f32 %v1227_v37, %v5211_v53 }
 0x222   : > { %v5277_v39 = vpop.f32.mrb[12].mxu1 }
 0x223   : > { %v1233_v40 = vpop.f32.mrb[13].mxu1 }
 0x224   : > { %v5280_v41 = vadd.f32 %v1233_v40, %v5211_v53  ;;  %v5282_v42 = vpop.f32.mrb[14].mxu1 }
 0x225   : > { %v1237_v43 = vpop.f32.mrb[15].mxu1 }
 0x226   : > { %v5291_v49 = vadd.f32 %v1237_v43, %v5211_v53 }
 0x23e   : > { %v850_v2 = vpop.xlane.xlu1 %849 }
 0x23f   : > { %v853_v3 = vmul.f32 0.0078125, %v850_v2  ;;  %v4005_v2 = vpack.c.bf16 %v1489_v61, %v1488_v58 }
 0x241   : > { %v855_v4 = vadd.f32 1e-05, %v853_v3 }
 0x242   : > { %v852_v5 = vpop.xlane.xlu1 %851 }
 0x243   : > { %4293 = vrsqrt.f32 %v855_v4  ;;  %v854_v6 = vmul.f32 0.0078125, %v852_v5 }
 0x245   : > { %v856_v7 = vadd.f32 1e-05, %v854_v6 }
 0x247   : > { %4295 = vrsqrt.f32 %v856_v7  ;;  %v1490_v7 = vld [vmem:[%s5910_s25 + $0x70] sm:$0xff] }
 0x24d   : > { %v4294_v8 = vpop.eup %4293 }
 0x24e   : > { %v859_v9 = vmul.f32 %v4294_v8, %v5162_v27  ;;  %v1482_v27 = vld [vmem:[%s5910_s25 + $0x30] sm:$0xff]  ;;  %v1491_v8 = vld [vmem:[%s5910_s25 + $0x78] sm:$0xff] }
 0x24f   : > { %v3993_v29 = vpack.c.bf16 %v1483_v28, %v1482_v27  ;;  %v4697_v28 = vmov 1966171168  }
 0x250   : > { %v865_v15 = vmul.f32 %v3552_v10, %v859_v9 }
 0x251   : > { %v4296_v13 = vpop.eup %4295 }
 0x252   : > { %v860_v14 = vmul.f32 %v4296_v13, %v5166_v31  ;;  %v871_v20 = vadd.f32 %v3553_v16, %v865_v15  ;;  %v1485_v31 = vld [vmem:[%s5910_s25 + $0x48] sm:$0xff] }
 0x253   : > { %v3997_v32 = vpack.c.bf16 %v1485_v31, %v1484_v30  ;;  %v5330_v30 = vsub.s32 0, %v5200_v50 }
 0x254   : > { %v866_v17 = vmul.f32 %v3552_v10, %v860_v14  ;;  %v4009_v10 = vpack.c.bf16 %v1491_v8, %v1490_v7 }
 0x255   : > { %5914 = vst [vmem:[#allocation28_spill] sm:$0xff] %v5330_v30 }
 0x256   : > { %v872_v21 = vadd.f32 %v3553_v16, %v866_v17 }
 0x258   : > { %v873_v22 = vpack.c.bf16 %v872_v21, %v871_v20 }
 0x25a   : > { %3841 = vmatmul.mubr.bf16.vlgmr.msra.gmra.mrb[0].mxu0 %v873_v22 }
 0x25b   : > { %3984 = vmatpush3.bf16.msra.mxu0 %v3981_v47  ;;  %v1241_v47 = vpop.f32.mrb[16].mxu1 }
 0x25c   : > { %3986 = vmatprep.subr.bf16.mxu0 %v3985_v23  ;;  %v1243_v48 = vpop.f32.mrb[17].mxu1 }
 0x25d   : > { %v1245_v55 = vpop.f32.mrb[18].mxu1  ;;  %v5306_v14 = vadd.f32 %v1243_v48, %v5211_v53 }
 0x25e   : > { %v1247_v0 = vpop.f32.mrb[19].mxu1 }
 0x25f   : > { %3988 = vmatpush3.bf16.msra.mxu0 %v3985_v23  ;;  %v1251_v3 = vpop.f32.mrb[20].mxu1  ;;  %v5309_v15 = vadd.f32 %v1247_v0, %v5211_v53 }
 0x260   : > { %3990 = vmatprep.subr.bf16.mxu0 %v3989_v26  ;;  %v1253_v4 = vpop.f32.mrb[21].mxu1 }
 0x261   : > { %v1255_v5 = vpop.f32.mrb[22].mxu1  ;;  %v5312_v19 = vadd.f32 %v1253_v4, %v5211_v53 }
 0x262   : > { %v1257_v6 = vpop.f32.mrb[23].mxu1 }
 0x263   : > { %3992 = vmatpush3.bf16.msra.mxu0 %v3989_v26  ;;  %v1261_v9 = vpop.f32.mrb[24].mxu1  ;;  %v5315_v21 = vadd.f32 %v1257_v6, %v5211_v53 }
 0x264   : > { %3994 = vmatprep.subr.bf16.mxu0 %v3993_v29  ;;  %v1263_v13 = vpop.f32.mrb[25].mxu1 }
 0x265   : > { %v1265_v16 = vpop.f32.mrb[26].mxu1  ;;  %v5318_v22 = vadd.f32 %v1263_v13, %v5211_v53 }
 0x266   : > { %v1267_v17 = vpop.f32.mrb[27].mxu1 }
 0x267   : > { %3996 = vmatpush3.bf16.msra.mxu0 %v3993_v29  ;;  %v1271_v18 = vpop.f32.mrb[28].mxu1  ;;  %v5321_v24 = vadd.f32 %v1267_v17, %v5211_v53  ;;  %v1284_v29 = vunpack.c.l.s4 %v4697_v28 }
 0x268   : > { %3998 = vmatprep.subr.bf16.mxu0 %v3997_v32  ;;  %v1273_v20 = vpop.f32.mrb[29].mxu1 }
 0x269   : > { %v1275_v23 = vpop.f32.mrb[30].mxu1  ;;  %v5324_v25 = vadd.f32 %v1273_v20, %v5211_v53  ;;  %v1285_v31 = vunpack.c.0.s8 %v1284_v29 }
 0x26a   : > { %v1277_v26 = vpop.f32.mrb[31].mxu1 }
 0x26b   : > { %4000 = vmatpush3.bf16.msra.mxu0 %v3997_v32  ;;  %v5327_v27 = vadd.f32 %v1277_v26, %v5211_v53  ;;  %v5338_v32 = vrot.slane %v5206_v52, %v5330_v30  ;;  %v1288_v53 = vsub.s32 %v1285_v31, %v5200_v50 }
 0x26c   : > { %4002 = vmatprep.subr.bf16.mxu0 %v4001_v46 }
 0x26d   : > { %v1202_v44 = vadd.f32 %v5213_v54, %v5338_v32  ;;  %v1212_v48 = vadd.f32 %v5223_v60, %v5338_v32  ;;  %v5349_v0 = vadd.f32 %v5228_v63, %v5338_v32  ;;  %v5357_v54 = vadd.f32 %v5272_v36, %v5338_v32 }
 0x26e   : > { %v1242_v7 = vadd.f32 %v1241_v47, %v5338_v32  ;;  %v1246_v8 = vadd.f32 %v1245_v55, %v5338_v32  ;;  %v1252_v63 = vadd.f32 %v1251_v3, %v5338_v32  ;;  %v1272_v28 = vadd.f32 %v1271_v18, %v5338_v32 }
 0x26f   : > { %4004 = vmatpush3.bf16.msra.mxu0 %v4001_v46  ;;  %v1206_v46 = vadd.f32 %v5218_v57, %v5338_v32  ;;  %v1236_v57 = vadd.f32 %v5282_v42, %v5338_v32  ;;  %v1266_v42 = vadd.f32 %v1265_v16, %v5338_v32  ;;  %v1276_v29 = vadd.f32 %v1275_v23, %v5338_v32 }
 0x270   : > { %4006 = vmatprep.subr.bf16.mxu0 %v4005_v2 }
 0x273   : > { %4008 = vmatpush3.bf16.msra.mxu0 %v4005_v2  ;;  %v5353_v2 = vadd.f32 %v5267_v33, %v5338_v32  ;;  %v1262_v33 = vadd.f32 %v1261_v9, %v5338_v32 }
 0x274   : > { %4010 = vmatprep.subr.bf16.mxu0 %v4009_v10 }
 0x277   : > { %4012 = vmatpush3.bf16.msra.mxu0 %v4009_v10  ;;  %v1256_v10 = vadd.f32 %v1255_v5, %v5338_v32 }
 0x32d   : > { %v978_v37 = vpop.f32.mrb[0].mxu0 }
 0x32e   : > { %v979_v40 = vadd.f32 %v3554_v34, %v978_v37  ;;  %v3842_v43 = vpop.f32.mrb[1].mxu0 }
 0x32f   : > { %v981_v45 = vpop.f32.mrb[2].mxu0 }
 0x330   : > { %v985_v58 = vmul.f32 0.17677669, %v979_v40  ;;  %v982_v61 = vadd.f32 %v3554_v34, %v981_v45  ;;  %v3843_v52 = vpop.f32.mrb[3].mxu0 }
 0x332   : > { %v1282_v4 = vcombine.high %v985_v58, %v985_v58  ;;  %v1289_v60 = vrot.slane %v985_v58, %v1288_v53  ;;  %v986_v6 = vmul.f32 0.17677669, %v982_v61 }
 0x334   : > { %v1296_v13 = vrot.slane %v1282_v4, %v1288_v53  ;;  %v1297_v17 = vcombine.high %v1289_v60, %v1289_v60  ;;  %v1305_v36 = vrot.slane %v1289_v60, %v1288_v53  ;;  %v1331_v20 = vcombine.high %v986_v6, %v986_v6 }
 0x335   : > { %v1338_v26 = vrot.slane %v986_v6, %v1288_v53 }
 0x336   : > { %v1298_v47 = vcombine.high %v1296_v13, %v1296_v13  ;;  %v1312_v31 = vrot.slane %v1296_v13, %v1288_v53  ;;  %v1319_v55 = vrot.slane %v1297_v17, %v1288_v53  ;;  %v1327_v34 = vcombine.high %v1305_v36, %v1305_v36 }
 0x337   : > { %v1345_v3 = vrot.slane %v1331_v20, %v1288_v53  ;;  %v1346_v37 = vcombine.high %v1338_v26, %v1338_v26  ;;  %v1354_v5 = vrot.slane %v1338_v26, %v1288_v53  ;;  %v1383_v9 = vrot.slane %v1305_v36, %v5330_v30 }
 0x338   : > { %v1387_v40 = vrot.slane %v1319_v55, %v5330_v30  ;;  %v1326_v43 = vrot.slane %v1298_v47, %v1288_v53  ;;  %v1391_v45 = vrot.slane %v1327_v34, %v5330_v30  ;;  %v1329_v58 = vcombine.high %v1319_v55, %v1319_v55 }
 0x339   : > { %v1347_v16 = vcombine.high %v1345_v3, %v1345_v3  ;;  %v1415_v18 = vrot.slane %v1354_v5, %v5330_v30  ;;  %v1368_v61 = vrot.slane %v1346_v37, %v1288_v53  ;;  %v1376_v23 = vcombine.high %v1354_v5, %v1354_v5 }
 0x33a   : > { %v1330_v52 = vcombine.high %v1326_v43, %v1326_v43  ;;  %v1361_v4 = vrot.slane %v1345_v3, %v1288_v53  ;;  %v1460_v60 = vmul.f32 %v1383_v9, %v1202_v44  ;;  %v1461_v6 = vmul.f32 %v1387_v40, %v1206_v46 }
 0x33b   : > { %v1468_v13 = vmul.f32 %v1415_v18, %v1242_v7  ;;  %v1419_v17 = vrot.slane %v1368_v61, %v5330_v30  ;;  %v1423_v36 = vrot.slane %v1376_v23, %v5330_v30  ;;  %v1378_v20 = vcombine.high %v1368_v61, %v1368_v61 }
 0x33c   : > { %v1411_v26 = vrot.slane %v1330_v52, %v5330_v30  ;;  %v1431_v47 = vrot.slane %v1361_v4, %v5330_v30  ;;  %v1375_v55 = vrot.slane %v1347_v16, %v1288_v53  ;;  %3876 = vmatprep.mubr.f32.mxu0 %v1460_v60  ;;  %v1377_v34 = vcombine.high %v1361_v4, %v1361_v4 }
 0x33d   : > { %v1469_v51 = vmul.f32 %v1419_v17, %v1246_v8  ;;  %v1470_v37 = vmul.f32 %v1423_v36, %v1252_v63  ;;  %v1427_v5 = vrot.slane %v1378_v20, %v5330_v30  ;;  %3877 = vmatmul.mubr.f32.vlgmr.msra.gmra.mrb[4].mxu0 %v1461_v6  ;;  %v1462_v44 = vmul.f32 %v1391_v45, %v1212_v48 }
 0x33e   : > { %v1467_v46 = vmul.f32 %v1411_v26, %v1236_v57  ;;  %v1472_v7 = vmul.f32 %v1431_v47, %v1262_v33  ;;  %v1435_v3 = vrot.slane %v1375_v55, %v5330_v30  ;;  %v1439_v9 = vrot.slane %v1377_v34, %v5330_v30 }
 0x33f   : > { %v1471_v40 = vmul.f32 %v1427_v5, %v1256_v10  ;;  %v1379_v18 = vcombine.high %v1375_v55, %v1375_v55  ;;  %3879 = vmatprep.mubr.f32.mxu0 %v1462_v44  ;;  %v1395_v61 = vrot.slane %v1329_v58, %v5330_v30  ;;  %v1399_v53 = vrot.slane %v1312_v31, %v5330_v30 }
 0x340   : > { %v1473_v16 = vmul.f32 %v1435_v3, %v1266_v42  ;;  %v1474_v8 = vmul.f32 %v1439_v9, %v1272_v28  ;;  %v1403_v63 = vrot.slane %v1326_v43, %v5330_v30  ;;  %v1328_v23 = vcombine.high %v1312_v31, %v1312_v31 }
 0x341   : > { %v1443_v48 = vrot.slane %v1379_v18, %v5330_v30  ;;  %v1463_v57 = vmul.f32 %v1395_v61, %v5349_v0  ;;  %v1464_v33 = vmul.f32 %v1399_v53, %v5353_v2  ;;  %v1232_v10 = vadd.f32 %v5277_v39, %v5338_v32  ;;  %v1942_v39 = vld [vmem:[#allocation8] sm:$0xf]  ;;  %v4205_v32 = vld [vmem:[%s5110_s5] sm:$0xff]   ;;  %v4206_v0 = vld [vmem:[%s5110_s5 + $0x8] sm:$0xff]  }
 0x342   : > { %v1465_v45 = vmul.f32 %v1403_v63, %v5357_v54  ;;  %v1407_v58 = vrot.slane %v1328_v23, %v5330_v30  ;;  %3900 = vmatprep.subr.msk.mxu0 %vm1991_vm1, %v1942_v39  ;;  %3927 = vmatpush3.bf16.msra.mxu1 %v4205_v32 }
 0x343   : > { %v1475_v52 = vmul.f32 %v1443_v48, %v1276_v29  ;;  %3880 = vmatmul.mubr.f32.gmra.mrb[6].mxu0 %v1463_v57  ;;  %3928 = vmatprep.subr.bf16.mxu1 %v5842_v12 }
 0x344   : > { %3882 = vmatprep.mubr.f32.mxu0 %v1464_v33  ;;  %v1466_v42 = vmul.f32 %v1407_v58, %v1232_v10  ;;  %3901 = vmatpush3.msk.msra.mxu0 %vm1991_vm1, %v1942_v39 }
 0x346   : > { %3929 = vmatpush3.bf16.msra.mxu1 %v4206_v0 }
 0x347   : > { %3883 = vmatmul.mubr.f32.gmra.mrb[8].mxu0 %v1465_v45  ;;  %3930 = vmatprep.subr.bf16.mxu1 %v5842_v12 }
 0x348   : > { %3885 = vmatprep.mubr.f32.mxu0 %v1466_v42 }
 0x34b   : > { %3886 = vmatmul.mubr.f32.gmra.mrb[10].mxu0 %v1467_v46 }
 0x34c   : > { %3888 = vmatprep.mubr.f32.mxu0 %v1468_v13 }
 0x34f   : > { %3889 = vmatmul.mubr.f32.gmra.mrb[12].mxu0 %v1469_v51 }
 0x350   : > { %3891 = vmatprep.mubr.f32.mxu0 %v1470_v37 }
 0x353   : > { %3892 = vmatmul.mubr.f32.gmra.mrb[14].mxu0 %v1471_v40 }
 0x354   : > { %3894 = vmatprep.mubr.f32.mxu0 %v1472_v7 }
 0x357   : > { %3895 = vmatmul.mubr.f32.gmra.mrb[16].mxu0 %v1473_v16 }
 0x358   : > { %3897 = vmatprep.mubr.f32.mxu0 %v1474_v8 }
 0x35b   : > { %3898 = vmatmul.mubr.f32.gmra.mrb[18].mxu0 %v1475_v52 }
 0x410   : > { %v3878_v51 = vpop.f32.mrb[4].mxu0 }
 0x411   : > { %v1645_v2 = vsel %vm1637_vm2, %v3878_v51, -inf  ;;  %v1558_v54 = vpop.f32.mrb[5].mxu0 }
 0x412   : > { %v1646_v28 = vrot.slane %v1645_v2, 4  ;;  %v1638_v29 = vsel %vm1637_vm2, %v1558_v54, -inf }
 0x413   : > { %v1639_v31 = vrot.slane %v1638_v29, 4 }
 0x414   : > { %v1647_v43 = vmax.f32 %v1645_v2, %v1646_v28 }
 0x415   : > { %v1640_v4 = vmax.f32 %v1638_v29, %v1639_v31 }
 0x416   : > { %v1648_v60 = vrot.slane %v1647_v43, 2  ;;  %v3881_v6 = vpop.f32.mrb[6].mxu0 }
 0x417   : > { %v1641_v13 = vrot.slane %v1640_v4, 2  ;;  %v1659_v17 = vsel %vm1637_vm2, %v3881_v6, -inf  ;;  %v1568_v36 = vpop.f32.mrb[7].mxu0 }
 0x418   : > { %v1649_v20 = vmax.f32 %v1647_v43, %v1648_v60  ;;  %v1660_v26 = vrot.slane %v1659_v17, 4  ;;  %v1652_v47 = vsel %vm1637_vm2, %v1568_v36, -inf }
 0x419   : > { %v1642_v55 = vmax.f32 %v1640_v4, %v1641_v13  ;;  %v1653_v34 = vrot.slane %v1652_v47, 4 }
 0x41a   : > { %v1650_v37 = vrot.slane %v1649_v20, 1  ;;  %v1661_v5 = vmax.f32 %v1659_v17, %v1660_v26  ;;  %v5398_v44 = vpop.f32.mrb[8].mxu0 }
 0x41b   : > { %v1643_v46 = vrot.slane %v1642_v55, 1  ;;  %v1654_v7 = vmax.f32 %v1652_v47, %v1653_v34  ;;  %v1673_v3 = vsel %vm1637_vm2, %v5398_v44, -inf  ;;  %v5402_v9 = vpop.f32.mrb[9].mxu0 }
 0x41c   : > { %v1651_v40 = vmax.f32 %v1649_v20, %v1650_v37  ;;  %v1662_v18 = vrot.slane %v1661_v5, 2  ;;  %v1674_v61 = vrot.slane %v1673_v3, 4  ;;  %v1666_v53 = vsel %vm1637_vm2, %v5402_v9, -inf }
 0x41d   : > { %v1644_v16 = vmax.f32 %v1642_v55, %v1643_v46  ;;  %v1655_v8 = vrot.slane %v1654_v7, 2  ;;  %v1667_v63 = vrot.slane %v1666_v53, 4 }
 0x41e   : > { %v1751_v23 = vsub.f32 %v3878_v51, %v1651_v40  ;;  %v1663_v48 = vmax.f32 %v1661_v5, %v1662_v18  ;;  %v1675_v57 = vmax.f32 %v1673_v3, %v1674_v61  ;;  %v5406_v33 = vpop.f32.mrb[10].mxu0 }
 0x41f   : > { %v1750_v10 = vsub.f32 %v1558_v54, %v1644_v16  ;;  %v1656_v45 = vmax.f32 %v1654_v7, %v1655_v8  ;;  %v1668_v58 = vmax.f32 %v1666_v53, %v1667_v63  ;;  %v1687_v52 = vsel %vm1637_vm2, %v5406_v33, -inf  ;;  %v5410_v42 = vpop.f32.mrb[11].mxu0 }
 0x420   : > { %v1768_v39 = vmul.f32 1.442695, %v1751_v23  ;;  %v1664_v32 = vrot.slane %v1663_v48, 1  ;;  %v1676_v0 = vrot.slane %v1675_v57, 2  ;;  %v1688_v2 = vrot.slane %v1687_v52, 4 }
 0x421   : > { %v1766_v28 = vmul.f32 1.442695, %v1750_v10  ;;  %v1657_v29 = vrot.slane %v1656_v45, 1  ;;  %v1669_v31 = vrot.slane %v1668_v58, 2  ;;  %v1680_v51 = vsel %vm1637_vm2, %v5410_v42, -inf }
 0x422   : > { %4297 = vpow2.f32 %v1768_v39  ;;  %v1665_v43 = vmax.f32 %v1663_v48, %v1664_v32  ;;  %v1677_v54 = vmax.f32 %v1675_v57, %v1676_v0  ;;  %v1689_v4 = vmax.f32 %v1687_v52, %v1688_v2  ;;  %v5414_v60 = vpop.f32.mrb[12].mxu0 }
 0x423   : > { %4299 = vpow2.f32 %v1766_v28  ;;  %v1658_v13 = vmax.f32 %v1656_v45, %v1657_v29  ;;  %v1670_v17 = vmax.f32 %v1668_v58, %v1669_v31  ;;  %v1681_v20 = vrot.slane %v1680_v51, 4  ;;  %v5416_v26 = vpop.f32.mrb[13].mxu0 }
 0x424   : > { %v1753_v47 = vsub.f32 %v3881_v6, %v1665_v43  ;;  %v1678_v55 = vrot.slane %v1677_v54, 1  ;;  %v1690_v34 = vrot.slane %v1689_v4, 2  ;;  %v1701_v37 = vsel %vm1637_vm2, %v5414_v60, -inf }
 0x425   : > { %v1752_v5 = vsub.f32 %v1568_v36, %v1658_v13  ;;  %v1671_v46 = vrot.slane %v1670_v17, 1  ;;  %v1682_v7 = vmax.f32 %v1680_v51, %v1681_v20  ;;  %v1702_v3 = vrot.slane %v1701_v37, 4 }
 0x426   : > { %v1772_v40 = vmul.f32 1.442695, %v1753_v47  ;;  %v1679_v18 = vmax.f32 %v1677_v54, %v1678_v55  ;;  %v1691_v61 = vmax.f32 %v1689_v4, %v1690_v34  ;;  %v1694_v53 = vsel %vm1637_vm2, %v5416_v26, -inf  ;;  %v5422_v16 = vpop.f32.mrb[14].mxu0 }
 0x427   : > { %v1770_v8 = vmul.f32 1.442695, %v1752_v5  ;;  %v1672_v63 = vmax.f32 %v1670_v17, %v1671_v46  ;;  %v1683_v6 = vrot.slane %v1682_v7, 2  ;;  %v1703_v23 = vmax.f32 %v1701_v37, %v1702_v3  ;;  %v5424_v48 = vpop.f32.mrb[15].mxu0 }
 0x428   : > { %4301 = vpow2.f32 %v1772_v40  ;;  %v1755_v36 = vsub.f32 %v5398_v44, %v1679_v18  ;;  %v1692_v57 = vrot.slane %v1691_v61, 1  ;;  %v1695_v10 = vrot.slane %v1694_v53, 4 }
 0x429   : > { %4303 = vpow2.f32 %v1770_v8  ;;  %v1754_v45 = vsub.f32 %v5402_v9, %v1672_v63  ;;  %v1684_v58 = vmax.f32 %v1682_v7, %v1683_v6  ;;  %v1704_v52 = vrot.slane %v1703_v23, 2 }
 0x42a   : > { %v1776_v39 = vmul.f32 1.442695, %v1755_v36  ;;  %v1693_v32 = vmax.f32 %v1691_v61, %v1692_v57  ;;  %v1696_v0 = vmax.f32 %v1694_v53, %v1695_v10  ;;  %v1715_v2 = vsel %vm1637_vm2, %v5422_v16, -inf  ;;  %v5430_v28 = vpop.f32.mrb[16].mxu0 }
 0x42b   : > { %v1774_v29 = vmul.f32 1.442695, %v1754_v45  ;;  %v1685_v31 = vrot.slane %v1684_v58, 1  ;;  %v1705_v51 = vmax.f32 %v1703_v23, %v1704_v52  ;;  %v1716_v43 = vrot.slane %v1715_v2, 4  ;;  %v5432_v44 = vpop.f32.mrb[17].mxu0 }
 0x42c   : > { %v5434_v54 = vpop.eup %4297  ;;  %4305 = vpow2.f32 %v1776_v39  ;;  %v1757_v9 = vsub.f32 %v5406_v33, %v1693_v32  ;;  %v1697_v4 = vrot.slane %v1696_v0, 2  ;;  %v1708_v13 = vsel %vm1637_vm2, %v5424_v48, -inf }
 0x42d   : > { %v5439_v17 = vpop.eup %4299  ;;  %v1805_v20 = vsel %vm1637_vm2, %v5434_v54, 0.0  ;;  %4307 = vpow2.f32 %v1774_v29  ;;  %v1686_v47 = vmax.f32 %v1684_v58, %v1685_v31  ;;  %v1706_v55 = vrot.slane %v1705_v51, 1 }
 0x42e   : > { %v1806_v34 = vrot.slane %v1805_v20, 4  ;;  %v1798_v37 = vsel %vm1637_vm2, %v5439_v17, 0.0  ;;  %v1780_v5 = vmul.f32 1.442695, %v1757_v9  ;;  %v1698_v46 = vmax.f32 %v1696_v0, %v1697_v4  ;;  %v5445_v7 = vpop.f32.mrb[18].mxu0 }
 0x42f   : > { %v1799_v33 = vrot.slane %v1798_v37, 4  ;;  %v1756_v3 = vsub.f32 %v5410_v42, %v1686_v47  ;;  %v1707_v40 = vmax.f32 %v1705_v51, %v1706_v55  ;;  %v1717_v18 = vmax.f32 %v1715_v2, %v1716_v43  ;;  %v5448_v61 = vpop.f32.mrb[19].mxu0 }
 0x430   : > { %v1807_v53 = vadd.f32 %v1806_v34, %v1805_v20  ;;  %4309 = vpow2.f32 %v1780_v5  ;;  %v1699_v8 = vrot.slane %v1698_v46, 1  ;;  %v1709_v63 = vrot.slane %v1708_v13, 4 }
 0x431   : > { %v1800_v6 = vadd.f32 %v1799_v33, %v1798_v37  ;;  %v1778_v23 = vmul.f32 1.442695, %v1756_v3  ;;  %v1759_v36 = vsub.f32 %v5414_v60, %v1707_v40  ;;  %v1718_v57 = vrot.slane %v1717_v18, 2 }
 0x432   : > { %v5451_v10 = vpop.eup %4301  ;;  %v1808_v45 = vrot.slane %v1807_v53, 2  ;;  %v1700_v58 = vmax.f32 %v1698_v46, %v1699_v8  ;;  %v1710_v52 = vmax.f32 %v1708_v13, %v1709_v63 }
 0x433   : > { %v5453_v39 = vpop.eup %4303  ;;  %v1801_v42 = vrot.slane %v1800_v6, 2  ;;  %v1819_v32 = vsel %vm1637_vm2, %v5451_v10, 0.0  ;;  %4311 = vpow2.f32 %v1778_v23  ;;  %v1784_v0 = vmul.f32 1.442695, %v1759_v36 }
 0x434   : > { %v1809_v2 = vadd.f32 %v1808_v45, %v1807_v53  ;;  %v1820_v29 = vrot.slane %v1819_v32, 4  ;;  %v1812_v31 = vsel %vm1637_vm2, %v5453_v39, 0.0  ;;  %v1758_v60 = vsub.f32 %v5416_v26, %v1700_v58 }
 0x435   : > { %v1802_v51 = vadd.f32 %v1801_v42, %v1800_v6  ;;  %v1813_v43 = vrot.slane %v1812_v31, 4  ;;  %4313 = vpow2.f32 %v1784_v0  ;;  %v1719_v9 = vmax.f32 %v1717_v18, %v1718_v57 }
 0x436   : > { %v5460_v4 = vpop.eup %4305  ;;  %v1810_v13 = vrot.slane %v1809_v2, 1  ;;  %v1821_v20 = vadd.f32 %v1820_v29, %v1819_v32  ;;  %v1782_v47 = vmul.f32 1.442695, %v1758_v60  ;;  %v1711_v46 = vrot.slane %v1710_v52, 2 }
 0x437   : > { %v5462_v55 = vpop.eup %4307  ;;  %v1814_v34 = vadd.f32 %v1813_v43, %v1812_v31  ;;  %v1833_v37 = vsel %vm1637_vm2, %v5460_v4, 0.0  ;;  %v1720_v5 = vrot.slane %v1719_v9, 1  ;;  %v1803_v40 = vrot.slane %v1802_v51, 1 }
 0x438   : > { %v1822_v33 = vrot.slane %v1821_v20, 2  ;;  %v1834_v3 = vrot.slane %v1833_v37, 4  ;;  %v1826_v26 = vsel %vm1637_vm2, %v5462_v55, 0.0  ;;  %4315 = vpow2.f32 %v1782_v47 }
 0x439   : > { %v1815_v18 = vrot.slane %v1814_v34, 2  ;;  %v1827_v53 = vrot.slane %v1826_v26, 4  ;;  %v1721_v23 = vmax.f32 %v1719_v9, %v1720_v5  ;;  %v1729_v36 = vsel %vm1637_vm2, %v5430_v28, -inf }
 0x43a   : > { %v5468_v8 = vpop.eup %4309  ;;  %v1823_v63 = vadd.f32 %v1822_v33, %v1821_v20  ;;  %v1835_v6 = vadd.f32 %v1834_v3, %v1833_v37  ;;  %v1811_v57 = vadd.f32 %v1810_v13, %v1809_v2  ;;  %v1712_v42 = vmax.f32 %v1710_v52, %v1711_v46 }
 0x43b   : > { %v1828_v45 = vadd.f32 %v1827_v53, %v1826_v26  ;;  %v1847_v58 = vsel %vm1637_vm2, %v5468_v8, 0.0  ;;  %v1816_v32 = vadd.f32 %v1815_v18, %v1814_v34  ;;  %v1761_v31 = vsub.f32 %v5422_v16, %v1721_v23 }
 0x43c   : > { %v1836_v0 = vrot.slane %v1835_v6, 2  ;;  %v1848_v29 = vrot.slane %v1847_v58, 4  ;;  %v1804_v43 = vadd.f32 %v1803_v40, %v1802_v51  ;;  %v1824_v20 = vrot.slane %v1823_v63, 1 }
 0x43d   : > { %v5475_v60 = vpop.eup %4311  ;;  %v1829_v47 = vrot.slane %v1828_v45, 2  ;;  %v1713_v9 = vrot.slane %v1712_v42, 1  ;;  %v1730_v13 = vrot.slane %v1729_v36, 4  ;;  %4317 = vrcp.f32 %v1811_v57 }
 0x43e   : > { %v1837_v37 = vadd.f32 %v1836_v0, %v1835_v6  ;;  %v1849_v5 = vadd.f32 %v1848_v29, %v1847_v58  ;;  %v1840_v2 = vsel %vm1637_vm2, %v5475_v60, 0.0  ;;  %v1788_v46 = vmul.f32 1.442695, %v1761_v31 }
 0x43f   : > { %v5479_v33 = vpop.eup %4313  ;;  %v1830_v52 = vadd.f32 %v1829_v47, %v1828_v45  ;;  %v1841_v34 = vrot.slane %v1840_v2, 4  ;;  %v1817_v3 = vrot.slane %v1816_v32, 1  ;;  %v1714_v26 = vmax.f32 %v1712_v42, %v1713_v9 }
 0x440   : > { %v1850_v16 = vrot.slane %v1849_v5, 2  ;;  %v1861_v51 = vsel %vm1637_vm2, %v5479_v33, 0.0  ;;  %v1825_v40 = vadd.f32 %v1824_v20, %v1823_v63  ;;  %4319 = vpow2.f32 %v1788_v46 }
 0x441   : > { %v1842_v18 = vadd.f32 %v1841_v34, %v1840_v2  ;;  %v1862_v53 = vrot.slane %v1861_v51, 4  ;;  %v1838_v6 = vrot.slane %v1837_v37, 1  ;;  %v1760_v58 = vsub.f32 %v5424_v48, %v1714_v26 }
 0x442   : > { %v1851_v23 = vadd.f32 %v1850_v16, %v1849_v5  ;;  %v1731_v0 = vmax.f32 %v1729_v36, %v1730_v13  ;;  %v5484_v29 = vpop.eup %4315  ;;  %v1831_v57 = vrot.slane %v1830_v52, 1  ;;  %v1722_v47 = vsel %vm1637_vm2, %v5432_v44, -inf }
 0x443   : > { %v1843_v45 = vrot.slane %v1842_v18, 2  ;;  %v1863_v31 = vadd.f32 %v1862_v53, %v1861_v51  ;;  %v1818_v12 = vadd.f32 %v1817_v3, %v1816_v32  ;;  %v1854_v63 = vsel %vm1637_vm2, %v5484_v29, 0.0 }
 0x444   : > { %v1786_v42 = vmul.f32 1.442695, %v1760_v58  ;;  %v1732_v20 = vrot.slane %v1731_v0, 2  ;;  %v1852_v9 = vrot.slane %v1851_v23, 1  ;;  %v1855_v34 = vrot.slane %v1854_v63, 4 }
 0x445   : > { %v1844_v2 = vadd.f32 %v1843_v45, %v1842_v18  ;;  %v1864_v5 = vrot.slane %v1863_v31, 2  ;;  %v1839_v48 = vadd.f32 %v1838_v6, %v1837_v37  ;;  %v1723_v13 = vrot.slane %v1722_v47, 4 }
 0x446   : > { %4321 = vpow2.f32 %v1786_v42  ;;  %v1733_v36 = vmax.f32 %v1731_v0, %v1732_v20  ;;  %v1832_v46 = vadd.f32 %v1831_v57, %v1830_v52  ;;  %v1856_v51 = vadd.f32 %v1855_v34, %v1854_v63 }
 0x447   : > { %v1845_v16 = vrot.slane %v1844_v2, 1  ;;  %v1743_v26 = vsel %vm1637_vm2, %v5445_v7, -inf  ;;  %v1724_v3 = vmax.f32 %v1722_v47, %v1723_v13  ;;  %v1736_v58 = vsel %vm1637_vm2, %v5448_v61, -inf  ;;  %v4318_v11 = vpop.eup %4317 }
 0x448   : > { %v1734_v32 = vrot.slane %v1733_v36, 1  ;;  %v1744_v53 = vrot.slane %v1743_v26, 4  ;;  %v1853_v18 = vadd.f32 %v1852_v9, %v1851_v23  ;;  %v1865_v45 = vadd.f32 %v1864_v5, %v1863_v31 }
 0x449   : > { %v1857_v30 = vrot.slane %v1856_v51, 2  ;;  %v1737_v37 = vrot.slane %v1736_v58, 4  ;;  %v1725_v0 = vrot.slane %v1724_v3, 2  ;;  %4323 = vrcp.f32 %v1804_v43 }
 0x44a   : > { %v1735_v6 = vmax.f32 %v1733_v36, %v1734_v32  ;;  %v1745_v42 = vmax.f32 %v1743_v26, %v1744_v53  ;;  %v5494_v52 = vpop.eup %4319  ;;  %v1846_v57 = vadd.f32 %v1845_v16, %v1844_v2  ;;  %4325 = vrcp.f32 %v1818_v12 }
 0x44b   : > { %v1858_v63 = vadd.f32 %v1857_v30, %v1856_v51  ;;  %v1738_v20 = vmax.f32 %v1736_v58, %v1737_v37  ;;  %v1875_v47 = vsel %vm1637_vm2, %v5494_v52, 0.0  ;;  %v1726_v13 = vmax.f32 %v1724_v3, %v1725_v0 }
 0x44c   : > { %v1763_v34 = vsub.f32 %v5430_v28, %v1735_v6  ;;  %v1746_v23 = vrot.slane %v1745_v42, 2  ;;  %v1876_v9 = vrot.slane %v1875_v47, 4  ;;  %4327 = vrcp.f32 %v1825_v40 }
 0x44d   : > { %v1859_v31 = vrot.slane %v1858_v63, 1  ;;  %v1739_v5 = vrot.slane %v1738_v20, 2  ;;  %v1727_v26 = vrot.slane %v1726_v13, 1  ;;  %4329 = vrcp.f32 %v1832_v46 }
 0x44e   : > { %v1792_v36 = vmul.f32 1.442695, %v1763_v34  ;;  %v1747_v43 = vmax.f32 %v1745_v42, %v1746_v23  ;;  %v1866_v32 = vrot.slane %v1865_v45, 1  ;;  %v1877_v2 = vadd.f32 %v1876_v9, %v1875_v47 }
 0x44f   : > { %v1740_v30 = vmax.f32 %v1738_v20, %v1739_v5  ;;  %4331 = vrcp.f32 %v1839_v48  ;;  %v1860_v16 = vadd.f32 %v1859_v31, %v1858_v63  ;;  %v1728_v51 = vmax.f32 %v1726_v13, %v1727_v26 }
 0x450   : > { %v5499_v12 = vpop.eup %4321  ;;  %4333 = vpow2.f32 %v1792_v36  ;;  %v1748_v28 = vrot.slane %v1747_v43, 1  ;;  %v1878_v3 = vrot.slane %v1877_v2, 2  ;;  %v1927_v6 = vmul.f32 %v4318_v11, %v5434_v54 }
 0x451   : > { %v1868_v53 = vsel %vm1637_vm2, %v5499_v12, 0.0  ;;  %v1741_v58 = vrot.slane %v1740_v30, 1  ;;  %4335 = vrcp.f32 %v1846_v57  ;;  %v1762_v37 = vsub.f32 %v5432_v44, %v1728_v51 }
 0x452   : > { %v1869_v40 = vrot.slane %v1868_v53, 4  ;;  %v1749_v46 = vmax.f32 %v1747_v43, %v1748_v28  ;;  %v1867_v0 = vadd.f32 %v1866_v32, %v1865_v45  ;;  %v1879_v48 = vadd.f32 %v1878_v3, %v1877_v2 }
 0x453   : > { %v1742_v42 = vmax.f32 %v1740_v30, %v1741_v58  ;;  %v4324_v20 = vpop.eup %4323  ;;  %v1790_v47 = vmul.f32 1.442695, %v1762_v37  ;;  %4337 = vrcp.f32 %v1860_v16 }
 0x454   : > { %v1870_v63 = vadd.f32 %v1869_v40, %v1868_v53  ;;  %v1765_v34 = vsub.f32 %v5445_v7, %v1749_v46  ;;  %v4326_v13 = vpop.eup %4325  ;;  %v1880_v23 = vrot.slane %v1879_v48, 1  ;;  %v1926_v57 = vmul.f32 %v4324_v20, %v5439_v17 }
 0x455   : > { %v1764_v31 = vsub.f32 %v5448_v61, %v1742_v42  ;;  %4339 = vrcp.f32 %v1853_v18  ;;  %v1928_v11 = vmul.f32 %v4326_v13, %v5453_v39 }
 0x456   : > { %v1871_v44 = vrot.slane %v1870_v63, 2  ;;  %4341 = vpow2.f32 %v1790_v47  ;;  %v1796_v9 = vmul.f32 1.442695, %v1765_v34  ;;  %v4328_v54 = vpop.eup %4327  ;;  %3902 = vmatprep.mubr.msk.f32.mxu0 %vm1637_vm2, %v1926_v57  ;;  %v1881_v61 = vadd.f32 %v1880_v23, %v1879_v48 }
 0x457   : > { %v1794_v45 = vmul.f32 1.442695, %v1764_v31  ;;  %4343 = vrcp.f32 %v1867_v0  ;;  %v4330_v5 = vpop.eup %4329  ;;  %3903 = vmatmul.mubr.msk.f32.vlgmr.msra.gmra.mrb[20].mxu0 %vm1637_vm2, %v1927_v6  ;;  %v1929_v26 = vmul.f32 %v4328_v54, %v5451_v10 }
 0x458   : > { %v1872_v7 = vadd.f32 %v1871_v44, %v1870_v63  ;;  %4345 = vpow2.f32 %v1796_v9  ;;  %3905 = vmatprep.mubr.msk.f32.mxu0 %vm1637_vm2, %v1928_v11  ;;  %v1930_v17 = vmul.f32 %v4330_v5, %v5462_v55 }
 0x459   : > { %v4332_v36 = vpop.eup %4331  ;;  %4347 = vpow2.f32 %v1794_v45 }
 0x45a   : > { %v5513_v18 = vpop.eup %4333  ;;  %v1873_v39 = vrot.slane %v1872_v7, 1  ;;  %4349 = vrcp.f32 %v1881_v61  ;;  %v1931_v28 = vmul.f32 %v4332_v36, %v5460_v4 }
 0x45b   : > { %v4336_v43 = vpop.eup %4335  ;;  %v1889_v32 = vsel %vm1637_vm2, %v5513_v18, 0.0  ;;  %3906 = vmatmul.mubr.msk.f32.gmra.mrb[22].mxu0 %vm1637_vm2, %v1929_v26 }
 0x45c   : > { %v1874_v2 = vadd.f32 %v1873_v39, %v1872_v7  ;;  %v1890_v30 = vrot.slane %v1889_v32, 4  ;;  %3908 = vmatprep.mubr.msk.f32.mxu0 %vm1637_vm2, %v1930_v17  ;;  %v1932_v16 = vmul.f32 %v4336_v43, %v5475_v60 }
 0x45d   : > { %v4338_v51 = vpop.eup %4337 }
 0x45e   : > { %v1891_v55 = vadd.f32 %v1890_v30, %v1889_v32  ;;  %4351 = vrcp.f32 %v1874_v2  ;;  %v1934_v37 = vmul.f32 %v4338_v51, %v5484_v29 }
 0x45f   : > { %v4340_v3 = vpop.eup %4339  ;;  %3909 = vmatmul.mubr.msk.f32.gmra.mrb[24].mxu0 %vm1637_vm2, %v1931_v28  ;;  %v5916_v28 = vmov 0  }
 0x460   : > { %v4342_v10 = vpop.eup %4341  ;;  %v1892_v53 = vrot.slane %v1891_v55, 2  ;;  %3911 = vmatprep.mubr.msk.f32.mxu0 %vm1637_vm2, %v1932_v16  ;;  %v1933_v0 = vmul.f32 %v4340_v3, %v5468_v8  ;;  %v4207_v3 = vld [vmem:[%s5110_s5 + $0x10] sm:$0xff]  }
 0x461   : > { %v4344_v58 = vpop.eup %4343  ;;  %v1882_v40 = vsel %vm1637_vm2, %v4342_v10, 0.0  ;;  %3931 = vmatpush3.bf16.msra.mxu1 %v4207_v3 }
 0x462   : > { %v4346_v46 = vpop.eup %4345  ;;  %v1893_v60 = vadd.f32 %v1892_v53, %v1891_v55  ;;  %v1883_v6 = vrot.slane %v1882_v40, 4  ;;  %v1935_v23 = vmul.f32 %v4344_v58, %v5479_v33  ;;  %v4209_v53 = vld [vmem:[%s5110_s5 + $0x20] sm:$0xff]   ;;  %v4210_v58 = vld [vmem:[%s5110_s5 + $0x28] sm:$0xff]  }
 0x463   : > { %v4348_v48 = vpop.eup %4347  ;;  %v1903_v4 = vsel %vm1637_vm2, %v4346_v46, 0.0  ;;  %3912 = vmatmul.mubr.msk.f32.gmra.mrb[26].mxu0 %vm1637_vm2, %v1933_v0 }
 0x464   : > { %v1884_v42 = vadd.f32 %v1883_v6, %v1882_v40  ;;  %v1904_v20 = vrot.slane %v1903_v4, 4  ;;  %v1896_v63 = vsel %vm1637_vm2, %v4348_v48, 0.0  ;;  %v1894_v47 = vrot.slane %v1893_v60, 1  ;;  %3914 = vmatprep.mubr.msk.f32.mxu0 %vm1637_vm2, %v1934_v37  ;;  %v4350_v31 = vpop.eup %4349  ;;  %v4211_v40 = vld [vmem:[%s5110_s5 + $0x30] sm:$0xff]   ;;  %v4212_v37 = vld [vmem:[%s5110_s5 + $0x38] sm:$0xff]  }
 0x465   : > { %v1897_v34 = vrot.slane %v1896_v63, 4  ;;  %v1937_v36 = vmul.f32 %v4350_v31, %v5494_v52 }
 0x466   : > { %v1885_v13 = vrot.slane %v1884_v42, 2  ;;  %v1905_v29 = vadd.f32 %v1904_v20, %v1903_v4  ;;  %v1895_v11 = vadd.f32 %v1894_v47, %v1893_v60 }
 0x467   : > { %v1898_v57 = vadd.f32 %v1897_v34, %v1896_v63  ;;  %3915 = vmatmul.mubr.msk.f32.gmra.mrb[28].mxu0 %vm1637_vm2, %v1935_v23 }
 0x468   : > { %v4352_v8 = vpop.eup %4351  ;;  %v1886_v44 = vadd.f32 %v1885_v13, %v1884_v42  ;;  %v1906_v9 = vrot.slane %v1905_v29, 2  ;;  %4353 = vrcp.f32 %v1895_v11 }
 0x469   : > { %v1899_v54 = vrot.slane %v1898_v57, 2  ;;  %v1936_v45 = vmul.f32 %v4352_v8, %v5499_v12 }
 0x46a   : > { %v1887_v5 = vrot.slane %v1886_v44, 1  ;;  %v1907_v7 = vadd.f32 %v1906_v9, %v1905_v29 }
 0x46b   : > { %v1900_v61 = vadd.f32 %v1899_v54, %v1898_v57  ;;  %3917 = vmatprep.mubr.msk.f32.mxu0 %vm1637_vm2, %v1936_v45 }
 0x46c   : > { %v1888_v17 = vadd.f32 %v1887_v5, %v1886_v44  ;;  %v1908_v33 = vrot.slane %v1907_v7, 1  ;;  %3918 = vmatmul.mubr.msk.f32.gmra.mrb[30].mxu0 %vm1637_vm2, %v1937_v36 }
 0x46d   : > { %v1901_v39 = vrot.slane %v1900_v61, 1 }
 0x46e   : > { %v1909_v26 = vadd.f32 %v1908_v33, %v1907_v7  ;;  %4355 = vrcp.f32 %v1888_v17 }
 0x46f   : > { %v1902_v43 = vadd.f32 %v1901_v39, %v1900_v61 }
 0x470   : > { %4357 = vrcp.f32 %v1909_v26 }
 0x471   : > { %4359 = vrcp.f32 %v1902_v43 }
 0x472   : > { %v4354_v12 = vpop.eup %4353 }
 0x473   : > { %v1939_v30 = vmul.f32 %v4354_v12, %v5513_v18  ;;  %v4208_v18 = vld [vmem:[%s5110_s5 + $0x18] sm:$0xff]  }
 0x478   : > { %v4356_v32 = vpop.eup %4355 }
 0x479   : > { %v1938_v2 = vmul.f32 %v4356_v32, %v4342_v10  ;;  %v5917_v10 = vmov 0.0  }
 0x47a   : > { %v4358_v52 = vpop.eup %4357  ;;  %3932 = vmatprep.subr.bf16.mxu1 %v5917_v10 }
 0x47b   : > { %v4360_v16 = vpop.eup %4359  ;;  %3920 = vmatprep.mubr.msk.f32.mxu0 %vm1637_vm2, %v1938_v2  ;;  %v1941_v55 = vmul.f32 %v4358_v52, %v4346_v46  ;;  %3933 = vmatpush3.bf16.msra.mxu1 %v4208_v18 }
 0x47c   : > { %3921 = vmatmul.mubr.msk.f32.gmra.mrb[32].mxu0 %vm1637_vm2, %v1939_v30  ;;  %v1940_v51 = vmul.f32 %v4360_v16, %v4348_v48  ;;  %3934 = vmatprep.subr.bf16.mxu1 %v5917_v10 }
 0x47e   : > { %3923 = vmatprep.mubr.msk.f32.mxu0 %vm1637_vm2, %v1940_v51 }
 0x47f   : > { %3935 = vmatpush3.bf16.msra.mxu1 %v4209_v53 }
 0x480   : > { %3924 = vmatmul.mubr.msk.f32.gmra.mrb[34].mxu0 %vm1637_vm2, %v1941_v55  ;;  %3936 = vmatprep.subr.bf16.mxu1 %v5917_v10 }
 0x481   : > { %2731 = vmatprep.mubr.bf16.mxu0 %v5916_v28 }
 0x483   : > { %3937 = vmatpush3.bf16.msra.mxu1 %v4210_v58 }
 0x484   : > { %3938 = vmatprep.subr.bf16.mxu1 %v5917_v10 }
 0x487   : > { %3939 = vmatpush3.bf16.msra.mxu1 %v4211_v40 }
 0x488   : > { %3940 = vmatprep.subr.bf16.mxu1 %v5917_v10 }
 0x48b   : > { %3941 = vmatpush3.bf16.msra.mxu1 %v4212_v37 }
 0x52a   : > { %v3904_v46 = vpop.f32.mrb[20].mxu0 }
 0x52b   : > { %v2141_v60 = vmul.f32 %v3904_v46, %v5221_v59  ;;  %v2061_v6 = vpop.f32.mrb[21].mxu0 }
 0x52c   : > { %v2140_v0 = vmul.f32 %v2061_v6, %v5216_v56 }
 0x52d   : > { %v2162_v48 = vrot.slane %v2141_v60, 4 }
 0x52e   : > { %v2156_v4 = vrot.slane %v2140_v0, 4  ;;  %v3907_v42 = vpop.f32.mrb[22].mxu0 }
 0x52f   : > { %v2163_v20 = vadd.f32 %v2162_v48, %v2141_v60  ;;  %v2143_v63 = vmul.f32 %v3907_v42, %v5231_v1  ;;  %v2071_v47 = vpop.f32.mrb[23].mxu0 }
 0x530   : > { %v2157_v34 = vadd.f32 %v2156_v4, %v2140_v0  ;;  %v2142_v13 = vmul.f32 %v2071_v47, %v5226_v62 }
 0x531   : > { %v2164_v29 = vrot.slane %v2163_v20, 2  ;;  %v2174_v23 = vrot.slane %v2143_v63, 4 }
 0x532   : > { %v2158_v31 = vrot.slane %v2157_v34, 2  ;;  %v2168_v57 = vrot.slane %v2142_v13, 4  ;;  %v3910_v8 = vpop.f32.mrb[24].mxu0 }
 0x533   : > { %v2165_v44 = vadd.f32 %v2164_v29, %v2163_v20  ;;  %v2175_v59 = vadd.f32 %v2174_v23, %v2143_v63  ;;  %v2145_v9 = vmul.f32 %v3910_v8, %v5275_v38  ;;  %v2081_v56 = vpop.f32.mrb[25].mxu0 }
 0x534   : > { %v2159_v11 = vadd.f32 %v2158_v31, %v2157_v34  ;;  %v2169_v54 = vadd.f32 %v2168_v57, %v2142_v13  ;;  %v2144_v45 = vmul.f32 %v2081_v56, %v5270_v35 }
 0x535   : > { %v2166_v5 = vrot.slane %v2165_v44, 1  ;;  %v2176_v1 = vrot.slane %v2175_v59, 2  ;;  %v2186_v7 = vrot.slane %v2145_v9, 4 }
 0x536   : > { %v2160_v36 = vrot.slane %v2159_v11, 1  ;;  %v2170_v62 = vrot.slane %v2169_v54, 2  ;;  %v2180_v61 = vrot.slane %v2144_v45, 4  ;;  %v3913_v17 = vpop.f32.mrb[26].mxu0 }
 0x537   : > { %v2167_v33 = vadd.f32 %v2166_v5, %v2165_v44  ;;  %v2177_v39 = vadd.f32 %v2176_v1, %v2175_v59  ;;  %v2187_v26 = vadd.f32 %v2186_v7, %v2145_v9  ;;  %v2147_v43 = vmul.f32 %v3913_v17, %v5291_v49  ;;  %v2091_v38 = vpop.f32.mrb[27].mxu0 }
 0x538   : > { %v2161_v12 = vadd.f32 %v2160_v36, %v2159_v11  ;;  %v2171_v32 = vadd.f32 %v2170_v62, %v2169_v54  ;;  %v2181_v2 = vadd.f32 %v2180_v61, %v2144_v45  ;;  %v2146_v35 = vmul.f32 %v2091_v38, %v5280_v41 }
 0x539   : > { %v2253_v52 = vpack.c.bf16 %v2167_v33, %v2167_v33  ;;  %v2178_v30 = vrot.slane %v2177_v39, 1  ;;  %v2188_v16 = vrot.slane %v2187_v26, 2  ;;  %v2198_v51 = vrot.slane %v2147_v43, 4 }
 0x53a   : > { %v2252_v55 = vpack.c.bf16 %v2161_v12, %v2161_v12  ;;  %v2172_v3 = vrot.slane %v2171_v32, 1  ;;  %v2182_v10 = vrot.slane %v2181_v2, 2  ;;  %v2192_v18 = vrot.slane %v2146_v35, 4  ;;  %v3916_v53 = vpop.f32.mrb[28].mxu0 }
 0x53b   : > { %v2307_v58 = vunpack.c.l.b16 %v2253_v52  ;;  %v2179_v40 = vadd.f32 %v2178_v30, %v2177_v39  ;;  %v2189_v37 = vadd.f32 %v2188_v16, %v2187_v26  ;;  %v2199_v49 = vadd.f32 %v2198_v51, %v2147_v43  ;;  %v2101_v46 = vpop.f32.mrb[29].mxu0 }
 0x53c   : > { %v2306_v60 = vunpack.c.l.b16 %v2252_v55  ;;  %v2173_v6 = vadd.f32 %v2172_v3, %v2171_v32  ;;  %v2183_v0 = vadd.f32 %v2182_v10, %v2181_v2  ;;  %v2193_v48 = vadd.f32 %v2192_v18, %v2146_v35 }
 0x53d   : > { %v2255_v41 = vpack.c.bf16 %v2179_v40, %v2179_v40  ;;  %v2190_v4 = vrot.slane %v2189_v37, 1  ;;  %v2200_v42 = vrot.slane %v2199_v49, 2  ;;  %v2149_v20 = vmul.f32 %v3916_v53, %v5309_v15 }
 0x53e   : > { %v2323_v63 = vsel %vm2322_vm3, %v2307_v58, %v2306_v60  ;;  %v2254_v47 = vpack.c.bf16 %v2173_v6, %v2173_v6  ;;  %v2184_v34 = vrot.slane %v2183_v0, 1  ;;  %v2194_v13 = vrot.slane %v2193_v48, 2 }
 0x53f   : > { %v3919_v29 = vpop.f32.mrb[30].mxu0  ;;  %v2309_v23 = vunpack.c.l.b16 %v2255_v41  ;;  %v2191_v31 = vadd.f32 %v2190_v4, %v2189_v37  ;;  %v2201_v57 = vadd.f32 %v2200_v42, %v2199_v49  ;;  %v2210_v8 = vrot.slane %v2149_v20, 4 }
 0x540   : > { %v2111_v44 = vpop.f32.mrb[31].mxu0  ;;  %v2308_v59 = vunpack.c.l.b16 %v2254_v47  ;;  %v2185_v9 = vadd.f32 %v2184_v34, %v2183_v0  ;;  %v2195_v56 = vadd.f32 %v2194_v13, %v2193_v48  ;;  %v2148_v11 = vmul.f32 %v2101_v46, %v5306_v14 }
 0x541   : > { %v2257_v54 = vpack.c.bf16 %v2191_v31, %v2191_v31  ;;  %v2202_v45 = vrot.slane %v2201_v57, 1  ;;  %v2211_v5 = vadd.f32 %v2210_v8, %v2149_v20  ;;  %v2151_v15 = vmul.f32 %v3919_v29, %v5315_v21 }
 0x542   : > { %v2325_v1 = vsel %vm2324_vm4, %v2308_v59, %v2323_v63  ;;  %v2256_v7 = vpack.c.bf16 %v2185_v9, %v2185_v9  ;;  %v2196_v36 = vrot.slane %v2195_v56, 1  ;;  %v2204_v62 = vrot.slane %v2148_v11, 4 }
 0x543   : > { %v2327_v61 = vsel %vm2326_vm5, %v2309_v23, %v2325_v1  ;;  %v2203_v17 = vadd.f32 %v2202_v45, %v2201_v57  ;;  %v2212_v33 = vrot.slane %v2211_v5, 2  ;;  %v2222_v38 = vrot.slane %v2151_v15, 4 }
 0x544   : > { %v2310_v39 = vunpack.c.l.b16 %v2256_v7  ;;  %v2197_v26 = vadd.f32 %v2196_v36, %v2195_v56  ;;  %v2205_v43 = vadd.f32 %v2204_v62, %v2148_v11  ;;  %v2311_v14 = vunpack.c.l.b16 %v2257_v54 }
 0x545   : > { %v2259_v12 = vpack.c.bf16 %v2203_v17, %v2203_v17  ;;  %v2213_v32 = vadd.f32 %v2212_v33, %v2211_v5  ;;  %v2150_v2 = vmul.f32 %v2111_v44, %v5312_v19  ;;  %v2223_v30 = vadd.f32 %v2222_v38, %v2151_v15 }
 0x546   : > { %v2329_v21 = vsel %vm2328_vm6, %v2310_v39, %v2327_v61  ;;  %v2258_v35 = vpack.c.bf16 %v2197_v26, %v2197_v26  ;;  %v2206_v52 = vrot.slane %v2205_v43, 2 }
 0x547   : > { %v2331_v16 = vsel %vm2330_vm7, %v2311_v14, %v2329_v21  ;;  %v2214_v51 = vrot.slane %v2213_v32, 1  ;;  %v2216_v55 = vrot.slane %v2150_v2, 4  ;;  %v2224_v18 = vrot.slane %v2223_v30, 2 }
 0x548   : > { %v2312_v3 = vunpack.c.l.b16 %v2258_v35  ;;  %v2207_v10 = vadd.f32 %v2206_v52, %v2205_v43  ;;  %v2313_v53 = vunpack.c.l.b16 %v2259_v12 }
 0x549   : > { %v2215_v58 = vadd.f32 %v2214_v51, %v2213_v32  ;;  %v2217_v40 = vadd.f32 %v2216_v55, %v2150_v2  ;;  %v2225_v49 = vadd.f32 %v2224_v18, %v2223_v30 }
 0x54a   : > { %v2333_v37 = vsel %vm2332_vm8, %v2312_v3, %v2331_v16  ;;  %v2208_v19 = vrot.slane %v2207_v10, 1 }
 0x54b   : > { %v2261_v46 = vpack.c.bf16 %v2215_v58, %v2215_v58  ;;  %v2218_v60 = vrot.slane %v2217_v40, 2  ;;  %v2335_v6 = vsel %vm2334_vm9, %v2313_v53, %v2333_v37  ;;  %v2226_v48 = vrot.slane %v2225_v49, 1 }
 0x54c   : > { %v2209_v0 = vadd.f32 %v2208_v19, %v2207_v10 }
 0x54d   : > { %v2219_v41 = vadd.f32 %v2218_v60, %v2217_v40  ;;  %v2315_v4 = vunpack.c.l.b16 %v2261_v46  ;;  %v2227_v20 = vadd.f32 %v2226_v48, %v2225_v49 }
 0x54e   : > { %v2260_v42 = vpack.c.bf16 %v2209_v0, %v2209_v0  ;;  %v3606_v0 = vld [vmem:[%s2284_s12] ss:$0 sm:$0xff] }
 0x54f   : > { %v3922_v63 = vpop.f32.mrb[32].mxu0  ;;  %v2220_v47 = vrot.slane %v2219_v41, 1  ;;  %v2263_v44 = vpack.c.bf16 %v2227_v20, %v2227_v20  ;;  %v4381_v20 = vld [vmem:[#allocation2] sm:$0xff] }
 0x550   : > { %v2153_v34 = vmul.f32 %v3922_v63, %v5321_v24  ;;  %v2121_v13 = vpop.f32.mrb[33].mxu0  ;;  %v2314_v29 = vunpack.c.l.b16 %v2260_v42 }
 0x551   : > { %v2152_v23 = vmul.f32 %v2121_v13, %v5318_v22  ;;  %v2221_v31 = vadd.f32 %v2220_v47, %v2219_v41  ;;  %v2317_v36 = vunpack.c.l.b16 %v2263_v44  ;;  %v4382_v47 = vld [vmem:[#allocation2 + $0x8] sm:$0xff]  ;;  %v4213_v13 = vld [vmem:[%s5112_s19] ss:$16 sps:$4 sm:$0xff]  }
 0x552   : > { %v2234_v57 = vrot.slane %v2153_v34, 4  ;;  %v2336_v8 = vsel %vm2322_vm3, %v2315_v4, %v2314_v29  ;;  %v4215_v29 = vld [vmem:[%s5112_s19 + $0x4] ss:$16 sps:$4 sm:$0xff]   ;;  %v4219_v44 = vld [vmem:[%s5112_s19 + $0x20] ss:$16 sps:$4 sm:$0xff]  }
 0x553   : > { %v2228_v59 = vrot.slane %v2152_v23, 4  ;;  %v3925_v9 = vpop.f32.mrb[34].mxu0  ;;  %v2262_v56 = vpack.c.bf16 %v2221_v31, %v2221_v31  ;;  %v4218_v31 = vld [vmem:[%s5112_s19 + $0xc] ss:$16 sps:$4 sm:$0xff]   ;;  %2699 = vmatprep.subr.bf16.mxu0 %v4215_v29 }
 0x554   : > { %v2235_v11 = vadd.f32 %v2234_v57, %v2153_v34  ;;  %v2155_v54 = vmul.f32 %v3925_v9, %v5327_v27  ;;  %v2131_v45 = vpop.f32.mrb[35].mxu0  ;;  %v4221_v57 = vld [vmem:[%s5112_s19 + $0x24] ss:$16 sps:$4 sm:$0xff]   ;;  %2700 = vmatpush1.bf16.msra.mxu0 %v4213_v13  ;;  %2742 = vmatprep.subr.bf16.mxu1 %v4218_v31  ;;  %v4265_v13 = vld [vmem:[%s5114_s17 + $0x48] sm:$0xff]  }
 0x555   : > { %v2229_v5 = vadd.f32 %v2228_v59, %v2152_v23  ;;  %v2154_v15 = vmul.f32 %v2131_v45, %v5324_v25  ;;  %v2316_v24 = vunpack.c.l.b16 %v2262_v56  ;;  %v4216_v23 = vld [vmem:[%s5112_s19 + $0x8] ss:$16 sps:$4 sm:$0xff]   ;;  %2701 = vmatprep.subr.bf16.mxu0 %v4221_v57  ;;  %v4269_v57 = vld [vmem:[%s5114_s17 + $0x50] sm:$0xff]  }
 0x556   : > { %v2236_v1 = vrot.slane %v2235_v11, 2  ;;  %v2246_v7 = vrot.slane %v2155_v54, 4  ;;  %v4222_v59 = vld [vmem:[%s5112_s19 + $0x28] ss:$16 sps:$4 sm:$0xff]  }
 0x557   : > { %v2230_v22 = vrot.slane %v2229_v5, 2  ;;  %v2240_v62 = vrot.slane %v2154_v15, 4  ;;  %v2337_v61 = vsel %vm2324_vm4, %v2316_v24, %v2336_v8  ;;  %v4224_v8 = vld [vmem:[%s5112_s19 + $0x2c] ss:$16 sps:$4 sm:$0xff]  }
 0x558   : > { %v2237_v17 = vadd.f32 %v2236_v1, %v2235_v11  ;;  %v2247_v33 = vadd.f32 %v2246_v7, %v2155_v54  ;;  %v2338_v26 = vsel %vm2326_vm5, %v2317_v36, %v2337_v61  ;;  %2702 = vmatpush1.bf16.msra.mxu0 %v4219_v44  ;;  %v4227_v1 = vld [vmem:[%s5112_s19 + $0x44] ss:$16 sps:$4 sm:$0xff]   ;;  %v4230_v7 = vld [vmem:[%s5112_s19 + $0x4c] ss:$16 sps:$4 sm:$0xff]   ;;  %v4225_v36 = vld [vmem:[%s5112_s19 + $0x40] ss:$16 sps:$4 sm:$0xff]  }
 0x559   : > { %v2231_v39 = vadd.f32 %v2230_v22, %v2229_v5  ;;  %v2241_v43 = vadd.f32 %v2240_v62, %v2154_v15  ;;  %v4228_v22 = vld [vmem:[%s5112_s19 + $0x48] ss:$16 sps:$4 sm:$0xff]   ;;  %2703 = vmatprep.subr.bf16.mxu0 %v4227_v1  ;;  %v4233_v62 = vld [vmem:[%s5112_s19 + $0x64] ss:$16 sps:$4 sm:$0xff]   ;;  %v4236_v61 = vld [vmem:[%s5112_s19 + $0x6c] ss:$16 sps:$4 sm:$0xff]  }
 0x55a   : > { %v2238_v38 = vrot.slane %v2237_v17, 1  ;;  %v2248_v27 = vrot.slane %v2247_v33, 2  ;;  %v4266_v29 = vld [vmem:[%s5114_s17 + $0xc8] sm:$0xff]   ;;  %v4271_v44 = vld [vmem:[%s5114_s17 + $0x10] sm:$0xff]  }
 0x55b   : > { %v2232_v14 = vrot.slane %v2231_v39, 1  ;;  %v2242_v12 = vrot.slane %v2241_v43, 2  ;;  %v4268_v31 = vld [vmem:[%s5114_s17 + $0x88] sm:$0xff]  }
 0x55c   : > { %v2239_v32 = vadd.f32 %v2238_v38, %v2237_v17  ;;  %v2249_v25 = vadd.f32 %v2248_v27, %v2247_v33  ;;  %2704 = vmatpush1.bf16.msra.mxu0 %v4225_v36  ;;  %v4231_v17 = vld [vmem:[%s5112_s19 + $0x60] ss:$16 sps:$4 sm:$0xff]   ;;  %v4234_v33 = vld [vmem:[%s5112_s19 + $0x68] ss:$16 sps:$4 sm:$0xff]   ;;  %v4245_v27 = vld [vmem:[%s5112_s19 + $0xa4] ss:$16 sps:$4 sm:$0xff]  }
 0x55d   : > { %v2233_v2 = vadd.f32 %v2232_v14, %v2231_v39  ;;  %v2243_v21 = vadd.f32 %v2242_v12, %v2241_v43  ;;  %2705 = vmatprep.subr.bf16.mxu0 %v4233_v62  ;;  %v4239_v39 = vld [vmem:[%s5112_s19 + $0x84] ss:$16 sps:$4 sm:$0xff]   ;;  %v4237_v43 = vld [vmem:[%s5112_s19 + $0x80] ss:$16 sps:$4 sm:$0xff]   ;;  %v4240_v38 = vld [vmem:[%s5112_s19 + $0x88] ss:$16 sps:$4 sm:$0xff]  }
 0x55e   : > { %v2265_v35 = vpack.c.bf16 %v2239_v32, %v2239_v32  ;;  %v2250_v52 = vrot.slane %v2249_v25, 1  ;;  %v4248_v14 = vld [vmem:[%s5112_s19 + $0xac] ss:$16 sps:$4 sm:$0xff]   ;;  %v4243_v12 = vld [vmem:[%s5112_s19 + $0xa0] ss:$16 sps:$4 sm:$0xff]  }
 0x55f   : > { %v2264_v30 = vpack.c.bf16 %v2233_v2, %v2233_v2  ;;  %v2244_v16 = vrot.slane %v2243_v21, 1  ;;  %v4246_v32 = vld [vmem:[%s5112_s19 + $0xa8] ss:$16 sps:$4 sm:$0xff]   ;;  %v4254_v2 = vld [vmem:[%s5112_s19 + $0xcc] ss:$16 sps:$4 sm:$0xff]   ;;  %v4285_v62 = vld [vmem:[%s5114_s17 + $0x70] sm:$0xff]  }
 0x560   : > { %v2251_v51 = vadd.f32 %v2250_v52, %v2249_v25  ;;  %v2319_v10 = vunpack.c.l.b16 %v2265_v35  ;;  %2706 = vmatpush1.bf16.msra.mxu0 %v4231_v17  ;;  %v4251_v25 = vld [vmem:[%s5112_s19 + $0xc4] ss:$16 sps:$4 sm:$0xff]   ;;  %v4252_v35 = vld [vmem:[%s5112_s19 + $0xc8] ss:$16 sps:$4 sm:$0xff]   ;;  %v4255_v52 = vld [vmem:[%s5112_s19 + $0xe0] ss:$16 sps:$4 sm:$0xff]  }
 0x561   : > { %v2318_v55 = vunpack.c.l.b16 %v2264_v30  ;;  %v2245_v3 = vadd.f32 %v2244_v16, %v2243_v21  ;;  %2707 = vmatprep.subr.bf16.mxu0 %v4239_v39  ;;  %v4249_v21 = vld [vmem:[%s5112_s19 + $0xc0] ss:$16 sps:$4 sm:$0xff]   ;;  %v4257_v30 = vld [vmem:[%s5112_s19 + $0xe4] ss:$16 sps:$4 sm:$0xff]   ;;  %v4258_v16 = vld [vmem:[%s5112_s19 + $0xe8] ss:$16 sps:$4 sm:$0xff]  }
 0x562   : > { %v2267_v18 = vpack.c.bf16 %v2251_v51, %v2251_v51  ;;  %v4260_v51 = vld [vmem:[%s5112_s19 + $0xec] ss:$16 sps:$4 sm:$0xff]   ;;  %v4287_v17 = vld [vmem:[%s5114_s17 + $0x30] sm:$0xff]  }
 0x563   : > { %v2339_v53 = vsel %vm2328_vm6, %v2318_v55, %v2338_v26  ;;  %v2266_v58 = vpack.c.bf16 %v2245_v3, %v2245_v3  ;;  %v4242_v26 = vld [vmem:[%s5112_s19 + $0x8c] ss:$16 sps:$4 sm:$0xff]  }
 0x564   : > { %v2340_v40 = vsel %vm2330_vm7, %v2319_v10, %v2339_v53  ;;  %v2321_v19 = vunpack.c.l.b16 %v2267_v18  ;;  %2708 = vmatpush1.bf16.msra.mxu0 %v4237_v43  ;;  %v4281_v1 = vld [vmem:[%s5114_s17 + $0x68] sm:$0xff]   ;;  %v4289_v39 = vld [vmem:[%s5114_s17 + $0x78] sm:$0xff]  }
 0x565   : > { %v2320_v37 = vunpack.c.l.b16 %v2266_v58  ;;  %2709 = vmatprep.subr.bf16.mxu0 %v4245_v27  ;;  %v4283_v36 = vld [vmem:[%s5114_s17 + $0x28] sm:$0xff]   ;;  %v4291_v43 = vld [vmem:[%s5114_s17 + $0x38] sm:$0xff]   ;;  %v2529_v27 = vsub.s32 2, %v5200_v50 }
 0x567   : > { %v2341_v49 = vsel %vm2332_vm8, %v2320_v37, %v2340_v40  ;;  %v3615_v37 = vld [vmem:[%s2438_s28] ss:$0 sm:$0xff] }
 0x568   : > { %v2342_v46 = vsel %vm2334_vm9, %v2321_v19, %v2341_v49  ;;  %2710 = vmatpush1.bf16.msra.mxu0 %v4243_v12  ;;  %v2533_v12 = vsub.s32 3, %v5200_v50 }
 0x569   : > { %v2343_v60 = vpack.c.b16 %v2342_v46, %v2335_v6  ;;  %2711 = vmatprep.subr.bf16.mxu0 %v4251_v25 }
 0x56b   : > { %3943 = vmatmul.mubr.bf16.vlgmr.msra.gmra.mrb[32].mxu1 %v2343_v60 }
 0x56c   : > { %2774 = vmatprep.mubr.bf16.mxu1 %v5916_v28  ;;  %2743 = vmatpush1.bf16.msra.mxu1 %v4216_v23  ;;  %v4267_v23 = vld [vmem:[%s5114_s17 + $0x8] sm:$0xff]  }
 0x56d   : > { %2744 = vmatprep.subr.bf16.mxu1 %v4224_v8  ;;  %2712 = vmatpush1.bf16.msra.mxu0 %v4249_v21  ;;  %v4270_v8 = vld [vmem:[%s5114_s17 + $0xd0] sm:$0xff]   ;;  %v5922_v21 = vsub.s32 1, %v5200_v50 }
 0x56e   : > { %2713 = vmatprep.subr.bf16.mxu0 %v4257_v30 }
 0x570   : > { %2745 = vmatpush1.bf16.msra.mxu1 %v4222_v59  ;;  %v4272_v59 = vld [vmem:[%s5114_s17 + $0x90] sm:$0xff]  }
 0x571   : > { %2746 = vmatprep.subr.bf16.mxu1 %v4230_v7  ;;  %2714 = vmatpush1.bf16.msra.mxu0 %v4255_v52  ;;  %v4282_v7 = vld [vmem:[%s5114_s17 + $0xe8] sm:$0xff]  }
 0x574   : > { %2747 = vmatpush1.bf16.msra.mxu1 %v4228_v22  ;;  %v4284_v22 = vld [vmem:[%s5114_s17 + $0xa8] sm:$0xff]  }
 0x575   : > { %2748 = vmatprep.subr.bf16.mxu1 %v4236_v61  ;;  %v4286_v61 = vld [vmem:[%s5114_s17 + $0xf0] sm:$0xff]  }
 0x578   : > { %2749 = vmatpush1.bf16.msra.mxu1 %v4234_v33  ;;  %v4288_v33 = vld [vmem:[%s5114_s17 + $0xb0] sm:$0xff]  }
 0x579   : > { %2750 = vmatprep.subr.bf16.mxu1 %v4242_v26  ;;  %v4290_v26 = vld [vmem:[%s5114_s17 + $0xf8] sm:$0xff]  }
 0x57c   : > { %2751 = vmatpush1.bf16.msra.mxu1 %v4240_v38  ;;  %v4292_v38 = vld [vmem:[%s5114_s17 + $0xb8] sm:$0xff]  }
 0x57d   : > { %2752 = vmatprep.subr.bf16.mxu1 %v4248_v14  ;;  %v2484_v14 = vld [vmem:[%s5131_s9] sm:$0xf] }
 0x57e   : > { %v2534_v52 = vrot.slane %v2484_v14, %v2533_v12 }
 0x580   : > { %2753 = vmatpush1.bf16.msra.mxu1 %v4246_v32  ;;  %v5921_v32 = vld [vmem:[#allocation28_spill] sm:$0xff] }
 0x581   : > { %2754 = vmatprep.subr.bf16.mxu1 %v4254_v2  ;;  %v2522_v25 = vrot.slane %v2484_v14, %v5921_v32  ;;  %v2530_v2 = vrot.slane %v2484_v14, %v2529_v27 }
 0x584   : > { %2755 = vmatpush1.bf16.msra.mxu1 %v4252_v35  ;;  %v2526_v35 = vrot.slane %v2484_v14, %v5922_v21 }
 0x585   : > { %2756 = vmatprep.subr.bf16.mxu1 %v4260_v51 }
 0x588   : > { %2757 = vmatpush1.bf16.msra.mxu1 %v4258_v16 }
 0x63e   : > { %v2427_v48 = vpop.f32.mrb[32].mxu1 }
 0x63f   : > { %v2428_v41 = vadd.f32 %v3606_v0, %v2427_v48  ;;  %v3944_v4 = vpop.f32.mrb[33].mxu1 }
 0x640   : > { %v2430_v42 = vpop.f32.mrb[34].mxu1 }
 0x641   : > { %v5589_v6 = vadd.f32 %v4381_v20, %v2428_v41  ;;  %v2431_v63 = vadd.f32 %v3606_v0, %v2430_v42  ;;  %v3945_v28 = vpop.f32.mrb[35].mxu1  ;;  %v3616_v0 = vld [vmem:[%s2440_s23] ss:$0 sm:$0xff]  ;;  %v4261_v20 = vld [vmem:[%s5114_s17 + $0x40] sm:$0xff]  }
 0x642   : > { %v4263_v28 = vld [vmem:[%s5114_s17] sm:$0xff]   ;;  %3762 = vmatprep.subr.bf16.mxu0 %v4261_v20 }
 0x643   : > { %v5591_v34 = vadd.f32 %v4382_v47, %v2431_v63  ;;  %2442 = vadd.xlane.f32.xlu0 %v5589_v6  ;;  %v4262_v63 = vld [vmem:[%s5114_s17 + $0xc0] sm:$0xff]  }
 0x644   : > { %v4264_v47 = vld [vmem:[%s5114_s17 + $0x80] sm:$0xff]   ;;  %3784 = vmatprep.subr.bf16.mxu1 %v4262_v63 }
 0x645   : > { %2444 = vadd.xlane.f32.xlu1 %v5591_v34 }
 0x6d0   : > { %v2443_v9 = vpop.xlane.xlu0 %2442 }
 0x6d1   : > { %v2446_v56 = vmul.f32 0.0078125, %v2443_v9  ;;  %v4273_v9 = vld [vmem:[%s5114_s17 + $0x58] sm:$0xff]  }
 0x6d2   : > { %v2445_v11 = vpop.xlane.xlu1 %2444 }
 0x6d3   : > { %v5604_v54 = vsub.f32 %v5589_v6, %v2446_v56  ;;  %v2447_v45 = vmul.f32 0.0078125, %v2445_v11  ;;  %v4274_v56 = vld [vmem:[%s5114_s17 + $0xd8] sm:$0xff]  }
 0x6d4   : > { %v4275_v11 = vld [vmem:[%s5114_s17 + $0x18] sm:$0xff]  }
 0x6d5   : > { %v5607_v5 = vsub.f32 %v5591_v34, %v2447_v45  ;;  %v2450_v15 = vmul.f32 %v5604_v54, %v5604_v54  ;;  %v4277_v45 = vld [vmem:[%s5114_s17 + $0x60] sm:$0xff]  }
 0x6d7   : > { %2452 = vadd.xlane.f32.xlu0 %v2450_v15  ;;  %v2451_v24 = vmul.f32 %v5607_v5, %v5607_v5  ;;  %v4279_v15 = vld [vmem:[%s5114_s17 + $0x20] sm:$0xff]  }
 0x6d9   : > { %2454 = vadd.xlane.f32.xlu1 %v2451_v24  ;;  %v4280_v24 = vld [vmem:[%s5114_s17 + $0xa0] sm:$0xff]  }
 0x764   : > { %v2453_v55 = vpop.xlane.xlu0 %2452 }
 0x765   : > { %v2456_v3 = vmul.f32 0.0078125, %v2453_v55 }
 0x766   : > { %v2455_v10 = vpop.xlane.xlu1 %2454 }
 0x767   : > { %v2458_v18 = vadd.f32 1e-05, %v2456_v3  ;;  %v2457_v53 = vmul.f32 0.0078125, %v2455_v10 }
 0x769   : > { %4361 = vrsqrt.f32 %v2458_v18  ;;  %v2459_v58 = vadd.f32 1e-05, %v2457_v53 }
 0x76b   : > { %4363 = vrsqrt.f32 %v2459_v58 }
 0x773   : > { %v4362_v40 = vpop.eup %4361 }
 0x774   : > { %v2462_v19 = vmul.f32 %v4362_v40, %v5604_v54  ;;  %v4276_v54 = vld [vmem:[%s5114_s17 + $0x98] sm:$0xff]  }
 0x775   : > { %v4364_v49 = vpop.eup %4363 }
 0x776   : > { %v2468_v46 = vmul.f32 %v3615_v37, %v2462_v19  ;;  %v2463_v60 = vmul.f32 %v4364_v49, %v5607_v5  ;;  %v4278_v5 = vld [vmem:[%s5114_s17 + $0xe0] sm:$0xff]  }
 0x778   : > { %v2469_v48 = vmul.f32 %v3615_v37, %v2463_v60  ;;  %v2474_v41 = vadd.f32 %v3616_v0, %v2468_v46 }
 0x77a   : > { %v2475_v4 = vadd.f32 %v3616_v0, %v2469_v48 }
 0x77c   : > { %v2485_v42 = vpack.c.bf16 %v2475_v4, %v2474_v41 }
 0x77e   : > { %2732 = vmatmul.mubr.bf16.vlgmr.msra.gmra.mrb[36].mxu0 %v2485_v42  ;;  %2775 = vmatmul.mubr.bf16.vlgmr.msra.gmra.mrb[36].mxu1 %v2485_v42 }
 0x77f   : > { %3763 = vmatpush3.bf16.msra.mxu0 %v4263_v28  ;;  %3785 = vmatpush3.bf16.msra.mxu1 %v4264_v47 }
 0x780   : > { %3764 = vmatprep.subr.bf16.mxu0 %v4265_v13  ;;  %3786 = vmatprep.subr.bf16.mxu1 %v4266_v29 }
 0x783   : > { %3765 = vmatpush3.bf16.msra.mxu0 %v4267_v23  ;;  %3787 = vmatpush3.bf16.msra.mxu1 %v4268_v31 }
 0x784   : > { %3766 = vmatprep.subr.bf16.mxu0 %v4269_v57  ;;  %3788 = vmatprep.subr.bf16.mxu1 %v4270_v8 }
 0x787   : > { %3767 = vmatpush3.bf16.msra.mxu0 %v4271_v44  ;;  %3789 = vmatpush3.bf16.msra.mxu1 %v4272_v59 }
 0x788   : > { %3768 = vmatprep.subr.bf16.mxu0 %v4273_v9  ;;  %3790 = vmatprep.subr.bf16.mxu1 %v4274_v56 }
 0x78b   : > { %3769 = vmatpush3.bf16.msra.mxu0 %v4275_v11  ;;  %3791 = vmatpush3.bf16.msra.mxu1 %v4276_v54 }
 0x78c   : > { %3770 = vmatprep.subr.bf16.mxu0 %v4277_v45  ;;  %3792 = vmatprep.subr.bf16.mxu1 %v4278_v5 }
 0x78f   : > { %3771 = vmatpush3.bf16.msra.mxu0 %v4279_v15  ;;  %3793 = vmatpush3.bf16.msra.mxu1 %v4280_v24 }
 0x790   : > { %3772 = vmatprep.subr.bf16.mxu0 %v4281_v1  ;;  %3794 = vmatprep.subr.bf16.mxu1 %v4282_v7 }
 0x793   : > { %3773 = vmatpush3.bf16.msra.mxu0 %v4283_v36  ;;  %3795 = vmatpush3.bf16.msra.mxu1 %v4284_v22 }
 0x794   : > { %3774 = vmatprep.subr.bf16.mxu0 %v4285_v62  ;;  %3796 = vmatprep.subr.bf16.mxu1 %v4286_v61 }
 0x797   : > { %3775 = vmatpush3.bf16.msra.mxu0 %v4287_v17  ;;  %3797 = vmatpush3.bf16.msra.mxu1 %v4288_v33 }
 0x798   : > { %3776 = vmatprep.subr.bf16.mxu0 %v4289_v39  ;;  %3798 = vmatprep.subr.bf16.mxu1 %v4290_v26 }
 0x79b   : > { %3777 = vmatpush3.bf16.msra.mxu0 %v4291_v43  ;;  %3799 = vmatpush3.bf16.msra.mxu1 %v4292_v38 }
 0x851   : > { %v2733_v30 = vpop.f32.mrb[36].mxu0  ;;  %v2776_v16 = vpop.f32.mrb[36].mxu1 }
 0x852   : > { %v5685_v51 = vadd.f32 %v2733_v30, %v2522_v25  ;;  %v5687_v55 = vadd.f32 %v2776_v16, %v2530_v2  ;;  %v2735_v3 = vpop.f32.mrb[37].mxu0  ;;  %v2778_v10 = vpop.f32.mrb[37].mxu1 }
 0x853   : > { %v5689_v18 = vadd.f32 %v2735_v3, %v2526_v35  ;;  %v5691_v53 = vadd.f32 %v2778_v10, %v2534_v52  ;;  %v2737_v58 = vpop.f32.mrb[38].mxu0  ;;  %v2780_v40 = vpop.f32.mrb[38].mxu1 }
 0x854   : > { %v2785_v37 = vmul.f32 %v5685_v51, %v5685_v51  ;;  %v2787_v50 = vmul.f32 %v5687_v55, %v5687_v55  ;;  %v5697_v19 = vadd.f32 %v2737_v58, %v2522_v25  ;;  %v5699_v49 = vadd.f32 %v2780_v40, %v2530_v2  ;;  %v2739_v46 = vpop.f32.mrb[39].mxu0  ;;  %v2782_v60 = vpop.f32.mrb[39].mxu1 }
 0x855   : > { %v2786_v0 = vmul.f32 %v5689_v18, %v5689_v18  ;;  %v2788_v48 = vmul.f32 %v5691_v53, %v5691_v53  ;;  %v5705_v41 = vadd.f32 %v2739_v46, %v2526_v35  ;;  %v5707_v4 = vadd.f32 %v2782_v60, %v2534_v52 }
 0x856   : > { %v2793_v42 = vmul.f32 %v2785_v37, %v5685_v51  ;;  %v2795_v20 = vmul.f32 %v2787_v50, %v5687_v55  ;;  %v2789_v63 = vmul.f32 %v5697_v19, %v5697_v19  ;;  %v2791_v28 = vmul.f32 %v5699_v49, %v5699_v49 }
 0x857   : > { %v2794_v47 = vmul.f32 %v2786_v0, %v5689_v18  ;;  %v2796_v13 = vmul.f32 %v2788_v48, %v5691_v53  ;;  %v2790_v29 = vmul.f32 %v5705_v41, %v5705_v41  ;;  %v2792_v23 = vmul.f32 %v5707_v4, %v5707_v4 }
 0x858   : > { %v2801_v31 = vmul.f32 0.044715, %v2793_v42  ;;  %v2803_v57 = vmul.f32 0.044715, %v2795_v20  ;;  %v2797_v8 = vmul.f32 %v2789_v63, %v5697_v19  ;;  %v2799_v44 = vmul.f32 %v2791_v28, %v5699_v49 }
 0x859   : > { %v2802_v59 = vmul.f32 0.044715, %v2794_v47  ;;  %v2804_v9 = vmul.f32 0.044715, %v2796_v13  ;;  %v2798_v56 = vmul.f32 %v2790_v29, %v5705_v41  ;;  %v2800_v11 = vmul.f32 %v2792_v23, %v5707_v4 }
 0x85a   : > { %v2809_v54 = vadd.f32 %v2801_v31, %v5685_v51  ;;  %v2811_v45 = vadd.f32 %v2803_v57, %v5687_v55  ;;  %v2805_v5 = vmul.f32 0.044715, %v2797_v8  ;;  %v2807_v15 = vmul.f32 0.044715, %v2799_v44 }
 0x85b   : > { %v2810_v24 = vadd.f32 %v2802_v59, %v5689_v18  ;;  %v2812_v1 = vadd.f32 %v2804_v9, %v5691_v53  ;;  %v2806_v7 = vmul.f32 0.044715, %v2798_v56  ;;  %v2808_v36 = vmul.f32 0.044715, %v2800_v11 }
 0x85c   : > { %v2817_v22 = vmul.f32 0.7978846, %v2809_v54  ;;  %v2819_v62 = vmul.f32 0.7978846, %v2811_v45  ;;  %v2813_v61 = vadd.f32 %v2805_v5, %v5697_v19  ;;  %v2815_v17 = vadd.f32 %v2807_v15, %v5699_v49 }
 0x85d   : > { %v2818_v33 = vmul.f32 0.7978846, %v2810_v24  ;;  %v2820_v39 = vmul.f32 0.7978846, %v2812_v1  ;;  %v2814_v26 = vadd.f32 %v2806_v7, %v5705_v41  ;;  %v2816_v43 = vadd.f32 %v2808_v36, %v5707_v4  ;;  %v3681_v36 = vld [vmem:[%s3214_s4] ss:$0 sm:$0xff] }
 0x85e   : > { %4365 = vtanh.f32 %v2817_v22  ;;  %v2821_v38 = vmul.f32 0.7978846, %v2813_v61  ;;  %v2823_v27 = vmul.f32 0.7978846, %v2815_v17 }
 0x85f   : > { %4367 = vtanh.f32 %v2819_v62  ;;  %v2822_v14 = vmul.f32 0.7978846, %v2814_v26  ;;  %v2824_v12 = vmul.f32 0.7978846, %v2816_v43  ;;  %v3232_v26 = vld [vmem:[#allocation14 + $0x8] sm:$0xff] (%p3224_p10)  ;;  %v3233_v43 = vld [vmem:[#allocation14 + $0x10] sm:$0xff] (%p3224_p10) }
 0x860   : > { %4369 = vtanh.f32 %v2818_v33 }
 0x861   : > { %4371 = vtanh.f32 %v2820_v39  ;;  %v3231_v39 = vld [vmem:[#allocation14] sm:$0xff] (%p3224_p10) }
 0x862   : > { %4373 = vtanh.f32 %v2821_v38  ;;  %v4013_v38 = vpack.c.bf16 (%p3224_p10), %v3232_v26, %v3231_v39 }
 0x863   : > { %4375 = vtanh.f32 %v2823_v27  ;;  %v3234_v27 = vld [vmem:[#allocation14 + $0x18] sm:$0xff] (%p3224_p10) }
 0x864   : > { %4377 = vtanh.f32 %v2822_v14  ;;  %v4017_v14 = vpack.c.bf16 (%p3224_p10), %v3234_v27, %v3233_v43  ;;  %4014 = vmatprep.subr.bf16.mxu0 (%p3224_p10), %v4013_v38 }
 0x865   : > { %4379 = vtanh.f32 %v2824_v12  ;;  %v3235_v12 = vld [vmem:[#allocation14 + $0x20] sm:$0xff] (%p3224_p10) }
 0x868   : > { %v4366_v32 = vpop.eup %4365 }
 0x869   : > { %v4368_v25 = vpop.eup %4367  ;;  %v2833_v2 = vadd.f32 1.0, %v4366_v32  ;;  %v3236_v32 = vld [vmem:[#allocation14 + $0x28] sm:$0xff] (%p3224_p10) }
 0x86a   : > { %v4370_v21 = vpop.eup %4369  ;;  %v2835_v35 = vadd.f32 1.0, %v4368_v25 }
 0x86b   : > { %v4372_v52 = vpop.eup %4371  ;;  %v2834_v30 = vadd.f32 1.0, %v4370_v21  ;;  %v2841_v58 = vmul.f32 0.5, %v2833_v2  ;;  %v3238_v2 = vld [vmem:[#allocation14 + $0x38] sm:$0xff] (%p3224_p10) }
 0x86c   : > { %v4374_v16 = vpop.eup %4373  ;;  %v2836_v3 = vadd.f32 1.0, %v4372_v52  ;;  %v2843_v50 = vmul.f32 0.5, %v2835_v35  ;;  %v3239_v35 = vld [vmem:[#allocation14 + $0x40] sm:$0xff] (%p3224_p10)  ;;  %v3240_v52 = vld [vmem:[#allocation14 + $0x48] sm:$0xff] (%p3224_p10) }
 0x86d   : > { %v4376_v10 = vpop.eup %4375  ;;  %v2837_v40 = vadd.f32 1.0, %v4374_v16  ;;  %v2842_v42 = vmul.f32 0.5, %v2834_v30  ;;  %v2849_v47 = vmul.f32 %v2841_v58, %v5685_v51  ;;  %v4029_v30 = vpack.c.bf16 (%p3224_p10), %v3240_v52, %v3239_v35  ;;  %v3241_v16 = vld [vmem:[#allocation14 + $0x50] sm:$0xff] (%p3224_p10)  ;;  %v3243_v58 = vld [vmem:[#allocation14 + $0x60] sm:$0xff] (%p3224_p10) }
 0x86e   : > { %v4378_v37 = vpop.eup %4377  ;;  %v2839_v46 = vadd.f32 1.0, %v4376_v10  ;;  %v2844_v28 = vmul.f32 0.5, %v2836_v3  ;;  %v2851_v23 = vmul.f32 %v2843_v50, %v5687_v55  ;;  %v3242_v3 = vld [vmem:[#allocation14 + $0x58] sm:$0xff] (%p3224_p10)  ;;  %v3245_v50 = vld [vmem:[#allocation14 + $0x70] sm:$0xff] (%p3224_p10) }
 0x86f   : > { %v4380_v60 = vpop.eup %4379  ;;  %v2845_v0 = vmul.f32 0.5, %v2837_v40  ;;  %v2838_v48 = vadd.f32 1.0, %v4378_v37  ;;  %v2850_v8 = vmul.f32 %v2842_v42, %v5689_v18  ;;  %v4033_v10 = vpack.c.bf16 (%p3224_p10), %v3242_v3, %v3241_v16  ;;  %v3244_v40 = vld [vmem:[#allocation14 + $0x68] sm:$0xff] (%p3224_p10) }
 0x870   : > { %v2847_v20 = vmul.f32 0.5, %v2839_v46  ;;  %v2840_v63 = vadd.f32 1.0, %v4380_v60  ;;  %v2852_v9 = vmul.f32 %v2844_v28, %v5691_v53  ;;  %v4037_v37 = vpack.c.bf16 (%p3224_p10), %v3244_v40, %v3243_v58  ;;  %v3246_v46 = vld [vmem:[#allocation14 + $0x78] sm:$0xff] (%p3224_p10) }
 0x871   : > { %v2853_v13 = vmul.f32 %v2845_v0, %v5697_v19  ;;  %v2846_v29 = vmul.f32 0.5, %v2838_v48  ;;  %v4041_v60 = vpack.c.bf16 (%p3224_p10), %v3246_v46, %v3245_v50 }
 0x872   : > { %v2855_v31 = vmul.f32 %v2847_v20, %v5699_v49  ;;  %v2848_v57 = vmul.f32 0.5, %v2840_v63 }
 0x873   : > { %v2854_v44 = vmul.f32 %v2846_v29, %v5705_v41  ;;  %v2859_v59 = vpack.c.bf16 %v2853_v13, %v2849_v47 }
 0x874   : > { %v2856_v56 = vmul.f32 %v2848_v57, %v5707_v4  ;;  %v2861_v51 = vpack.c.bf16 %v2855_v31, %v2851_v23 }
 0x875   : > { %v2860_v11 = vpack.c.bf16 %v2854_v44, %v2850_v8 }
 0x876   : > { %v2862_v19 = vpack.c.bf16 %v2856_v56, %v2852_v9 }
 0x877   : > { %3151 = vmatprep.mubr.bf16.mxu0 %v2860_v11 }
 0x878   : > { %3192 = vmatprep.mubr.bf16.mxu1 %v2862_v19  ;;  %3152 = vmatmul.mubr.bf16.vlgmr.msra.gmra.mrb[40].mxu0 %v2859_v59 }
 0x879   : > { %3193 = vmatmul.mubr.bf16.vlgmr.msra.gmra.mrb[40].mxu1 %v2861_v51  ;;  %4016 = vmatpush3.bf16.msra.mxu0 (%p3224_p10), %v4013_v38 }
 0x87a   : > { %4018 = vmatprep.subr.bf16.mxu0 (%p3224_p10), %v4017_v14 }
 0x87d   : > { %4020 = vmatpush3.bf16.msra.mxu0 (%p3224_p10), %v4017_v14 }
 0x94b   : > { %v3778_v55 = vpop.f32.mrb[40].mxu0 }
 0x94c   : > { %v3800_v49 = vpop.f32.mrb[40].mxu1  ;;  %v3779_v54 = vpop.f32.mrb[41].mxu0 }
 0x94d   : > { %v3780_v18 = vadd.f32 %v3779_v54, %v3778_v55  ;;  %v3801_v45 = vpop.f32.mrb[41].mxu1  ;;  %v3781_v41 = vpop.f32.mrb[42].mxu0 }
 0x94e   : > { %v3802_v5 = vadd.f32 %v3801_v45, %v3800_v49  ;;  %v3803_v53 = vpop.f32.mrb[42].mxu1  ;;  %v3782_v4 = vpop.f32.mrb[43].mxu0 }
 0x94f   : > { %v3783_v15 = vadd.f32 %v3782_v4, %v3781_v41  ;;  %v3804_v24 = vpop.f32.mrb[43].mxu1 }
 0x950   : > { %v3195_v1 = vadd.f32 %v3802_v5, %v3780_v18  ;;  %v3805_v7 = vadd.f32 %v3804_v24, %v3803_v53 }
 0x952   : > { %v3212_v22 = vadd.f32 %v3195_v1, %v5589_v6  ;;  %v3198_v62 = vadd.f32 %v3805_v7, %v3783_v15  ;;  %3228 = sbr.rel (!%p3224_p10) target bundleno = 2626 (0xa42), region = 140  ;;  %v4021_v6 = vpack.c.bf16 (%p3224_p10), %v3236_v32, %v3235_v12 }
 0x954   : > { %v3220_v61 = vadd.f32 %v3681_v36, %v3212_v22  ;;  %v3213_v17 = vadd.f32 %v3198_v62, %v5591_v34  ;;  %v3237_v34 = vld [vmem:[#allocation14 + $0x30] sm:$0xff] (%p3224_p10)  ;;  %4022 = vmatprep.subr.bf16.mxu0 (%p3224_p10), %v4021_v6 }
 0x955   : > { %v4025_v21 = vpack.c.bf16 (%p3224_p10), %v3238_v2, %v3237_v34  ;;  %4024 = vmatpush3.bf16.msra.mxu0 (%p3224_p10), %v4021_v6 }
 0x956   : > { %3222 = vst [vmem:[#allocation2] sm:$0xff] %v3220_v61  ;;  %v3221_v33 = vadd.f32 %v3681_v36, %v3213_v17 }
 0x957   : > { %4026 = vmatprep.subr.bf16.mxu0 (%p3224_p10), %v4025_v21 }
 0x958   : > { %3223 = vst [vmem:[#allocation2 + $0x8] sm:$0xff] %v3221_v33 }
 0x959   : > { %4028 = vmatpush3.bf16.msra.mxu0 %v4025_v21 }
 0x95a   : > { %4030 = vmatprep.subr.bf16.mxu0 %v4029_v30 }
 0x95d   : > { %v3229_v25 = vld [vmem:[#allocation2] sm:$0xff]  ;;  %4032 = vmatpush3.bf16.msra.mxu0 %v4029_v30 }
 0x95e   : > { %3978 = vmatprep.mubr.f32.mxu0 %v3229_v25  ;;  %4034 = vmatprep.subr.bf16.mxu0 %v4033_v10 }
 0x95f   : > { %v3230_v0 = vld [vmem:[#allocation2 + $0x8] sm:$0xff] }
 0x961   : > { %4036 = vmatpush3.bf16.msra.mxu0 %v4033_v10 }
 0x962   : > { %4038 = vmatprep.subr.bf16.mxu0 %v4037_v37 }
 0x965   : > { %4040 = vmatpush3.bf16.msra.mxu0 %v4037_v37 }
 0x966   : > { %4042 = vmatprep.subr.bf16.mxu0 %v4041_v60 }
 0x969   : > { %4044 = vmatpush3.bf16.msra.mxu0 %v4041_v60 }
 0x96c   : > { %3979 = vmatmul.mubr.f32.vlgmr.msra.gmra.mrb[0].mxu0 %v3230_v0 }
 0xa3f   : > { %v3980_v48 = vpop.f32.mrb[0].mxu0 }
 0xa40   : > { %3323 = vst [vmem:[#allocation15 + $0x8] sm:$0xff] %v3980_v48  ;;  %v3313_v42 = vpop.f32.mrb[1].mxu0 }
 0xa41   : > { %3322 = vst [vmem:[#allocation15] sm:$0xff] %v3313_v42 }
 0xa42 PF: > { %p4099_p6 = scmp.eq.s32.totalorder %s4830_s2, 1  ;;  %s4698_s0 = smov [#allocation15]  }
 0xa43   : > { %s3330_s14 = sshll.u32 %s4698_s0, 4  ;;  %s3331_s14 = int_to_ptr.vmem [resolvable:$true] %s3330_s14 }
 0xa44   : > { %s4587_s3 = scalar_lea.vmem %s3331_s14, 256  ;;  %p4594_p11 = scmp.lt.s32.totalorder %s3331_s14, %s3331_s14 }
 0xa45   : > { %p4588_p5 = scmp.ne.s32.totalorder %s3331_s14, %s4587_s3  ;;  %p4595_p0 = scmp.lt.s32.totalorder %s4587_s3, %s4587_s3 }
 0xa47   : > { %p4589_p4 = pnand %p4588_p5, %p4099_p6  ;;  %p4596_p7 = por %p4595_p0, %p4594_p11 }
 0xa49   : > { %p4590_p13 = pneg %p4589_p4 }
 0xa4b   : > { %p4597_p9 = pnand %p4596_p7, %p4590_p13 }
 0xa4d   : > { %4600 = shalt.err (!%p4597_p9)
}
 0xa4e   : > { %s5924_s24 = sld [smem:[#allocation46_spill]] }
 0xa54   : > { %s4601_s21 = scalar_lea.hbm %s5924_s24, 256 }
 0xa55   : > { %p4602_p12 = scmp.ne.s32.totalorder %s5924_s24, %s4601_s21  ;;  %p4607_p1 = scmp.lt.u32.totalorder %s4601_s21, %s5924_s24 }
 0xa57   : > { %p4603_p3 = pnand %p4602_p12, %p4099_p6 }
 0xa59   : > { %p4604_p8 = pneg %p4603_p3 }
 0xa5b   : > { %p4609_p2 = pnand %p4607_p1, %p4604_p8 }
 0xa5d   : > { %4612 = shalt.err (!%p4609_p2)
}
 0xa5e   : > { %s4699_s26 = smov 128   ;;  %s4700_s12 = smov 8  }
 0xa5f   : > { %4066 = dma.vmem_to_hbm [thread:$0]  (%p4099_p6), %s3331_s14, 256, %s5924_s24, [#allocation7], %s4699_s26, %s4699_s26, %s4700_s12  }
 0xa60   : > { %4654 = dma.done.wait (%p4099_p6), [#allocation7], 256  }
 0xa61   : > { %4656 = vsyncadd (%p4099_p6), [#allocation7], 4294967040 }
 0xa62 PF: > { %s5925_s20 = sld [smem:[#allocation24_spill]]  ;;  %s5926_s0 = sld [smem:[#allocation21_spill]] }
 0xa63   : > { %s5927_s30 = sld [smem:[#allocation22_spill]]  ;;  %s5929_s28 = sld [smem:[#allocation26_spill]] }
 0xa64   : > { %s5930_s21 = smov %s4675_s1 }
 0xa68   : > { %s32_s22 = sadd.s32 1, %s5925_s20   ;;  %s5928_s20 = sld [smem:[#allocation27_spill]] }
 0xa69   : > { %p29_p10 = scmp.ge.s32.totalorder %s32_s22, 4   ;;  %s5931_s1 = smov %s5929_s28 }
 0xa6b   :  { %31 = sbr.rel (!%p29_p10) target bundleno = 24 (0x18), region = 208 }
 0xa72   :  { %3346 = vsyncpa [#allocation6], 1 }
 0xa73   :  { %3348 = vsyncpa [#allocation6 + $0x1], 1 }
 0xa74   :  { %3349 = vsyncpa [#allocation9], 1 }
 0xa75   :  { %3350 = vsyncpa [#allocation7], 1 }
 0xa76   :  { %3352 = vsyncpa [#allocation7 + $0x1], 1 }

</bundles_post_ra>
